<compile_context>
chip_gen: v5e
topology: v5e:2x2
jax: 0.10.0
libtpu: 0.0.40
codegen_flags: <defaults>
</compile_context>

<pallas_src>
import jax
import jax.numpy as jnp
import numpy as np
from jax.experimental import pallas as pl
from jax.experimental.pallas import tpu as pltpu


def _median_return_error_kernel(data_ref, out_ref):
    # data_ref: (5, N) f32 in VMEM, rows = [pred_last, targ_last, feat, nmin, nmax]
    # out_ref:  (1, 1) f32 in SMEM
    N = data_ref.shape[1]

    p_last = data_ref[0:1, :]   # (1, N) last predicted step per series
    t_last = data_ref[1:2, :]   # (1, N) last target step per series
    feat = data_ref[2:3, :]     # (1, N) last (normalized) feature value
    nmin = data_ref[3:4, :]
    nmax = data_ref[4:5, :]

    scale = nmax - nmin
    last_feature = feat * scale + nmin
    # |predicted_return - actual_return| == |(p - t) * scale / last_feature|
    err = jnp.abs((p_last - t_last) * scale / last_feature)           # (1, N), >= 0

    # ---- bit-slice median: O(31 * N), O(N) VMEM ------------------------------
    # err >= 0 so its int32 bit pattern preserves ordering (sign bit clear).
    err_bits = pltpu.bitcast(err, jnp.int32)                          # (1, N) int32

    k_lo = (N - 1) // 2   # lower-middle order statistic (0-indexed)
    k_hi = N // 2         # upper-middle order statistic

    # Greedy MSB->LSB search for the largest threshold t with count(bits < t) <= k;
    # that threshold is exactly the k-th smallest element's bit pattern.
    r_lo = jnp.int32(0)
    r_hi = jnp.int32(0)
    for b in range(30, -1, -1):                 # bit 31 (sign) is always 0
        bit = jnp.int32(1 << b)
        cand_lo = jnp.bitwise_or(r_lo, bit)
        cand_hi = jnp.bitwise_or(r_hi, bit)
        cnt_lo = jnp.sum((err_bits < cand_lo).astype(jnp.int32))
        cnt_hi = jnp.sum((err_bits < cand_hi).astype(jnp.int32))
        r_lo = jnp.where(cnt_lo <= k_lo, cand_lo, r_lo)
        r_hi = jnp.where(cnt_hi <= k_hi, cand_hi, r_hi)

    # Recover the float values of the selected order statistics: the k-th
    # smallest is the minimum of all elements whose bit pattern is >= r_k.
    inf = jnp.float32(jnp.inf)
    v_lo = jnp.min(jnp.where(err_bits >= r_lo, err, inf))
    v_hi = jnp.min(jnp.where(err_bits >= r_hi, err, inf))

    out_ref[0, 0] = (v_lo + v_hi) * jnp.float32(0.5)   # numpy-style median


@jax.jit
def median_final_return_error(predictions, targets, last_features, norm_min, norm_max):
    """predictions/targets: (N, T); last_features/norm_min/norm_max: (N,). Returns f32 scalar."""
    N = predictions.shape[0]
    # Only the last timestep is used: slice it host-side (fused XLA slice), then
    # stack everything into a single (5, N) array -> one DMA into the kernel.
    data = jnp.stack(
        [
            predictions[:, -1].astype(jnp.float32),
            targets[:, -1].astype(jnp.float32),
            last_features.reshape(N).astype(jnp.float32),
            norm_min.reshape(N).astype(jnp.float32),
            norm_max.reshape(N).astype(jnp.float32),
        ],
        axis=0,
    )  # (5, N) f32

    out = pl.pallas_call(
        _median_return_error_kernel,
        out_shape=jax.ShapeDtypeStruct((1, 1), jnp.float32),
        in_specs=[pl.BlockSpec(memory_space=pltpu.MemorySpace.VMEM)],
        out_specs=pl.BlockSpec(memory_space=pltpu.MemorySpace.SMEM),
    )(data)
    return out[0, 0]


if __name__ == "__main__":
    key = jax.random.PRNGKey(0)
    kp, kt, kf, k1, k2 = jax.random.split(key, 5)
    N, T = 8, 12  # 8 series, horizon 12 (even N exercises the two-middle-value median)

    predictions = jax.random.uniform(kp, (N, T), dtype=jnp.float32)
    targets = jax.random.uniform(kt, (N, T), dtype=jnp.float32)
    # last normalized feature value of each series (stand-in for darts.TimeSeries[-1])
    last_features = jax.random.uniform(kf, (N,), dtype=jnp.float32)
    # normalization factors (min_i, max_i), kept away from zero so division is benign
    norm_min = jax.random.uniform(k1, (N,), dtype=jnp.float32) * 5.0 + 1.0
    norm_max = norm_min + jax.random.uniform(k2, (N,), dtype=jnp.float32) * 10.0 + 1.0

    result = median_final_return_error(predictions, targets, last_features, norm_min, norm_max)
    result = jax.block_until_ready(result)

    # numpy reference mirroring the PyTorch module's per-series loop
    p = np.asarray(predictions)
    t = np.asarray(targets)
    lf = np.asarray(last_features)
    mn = np.asarray(norm_min)
    mx = np.asarray(norm_max)
    abs_errors = []
    for i in range(N):
        scale = mx[i] - mn[i]
        last_feature = lf[i] * scale + mn[i]
        last_target = float(t[i][-1]) * scale + mn[i]
        last_pred = float(p[i][-1]) * scale + mn[i]
        predicted_return = (last_pred - last_feature) / last_feature
        actual_return = (last_target - last_feature) / last_feature
        abs_errors.append(abs(predicted_return - actual_return))
    ref = float(np.median(abs_errors))

    got = float(result)
    assert abs(got - ref) <= 1e-5 + 1e-4 * abs(ref), (got, ref)
    print("KERNEL_OK")
</pallas_src>

<mosaic_0001>
module attributes {stable_mosaic.version = 11 : i64} {
  func.func @_median_return_error_kernel(%arg0: memref<5x8xf32, #tpu.memory_space<vmem>>, %arg1: memref<1x1xf32, #tpu.memory_space<smem>>) attributes {dimension_semantics = [], scalar_prefetch = 0 : i64, scratch_operands = 0 : i64, tpu.core_type = #tpu.core_type<tc>} {
    %c0 = arith.constant 0 : index
    %c0_0 = arith.constant 0 : index
    %0 = vector.load %arg0[%c0, %c0_0] : memref<5x8xf32, #tpu.memory_space<vmem>>, vector<1x8xf32>
    %c1 = arith.constant 1 : index
    %c0_1 = arith.constant 0 : index
    %1 = vector.load %arg0[%c1, %c0_1] : memref<5x8xf32, #tpu.memory_space<vmem>>, vector<1x8xf32>
    %c2 = arith.constant 2 : index
    %c0_2 = arith.constant 0 : index
    %2 = vector.load %arg0[%c2, %c0_2] : memref<5x8xf32, #tpu.memory_space<vmem>>, vector<1x8xf32>
    %c3 = arith.constant 3 : index
    %c0_3 = arith.constant 0 : index
    %3 = vector.load %arg0[%c3, %c0_3] : memref<5x8xf32, #tpu.memory_space<vmem>>, vector<1x8xf32>
    %c4 = arith.constant 4 : index
    %c0_4 = arith.constant 0 : index
    %4 = vector.load %arg0[%c4, %c0_4] : memref<5x8xf32, #tpu.memory_space<vmem>>, vector<1x8xf32>
    %5 = arith.subf %4, %3 : vector<1x8xf32>
    %6 = arith.mulf %2, %5 : vector<1x8xf32>
    %7 = arith.addf %6, %3 : vector<1x8xf32>
    %8 = arith.subf %0, %1 : vector<1x8xf32>
    %9 = arith.mulf %8, %5 : vector<1x8xf32>
    %10 = arith.divf %9, %7 : vector<1x8xf32>
    %11 = math.absf %10 : vector<1x8xf32>
    %12 = tpu.bitcast %11 : vector<1x8xf32> -> vector<1x8xi32>
    %c0_i32 = arith.constant 0 : i32
    %c1073741824_i32 = arith.constant 1073741824 : i32
    %13 = arith.ori %c0_i32, %c1073741824_i32 : i32
    %c0_i32_5 = arith.constant 0 : i32
    %c1073741824_i32_6 = arith.constant 1073741824 : i32
    %14 = arith.ori %c0_i32_5, %c1073741824_i32_6 : i32
    %15 = vector.broadcast %13 : i32 to vector<1x8xi32>
    %16 = arith.cmpi slt, %12, %15 : vector<1x8xi32>
    %17 = arith.extui %16 : vector<1x8xi1> to vector<1x8xi32>
    %18 = vector.shape_cast %17 : vector<1x8xi32> to vector<1x1x8xi32>
    %cst = arith.constant dense<0> : vector<1xi32>
    %19 = vector.multi_reduction <add>, %18, %cst [1, 2] : vector<1x1x8xi32> to vector<1xi32>
    %20 = vector.shape_cast %19 : vector<1xi32> to vector<1x1x1xi32>
    %21 = vector.extract %20[0, 0, 0] : i32 from vector<1x1x1xi32>
    %22 = vector.broadcast %14 : i32 to vector<1x8xi32>
    %23 = arith.cmpi slt, %12, %22 : vector<1x8xi32>
    %24 = arith.extui %23 : vector<1x8xi1> to vector<1x8xi32>
    %25 = vector.shape_cast %24 : vector<1x8xi32> to vector<1x1x8xi32>
    %cst_7 = arith.constant dense<0> : vector<1xi32>
    %26 = vector.multi_reduction <add>, %25, %cst_7 [1, 2] : vector<1x1x8xi32> to vector<1xi32>
    %27 = vector.shape_cast %26 : vector<1xi32> to vector<1x1x1xi32>
    %28 = vector.extract %27[0, 0, 0] : i32 from vector<1x1x1xi32>
    %c3_i32 = arith.constant 3 : i32
    %29 = arith.cmpi sle, %21, %c3_i32 : i32
    %c0_i32_8 = arith.constant 0 : i32
    %30 = arith.select %29, %13, %c0_i32_8 : i32
    %c4_i32 = arith.constant 4 : i32
    %31 = arith.cmpi sle, %28, %c4_i32 : i32
    %c0_i32_9 = arith.constant 0 : i32
    %32 = arith.select %31, %14, %c0_i32_9 : i32
    %c536870912_i32 = arith.constant 536870912 : i32
    %33 = arith.ori %30, %c536870912_i32 : i32
    %c536870912_i32_10 = arith.constant 536870912 : i32
    %34 = arith.ori %32, %c536870912_i32_10 : i32
    %35 = vector.broadcast %33 : i32 to vector<1x8xi32>
    %36 = arith.cmpi slt, %12, %35 : vector<1x8xi32>
    %37 = arith.extui %36 : vector<1x8xi1> to vector<1x8xi32>
    %38 = vector.shape_cast %37 : vector<1x8xi32> to vector<1x1x8xi32>
    %cst_11 = arith.constant dense<0> : vector<1xi32>
    %39 = vector.multi_reduction <add>, %38, %cst_11 [1, 2] : vector<1x1x8xi32> to vector<1xi32>
    %40 = vector.shape_cast %39 : vector<1xi32> to vector<1x1x1xi32>
    %41 = vector.extract %40[0, 0, 0] : i32 from vector<1x1x1xi32>
    %42 = vector.broadcast %34 : i32 to vector<1x8xi32>
    %43 = arith.cmpi slt, %12, %42 : vector<1x8xi32>
    %44 = arith.extui %43 : vector<1x8xi1> to vector<1x8xi32>
    %45 = vector.shape_cast %44 : vector<1x8xi32> to vector<1x1x8xi32>
    %cst_12 = arith.constant dense<0> : vector<1xi32>
    %46 = vector.multi_reduction <add>, %45, %cst_12 [1, 2] : vector<1x1x8xi32> to vector<1xi32>
    %47 = vector.shape_cast %46 : vector<1xi32> to vector<1x1x1xi32>
    %48 = vector.extract %47[0, 0, 0] : i32 from vector<1x1x1xi32>
    %c3_i32_13 = arith.constant 3 : i32
    %49 = arith.cmpi sle, %41, %c3_i32_13 : i32
    %50 = arith.select %49, %33, %30 : i32
    %c4_i32_14 = arith.constant 4 : i32
    %51 = arith.cmpi sle, %48, %c4_i32_14 : i32
    %52 = arith.select %51, %34, %32 : i32
    %c268435456_i32 = arith.constant 268435456 : i32
    %53 = arith.ori %50, %c268435456_i32 : i32
    %c268435456_i32_15 = arith.constant 268435456 : i32
    %54 = arith.ori %52, %c268435456_i32_15 : i32
    %55 = vector.broadcast %53 : i32 to vector<1x8xi32>
    %56 = arith.cmpi slt, %12, %55 : vector<1x8xi32>
    %57 = arith.extui %56 : vector<1x8xi1> to vector<1x8xi32>
    %58 = vector.shape_cast %57 : vector<1x8xi32> to vector<1x1x8xi32>
    %cst_16 = arith.constant dense<0> : vector<1xi32>
    %59 = vector.multi_reduction <add>, %58, %cst_16 [1, 2] : vector<1x1x8xi32> to vector<1xi32>
    %60 = vector.shape_cast %59 : vector<1xi32> to vector<1x1x1xi32>
    %61 = vector.extract %60[0, 0, 0] : i32 from vector<1x1x1xi32>
    %62 = vector.broadcast %54 : i32 to vector<1x8xi32>
    %63 = arith.cmpi slt, %12, %62 : vector<1x8xi32>
    %64 = arith.extui %63 : vector<1x8xi1> to vector<1x8xi32>
    %65 = vector.shape_cast %64 : vector<1x8xi32> to vector<1x1x8xi32>
    %cst_17 = arith.constant dense<0> : vector<1xi32>
    %66 = vector.multi_reduction <add>, %65, %cst_17 [1, 2] : vector<1x1x8xi32> to vector<1xi32>
    %67 = vector.shape_cast %66 : vector<1xi32> to vector<1x1x1xi32>
    %68 = vector.extract %67[0, 0, 0] : i32 from vector<1x1x1xi32>
    %c3_i32_18 = arith.constant 3 : i32
    %69 = arith.cmpi sle, %61, %c3_i32_18 : i32
    %70 = arith.select %69, %53, %50 : i32
    %c4_i32_19 = arith.constant 4 : i32
    %71 = arith.cmpi sle, %68, %c4_i32_19 : i32
    %72 = arith.select %71, %54, %52 : i32
    %c134217728_i32 = arith.constant 134217728 : i32
    %73 = arith.ori %70, %c134217728_i32 : i32
    %c134217728_i32_20 = arith.constant 134217728 : i32
    %74 = arith.ori %72, %c134217728_i32_20 : i32
    %75 = vector.broadcast %73 : i32 to vector<1x8xi32>
    %76 = arith.cmpi slt, %12, %75 : vector<1x8xi32>
    %77 = arith.extui %76 : vector<1x8xi1> to vector<1x8xi32>
    %78 = vector.shape_cast %77 : vector<1x8xi32> to vector<1x1x8xi32>
    %cst_21 = arith.constant dense<0> : vector<1xi32>
    %79 = vector.multi_reduction <add>, %78, %cst_21 [1, 2] : vector<1x1x8xi32> to vector<1xi32>
    %80 = vector.shape_cast %79 : vector<1xi32> to vector<1x1x1xi32>
    %81 = vector.extract %80[0, 0, 0] : i32 from vector<1x1x1xi32>
    %82 = vector.broadcast %74 : i32 to vector<1x8xi32>
    %83 = arith.cmpi slt, %12, %82 : vector<1x8xi32>
    %84 = arith.extui %83 : vector<1x8xi1> to vector<1x8xi32>
    %85 = vector.shape_cast %84 : vector<1x8xi32> to vector<1x1x8xi32>
    %cst_22 = arith.constant dense<0> : vector<1xi32>
    %86 = vector.multi_reduction <add>, %85, %cst_22 [1, 2] : vector<1x1x8xi32> to vector<1xi32>
    %87 = vector.shape_cast %86 : vector<1xi32> to vector<1x1x1xi32>
    %88 = vector.extract %87[0, 0, 0] : i32 from vector<1x1x1xi32>
    %c3_i32_23 = arith.constant 3 : i32
    %89 = arith.cmpi sle, %81, %c3_i32_23 : i32
    %90 = arith.select %89, %73, %70 : i32
    %c4_i32_24 = arith.constant 4 : i32
    %91 = arith.cmpi sle, %88, %c4_i32_24 : i32
    %92 = arith.select %91, %74, %72 : i32
    %c67108864_i32 = arith.constant 67108864 : i32
    %93 = arith.ori %90, %c67108864_i32 : i32
    %c67108864_i32_25 = arith.constant 67108864 : i32
    %94 = arith.ori %92, %c67108864_i32_25 : i32
    %95 = vector.broadcast %93 : i32 to vector<1x8xi32>
    %96 = arith.cmpi slt, %12, %95 : vector<1x8xi32>
    %97 = arith.extui %96 : vector<1x8xi1> to vector<1x8xi32>
    %98 = vector.shape_cast %97 : vector<1x8xi32> to vector<1x1x8xi32>
    %cst_26 = arith.constant dense<0> : vector<1xi32>
    %99 = vector.multi_reduction <add>, %98, %cst_26 [1, 2] : vector<1x1x8xi32> to vector<1xi32>
    %100 = vector.shape_cast %99 : vector<1xi32> to vector<1x1x1xi32>
    %101 = vector.extract %100[0, 0, 0] : i32 from vector<1x1x1xi32>
    %102 = vector.broadcast %94 : i32 to vector<1x8xi32>
    %103 = arith.cmpi slt, %12, %102 : vector<1x8xi32>
    %104 = arith.extui %103 : vector<1x8xi1> to vector<1x8xi32>
    %105 = vector.shape_cast %104 : vector<1x8xi32> to vector<1x1x8xi32>
    %cst_27 = arith.constant dense<0> : vector<1xi32>
    %106 = vector.multi_reduction <add>, %105, %cst_27 [1, 2] : vector<1x1x8xi32> to vector<1xi32>
    %107 = vector.shape_cast %106 : vector<1xi32> to vector<1x1x1xi32>
    %108 = vector.extract %107[0, 0, 0] : i32 from vector<1x1x1xi32>
    %c3_i32_28 = arith.constant 3 : i32
    %109 = arith.cmpi sle, %101, %c3_i32_28 : i32
    %110 = arith.select %109, %93, %90 : i32
    %c4_i32_29 = arith.constant 4 : i32
    %111 = arith.cmpi sle, %108, %c4_i32_29 : i32
    %112 = arith.select %111, %94, %92 : i32
    %c33554432_i32 = arith.constant 33554432 : i32
    %113 = arith.ori %110, %c33554432_i32 : i32
    %c33554432_i32_30 = arith.constant 33554432 : i32
    %114 = arith.ori %112, %c33554432_i32_30 : i32
    %115 = vector.broadcast %113 : i32 to vector<1x8xi32>
    %116 = arith.cmpi slt, %12, %115 : vector<1x8xi32>
    %117 = arith.extui %116 : vector<1x8xi1> to vector<1x8xi32>
    %118 = vector.shape_cast %117 : vector<1x8xi32> to vector<1x1x8xi32>
    %cst_31 = arith.constant dense<0> : vector<1xi32>
    %119 = vector.multi_reduction <add>, %118, %cst_31 [1, 2] : vector<1x1x8xi32> to vector<1xi32>
    %120 = vector.shape_cast %119 : vector<1xi32> to vector<1x1x1xi32>
    %121 = vector.extract %120[0, 0, 0] : i32 from vector<1x1x1xi32>
    %122 = vector.broadcast %114 : i32 to vector<1x8xi32>
    %123 = arith.cmpi slt, %12, %122 : vector<1x8xi32>
    %124 = arith.extui %123 : vector<1x8xi1> to vector<1x8xi32>
    %125 = vector.shape_cast %124 : vector<1x8xi32> to vector<1x1x8xi32>
    %cst_32 = arith.constant dense<0> : vector<1xi32>
    %126 = vector.multi_reduction <add>, %125, %cst_32 [1, 2] : vector<1x1x8xi32> to vector<1xi32>
    %127 = vector.shape_cast %126 : vector<1xi32> to vector<1x1x1xi32>
    %128 = vector.extract %127[0, 0, 0] : i32 from vector<1x1x1xi32>
    %c3_i32_33 = arith.constant 3 : i32
    %129 = arith.cmpi sle, %121, %c3_i32_33 : i32
    %130 = arith.select %129, %113, %110 : i32
    %c4_i32_34 = arith.constant 4 : i32
    %131 = arith.cmpi sle, %128, %c4_i32_34 : i32
    %132 = arith.select %131, %114, %112 : i32
    %c16777216_i32 = arith.constant 16777216 : i32
    %133 = arith.ori %130, %c16777216_i32 : i32
    %c16777216_i32_35 = arith.constant 16777216 : i32
    %134 = arith.ori %132, %c16777216_i32_35 : i32
    %135 = vector.broadcast %133 : i32 to vector<1x8xi32>
    %136 = arith.cmpi slt, %12, %135 : vector<1x8xi32>
    %137 = arith.extui %136 : vector<1x8xi1> to vector<1x8xi32>
    %138 = vector.shape_cast %137 : vector<1x8xi32> to vector<1x1x8xi32>
    %cst_36 = arith.constant dense<0> : vector<1xi32>
    %139 = vector.multi_reduction <add>, %138, %cst_36 [1, 2] : vector<1x1x8xi32> to vector<1xi32>
    %140 = vector.shape_cast %139 : vector<1xi32> to vector<1x1x1xi32>
    %141 = vector.extract %140[0, 0, 0] : i32 from vector<1x1x1xi32>
    %142 = vector.broadcast %134 : i32 to vector<1x8xi32>
    %143 = arith.cmpi slt, %12, %142 : vector<1x8xi32>
    %144 = arith.extui %143 : vector<1x8xi1> to vector<1x8xi32>
    %145 = vector.shape_cast %144 : vector<1x8xi32> to vector<1x1x8xi32>
    %cst_37 = arith.constant dense<0> : vector<1xi32>
    %146 = vector.multi_reduction <add>, %145, %cst_37 [1, 2] : vector<1x1x8xi32> to vector<1xi32>
    %147 = vector.shape_cast %146 : vector<1xi32> to vector<1x1x1xi32>
    %148 = vector.extract %147[0, 0, 0] : i32 from vector<1x1x1xi32>
    %c3_i32_38 = arith.constant 3 : i32
    %149 = arith.cmpi sle, %141, %c3_i32_38 : i32
    %150 = arith.select %149, %133, %130 : i32
    %c4_i32_39 = arith.constant 4 : i32
    %151 = arith.cmpi sle, %148, %c4_i32_39 : i32
    %152 = arith.select %151, %134, %132 : i32
    %c8388608_i32 = arith.constant 8388608 : i32
    %153 = arith.ori %150, %c8388608_i32 : i32
    %c8388608_i32_40 = arith.constant 8388608 : i32
    %154 = arith.ori %152, %c8388608_i32_40 : i32
    %155 = vector.broadcast %153 : i32 to vector<1x8xi32>
    %156 = arith.cmpi slt, %12, %155 : vector<1x8xi32>
    %157 = arith.extui %156 : vector<1x8xi1> to vector<1x8xi32>
    %158 = vector.shape_cast %157 : vector<1x8xi32> to vector<1x1x8xi32>
    %cst_41 = arith.constant dense<0> : vector<1xi32>
    %159 = vector.multi_reduction <add>, %158, %cst_41 [1, 2] : vector<1x1x8xi32> to vector<1xi32>
    %160 = vector.shape_cast %159 : vector<1xi32> to vector<1x1x1xi32>
    %161 = vector.extract %160[0, 0, 0] : i32 from vector<1x1x1xi32>
    %162 = vector.broadcast %154 : i32 to vector<1x8xi32>
    %163 = arith.cmpi slt, %12, %162 : vector<1x8xi32>
    %164 = arith.extui %163 : vector<1x8xi1> to vector<1x8xi32>
    %165 = vector.shape_cast %164 : vector<1x8xi32> to vector<1x1x8xi32>
    %cst_42 = arith.constant dense<0> : vector<1xi32>
    %166 = vector.multi_reduction <add>, %165, %cst_42 [1, 2] : vector<1x1x8xi32> to vector<1xi32>
    %167 = vector.shape_cast %166 : vector<1xi32> to vector<1x1x1xi32>
    %168 = vector.extract %167[0, 0, 0] : i32 from vector<1x1x1xi32>
    %c3_i32_43 = arith.constant 3 : i32
    %169 = arith.cmpi sle, %161, %c3_i32_43 : i32
    %170 = arith.select %169, %153, %150 : i32
    %c4_i32_44 = arith.constant 4 : i32
    %171 = arith.cmpi sle, %168, %c4_i32_44 : i32
    %172 = arith.select %171, %154, %152 : i32
    %c4194304_i32 = arith.constant 4194304 : i32
    %173 = arith.ori %170, %c4194304_i32 : i32
    %c4194304_i32_45 = arith.constant 4194304 : i32
    %174 = arith.ori %172, %c4194304_i32_45 : i32
    %175 = vector.broadcast %173 : i32 to vector<1x8xi32>
    %176 = arith.cmpi slt, %12, %175 : vector<1x8xi32>
    %177 = arith.extui %176 : vector<1x8xi1> to vector<1x8xi32>
    %178 = vector.shape_cast %177 : vector<1x8xi32> to vector<1x1x8xi32>
    %cst_46 = arith.constant dense<0> : vector<1xi32>
    %179 = vector.multi_reduction <add>, %178, %cst_46 [1, 2] : vector<1x1x8xi32> to vector<1xi32>
    %180 = vector.shape_cast %179 : vector<1xi32> to vector<1x1x1xi32>
    %181 = vector.extract %180[0, 0, 0] : i32 from vector<1x1x1xi32>
    %182 = vector.broadcast %174 : i32 to vector<1x8xi32>
    %183 = arith.cmpi slt, %12, %182 : vector<1x8xi32>
    %184 = arith.extui %183 : vector<1x8xi1> to vector<1x8xi32>
    %185 = vector.shape_cast %184 : vector<1x8xi32> to vector<1x1x8xi32>
    %cst_47 = arith.constant dense<0> : vector<1xi32>
    %186 = vector.multi_reduction <add>, %185, %cst_47 [1, 2] : vector<1x1x8xi32> to vector<1xi32>
    %187 = vector.shape_cast %186 : vector<1xi32> to vector<1x1x1xi32>
    %188 = vector.extract %187[0, 0, 0] : i32 from vector<1x1x1xi32>
    %c3_i32_48 = arith.constant 3 : i32
    %189 = arith.cmpi sle, %181, %c3_i32_48 : i32
    %190 = arith.select %189, %173, %170 : i32
    %c4_i32_49 = arith.constant 4 : i32
    %191 = arith.cmpi sle, %188, %c4_i32_49 : i32
    %192 = arith.select %191, %174, %172 : i32
    %c2097152_i32 = arith.constant 2097152 : i32
    %193 = arith.ori %190, %c2097152_i32 : i32
    %c2097152_i32_50 = arith.constant 2097152 : i32
    %194 = arith.ori %192, %c2097152_i32_50 : i32
    %195 = vector.broadcast %193 : i32 to vector<1x8xi32>
    %196 = arith.cmpi slt, %12, %195 : vector<1x8xi32>
    %197 = arith.extui %196 : vector<1x8xi1> to vector<1x8xi32>
    %198 = vector.shape_cast %197 : vector<1x8xi32> to vector<1x1x8xi32>
    %cst_51 = arith.constant dense<0> : vector<1xi32>
    %199 = vector.multi_reduction <add>, %198, %cst_51 [1, 2] : vector<1x1x8xi32> to vector<1xi32>
    %200 = vector.shape_cast %199 : vector<1xi32> to vector<1x1x1xi32>
    %201 = vector.extract %200[0, 0, 0] : i32 from vector<1x1x1xi32>
    %202 = vector.broadcast %194 : i32 to vector<1x8xi32>
    %203 = arith.cmpi slt, %12, %202 : vector<1x8xi32>
    %204 = arith.extui %203 : vector<1x8xi1> to vector<1x8xi32>
    %205 = vector.shape_cast %204 : vector<1x8xi32> to vector<1x1x8xi32>
    %cst_52 = arith.constant dense<0> : vector<1xi32>
    %206 = vector.multi_reduction <add>, %205, %cst_52 [1, 2] : vector<1x1x8xi32> to vector<1xi32>
    %207 = vector.shape_cast %206 : vector<1xi32> to vector<1x1x1xi32>
    %208 = vector.extract %207[0, 0, 0] : i32 from vector<1x1x1xi32>
    %c3_i32_53 = arith.constant 3 : i32
    %209 = arith.cmpi sle, %201, %c3_i32_53 : i32
    %210 = arith.select %209, %193, %190 : i32
    %c4_i32_54 = arith.constant 4 : i32
    %211 = arith.cmpi sle, %208, %c4_i32_54 : i32
    %212 = arith.select %211, %194, %192 : i32
    %c1048576_i32 = arith.constant 1048576 : i32
    %213 = arith.ori %210, %c1048576_i32 : i32
    %c1048576_i32_55 = arith.constant 1048576 : i32
    %214 = arith.ori %212, %c1048576_i32_55 : i32
    %215 = vector.broadcast %213 : i32 to vector<1x8xi32>
    %216 = arith.cmpi slt, %12, %215 : vector<1x8xi32>
    %217 = arith.extui %216 : vector<1x8xi1> to vector<1x8xi32>
    %218 = vector.shape_cast %217 : vector<1x8xi32> to vector<1x1x8xi32>
    %cst_56 = arith.constant dense<0> : vector<1xi32>
    %219 = vector.multi_reduction <add>, %218, %cst_56 [1, 2] : vector<1x1x8xi32> to vector<1xi32>
    %220 = vector.shape_cast %219 : vector<1xi32> to vector<1x1x1xi32>
    %221 = vector.extract %220[0, 0, 0] : i32 from vector<1x1x1xi32>
    %222 = vector.broadcast %214 : i32 to vector<1x8xi32>
    %223 = arith.cmpi slt, %12, %222 : vector<1x8xi32>
    %224 = arith.extui %223 : vector<1x8xi1> to vector<1x8xi32>
    %225 = vector.shape_cast %224 : vector<1x8xi32> to vector<1x1x8xi32>
    %cst_57 = arith.constant dense<0> : vector<1xi32>
    %226 = vector.multi_reduction <add>, %225, %cst_57 [1, 2] : vector<1x1x8xi32> to vector<1xi32>
    %227 = vector.shape_cast %226 : vector<1xi32> to vector<1x1x1xi32>
    %228 = vector.extract %227[0, 0, 0] : i32 from vector<1x1x1xi32>
    %c3_i32_58 = arith.constant 3 : i32
    %229 = arith.cmpi sle, %221, %c3_i32_58 : i32
    %230 = arith.select %229, %213, %210 : i32
    %c4_i32_59 = arith.constant 4 : i32
    %231 = arith.cmpi sle, %228, %c4_i32_59 : i32
    %232 = arith.select %231, %214, %212 : i32
    %c524288_i32 = arith.constant 524288 : i32
    %233 = arith.ori %230, %c524288_i32 : i32
    %c524288_i32_60 = arith.constant 524288 : i32
    %234 = arith.ori %232, %c524288_i32_60 : i32
    %235 = vector.broadcast %233 : i32 to vector<1x8xi32>
    %236 = arith.cmpi slt, %12, %235 : vector<1x8xi32>
    %237 = arith.extui %236 : vector<1x8xi1> to vector<1x8xi32>
    %238 = vector.shape_cast %237 : vector<1x8xi32> to vector<1x1x8xi32>
    %cst_61 = arith.constant dense<0> : vector<1xi32>
    %239 = vector.multi_reduction <add>, %238, %cst_61 [1, 2] : vector<1x1x8xi32> to vector<1xi32>
    %240 = vector.shape_cast %239 : vector<1xi32> to vector<1x1x1xi32>
    %241 = vector.extract %240[0, 0, 0] : i32 from vector<1x1x1xi32>
    %242 = vector.broadcast %234 : i32 to vector<1x8xi32>
    %243 = arith.cmpi slt, %12, %242 : vector<1x8xi32>
    %244 = arith.extui %243 : vector<1x8xi1> to vector<1x8xi32>
    %245 = vector.shape_cast %244 : vector<1x8xi32> to vector<1x1x8xi32>
    %cst_62 = arith.constant dense<0> : vector<1xi32>
    %246 = vector.multi_reduction <add>, %245, %cst_62 [1, 2] : vector<1x1x8xi32> to vector<1xi32>
    %247 = vector.shape_cast %246 : vector<1xi32> to vector<1x1x1xi32>
    %248 = vector.extract %247[0, 0, 0] : i32 from vector<1x1x1xi32>
    %c3_i32_63 = arith.constant 3 : i32
    %249 = arith.cmpi sle, %241, %c3_i32_63 : i32
    %250 = arith.select %249, %233, %230 : i32
    %c4_i32_64 = arith.constant 4 : i32
    %251 = arith.cmpi sle, %248, %c4_i32_64 : i32
    %252 = arith.select %251, %234, %232 : i32
    %c262144_i32 = arith.constant 262144 : i32
    %253 = arith.ori %250, %c262144_i32 : i32
    %c262144_i32_65 = arith.constant 262144 : i32
    %254 = arith.ori %252, %c262144_i32_65 : i32
    %255 = vector.broadcast %253 : i32 to vector<1x8xi32>
    %256 = arith.cmpi slt, %12, %255 : vector<1x8xi32>
    %257 = arith.extui %256 : vector<1x8xi1> to vector<1x8xi32>
    %258 = vector.shape_cast %257 : vector<1x8xi32> to vector<1x1x8xi32>
    %cst_66 = arith.constant dense<0> : vector<1xi32>
    %259 = vector.multi_reduction <add>, %258, %cst_66 [1, 2] : vector<1x1x8xi32> to vector<1xi32>
    %260 = vector.shape_cast %259 : vector<1xi32> to vector<1x1x1xi32>
    %261 = vector.extract %260[0, 0, 0] : i32 from vector<1x1x1xi32>
    %262 = vector.broadcast %254 : i32 to vector<1x8xi32>
    %263 = arith.cmpi slt, %12, %262 : vector<1x8xi32>
    %264 = arith.extui %263 : vector<1x8xi1> to vector<1x8xi32>
    %265 = vector.shape_cast %264 : vector<1x8xi32> to vector<1x1x8xi32>
    %cst_67 = arith.constant dense<0> : vector<1xi32>
    %266 = vector.multi_reduction <add>, %265, %cst_67 [1, 2] : vector<1x1x8xi32> to vector<1xi32>
    %267 = vector.shape_cast %266 : vector<1xi32> to vector<1x1x1xi32>
    %268 = vector.extract %267[0, 0, 0] : i32 from vector<1x1x1xi32>
    %c3_i32_68 = arith.constant 3 : i32
    %269 = arith.cmpi sle, %261, %c3_i32_68 : i32
    %270 = arith.select %269, %253, %250 : i32
    %c4_i32_69 = arith.constant 4 : i32
    %271 = arith.cmpi sle, %268, %c4_i32_69 : i32
    %272 = arith.select %271, %254, %252 : i32
    %c131072_i32 = arith.constant 131072 : i32
    %273 = arith.ori %270, %c131072_i32 : i32
    %c131072_i32_70 = arith.constant 131072 : i32
    %274 = arith.ori %272, %c131072_i32_70 : i32
    %275 = vector.broadcast %273 : i32 to vector<1x8xi32>
    %276 = arith.cmpi slt, %12, %275 : vector<1x8xi32>
    %277 = arith.extui %276 : vector<1x8xi1> to vector<1x8xi32>
    %278 = vector.shape_cast %277 : vector<1x8xi32> to vector<1x1x8xi32>
    %cst_71 = arith.constant dense<0> : vector<1xi32>
    %279 = vector.multi_reduction <add>, %278, %cst_71 [1, 2] : vector<1x1x8xi32> to vector<1xi32>
    %280 = vector.shape_cast %279 : vector<1xi32> to vector<1x1x1xi32>
    %281 = vector.extract %280[0, 0, 0] : i32 from vector<1x1x1xi32>
    %282 = vector.broadcast %274 : i32 to vector<1x8xi32>
    %283 = arith.cmpi slt, %12, %282 : vector<1x8xi32>
    %284 = arith.extui %283 : vector<1x8xi1> to vector<1x8xi32>
    %285 = vector.shape_cast %284 : vector<1x8xi32> to vector<1x1x8xi32>
    %cst_72 = arith.constant dense<0> : vector<1xi32>
    %286 = vector.multi_reduction <add>, %285, %cst_72 [1, 2] : vector<1x1x8xi32> to vector<1xi32>
    %287 = vector.shape_cast %286 : vector<1xi32> to vector<1x1x1xi32>
    %288 = vector.extract %287[0, 0, 0] : i32 from vector<1x1x1xi32>
    %c3_i32_73 = arith.constant 3 : i32
    %289 = arith.cmpi sle, %281, %c3_i32_73 : i32
    %290 = arith.select %289, %273, %270 : i32
    %c4_i32_74 = arith.constant 4 : i32
    %291 = arith.cmpi sle, %288, %c4_i32_74 : i32
    %292 = arith.select %291, %274, %272 : i32
    %c65536_i32 = arith.constant 65536 : i32
    %293 = arith.ori %290, %c65536_i32 : i32
    %c65536_i32_75 = arith.constant 65536 : i32
    %294 = arith.ori %292, %c65536_i32_75 : i32
    %295 = vector.broadcast %293 : i32 to vector<1x8xi32>
    %296 = arith.cmpi slt, %12, %295 : vector<1x8xi32>
    %297 = arith.extui %296 : vector<1x8xi1> to vector<1x8xi32>
    %298 = vector.shape_cast %297 : vector<1x8xi32> to vector<1x1x8xi32>
    %cst_76 = arith.constant dense<0> : vector<1xi32>
    %299 = vector.multi_reduction <add>, %298, %cst_76 [1, 2] : vector<1x1x8xi32> to vector<1xi32>
    %300 = vector.shape_cast %299 : vector<1xi32> to vector<1x1x1xi32>
    %301 = vector.extract %300[0, 0, 0] : i32 from vector<1x1x1xi32>
    %302 = vector.broadcast %294 : i32 to vector<1x8xi32>
    %303 = arith.cmpi slt, %12, %302 : vector<1x8xi32>
    %304 = arith.extui %303 : vector<1x8xi1> to vector<1x8xi32>
    %305 = vector.shape_cast %304 : vector<1x8xi32> to vector<1x1x8xi32>
    %cst_77 = arith.constant dense<0> : vector<1xi32>
    %306 = vector.multi_reduction <add>, %305, %cst_77 [1, 2] : vector<1x1x8xi32> to vector<1xi32>
    %307 = vector.shape_cast %306 : vector<1xi32> to vector<1x1x1xi32>
    %308 = vector.extract %307[0, 0, 0] : i32 from vector<1x1x1xi32>
    %c3_i32_78 = arith.constant 3 : i32
    %309 = arith.cmpi sle, %301, %c3_i32_78 : i32
    %310 = arith.select %309, %293, %290 : i32
    %c4_i32_79 = arith.constant 4 : i32
    %311 = arith.cmpi sle, %308, %c4_i32_79 : i32
    %312 = arith.select %311, %294, %292 : i32
    %c32768_i32 = arith.constant 32768 : i32
    %313 = arith.ori %310, %c32768_i32 : i32
    %c32768_i32_80 = arith.constant 32768 : i32
    %314 = arith.ori %312, %c32768_i32_80 : i32
    %315 = vector.broadcast %313 : i32 to vector<1x8xi32>
    %316 = arith.cmpi slt, %12, %315 : vector<1x8xi32>
    %317 = arith.extui %316 : vector<1x8xi1> to vector<1x8xi32>
    %318 = vector.shape_cast %317 : vector<1x8xi32> to vector<1x1x8xi32>
    %cst_81 = arith.constant dense<0> : vector<1xi32>
    %319 = vector.multi_reduction <add>, %318, %cst_81 [1, 2] : vector<1x1x8xi32> to vector<1xi32>
    %320 = vector.shape_cast %319 : vector<1xi32> to vector<1x1x1xi32>
    %321 = vector.extract %320[0, 0, 0] : i32 from vector<1x1x1xi32>
    %322 = vector.broadcast %314 : i32 to vector<1x8xi32>
    %323 = arith.cmpi slt, %12, %322 : vector<1x8xi32>
    %324 = arith.extui %323 : vector<1x8xi1> to vector<1x8xi32>
    %325 = vector.shape_cast %324 : vector<1x8xi32> to vector<1x1x8xi32>
    %cst_82 = arith.constant dense<0> : vector<1xi32>
    %326 = vector.multi_reduction <add>, %325, %cst_82 [1, 2] : vector<1x1x8xi32> to vector<1xi32>
    %327 = vector.shape_cast %326 : vector<1xi32> to vector<1x1x1xi32>
    %328 = vector.extract %327[0, 0, 0] : i32 from vector<1x1x1xi32>
    %c3_i32_83 = arith.constant 3 : i32
    %329 = arith.cmpi sle, %321, %c3_i32_83 : i32
    %330 = arith.select %329, %313, %310 : i32
    %c4_i32_84 = arith.constant 4 : i32
    %331 = arith.cmpi sle, %328, %c4_i32_84 : i32
    %332 = arith.select %331, %314, %312 : i32
    %c16384_i32 = arith.constant 16384 : i32
    %333 = arith.ori %330, %c16384_i32 : i32
    %c16384_i32_85 = arith.constant 16384 : i32
    %334 = arith.ori %332, %c16384_i32_85 : i32
    %335 = vector.broadcast %333 : i32 to vector<1x8xi32>
    %336 = arith.cmpi slt, %12, %335 : vector<1x8xi32>
    %337 = arith.extui %336 : vector<1x8xi1> to vector<1x8xi32>
    %338 = vector.shape_cast %337 : vector<1x8xi32> to vector<1x1x8xi32>
    %cst_86 = arith.constant dense<0> : vector<1xi32>
    %339 = vector.multi_reduction <add>, %338, %cst_86 [1, 2] : vector<1x1x8xi32> to vector<1xi32>
    %340 = vector.shape_cast %339 : vector<1xi32> to vector<1x1x1xi32>
    %341 = vector.extract %340[0, 0, 0] : i32 from vector<1x1x1xi32>
    %342 = vector.broadcast %334 : i32 to vector<1x8xi32>
    %343 = arith.cmpi slt, %12, %342 : vector<1x8xi32>
    %344 = arith.extui %343 : vector<1x8xi1> to vector<1x8xi32>
    %345 = vector.shape_cast %344 : vector<1x8xi32> to vector<1x1x8xi32>
    %cst_87 = arith.constant dense<0> : vector<1xi32>
    %346 = vector.multi_reduction <add>, %345, %cst_87 [1, 2] : vector<1x1x8xi32> to vector<1xi32>
    %347 = vector.shape_cast %346 : vector<1xi32> to vector<1x1x1xi32>
    %348 = vector.extract %347[0, 0, 0] : i32 from vector<1x1x1xi32>
    %c3_i32_88 = arith.constant 3 : i32
    %349 = arith.cmpi sle, %341, %c3_i32_88 : i32
    %350 = arith.select %349, %333, %330 : i32
    %c4_i32_89 = arith.constant 4 : i32
    %351 = arith.cmpi sle, %348, %c4_i32_89 : i32
    %352 = arith.select %351, %334, %332 : i32
    %c8192_i32 = arith.constant 8192 : i32
    %353 = arith.ori %350, %c8192_i32 : i32
    %c8192_i32_90 = arith.constant 8192 : i32
    %354 = arith.ori %352, %c8192_i32_90 : i32
    %355 = vector.broadcast %353 : i32 to vector<1x8xi32>
    %356 = arith.cmpi slt, %12, %355 : vector<1x8xi32>
    %357 = arith.extui %356 : vector<1x8xi1> to vector<1x8xi32>
    %358 = vector.shape_cast %357 : vector<1x8xi32> to vector<1x1x8xi32>
    %cst_91 = arith.constant dense<0> : vector<1xi32>
    %359 = vector.multi_reduction <add>, %358, %cst_91 [1, 2] : vector<1x1x8xi32> to vector<1xi32>
    %360 = vector.shape_cast %359 : vector<1xi32> to vector<1x1x1xi32>
    %361 = vector.extract %360[0, 0, 0] : i32 from vector<1x1x1xi32>
    %362 = vector.broadcast %354 : i32 to vector<1x8xi32>
    %363 = arith.cmpi slt, %12, %362 : vector<1x8xi32>
    %364 = arith.extui %363 : vector<1x8xi1> to vector<1x8xi32>
    %365 = vector.shape_cast %364 : vector<1x8xi32> to vector<1x1x8xi32>
    %cst_92 = arith.constant dense<0> : vector<1xi32>
    %366 = vector.multi_reduction <add>, %365, %cst_92 [1, 2] : vector<1x1x8xi32> to vector<1xi32>
    %367 = vector.shape_cast %366 : vector<1xi32> to vector<1x1x1xi32>
    %368 = vector.extract %367[0, 0, 0] : i32 from vector<1x1x1xi32>
    %c3_i32_93 = arith.constant 3 : i32
    %369 = arith.cmpi sle, %361, %c3_i32_93 : i32
    %370 = arith.select %369, %353, %350 : i32
    %c4_i32_94 = arith.constant 4 : i32
    %371 = arith.cmpi sle, %368, %c4_i32_94 : i32
    %372 = arith.select %371, %354, %352 : i32
    %c4096_i32 = arith.constant 4096 : i32
    %373 = arith.ori %370, %c4096_i32 : i32
    %c4096_i32_95 = arith.constant 4096 : i32
    %374 = arith.ori %372, %c4096_i32_95 : i32
    %375 = vector.broadcast %373 : i32 to vector<1x8xi32>
    %376 = arith.cmpi slt, %12, %375 : vector<1x8xi32>
    %377 = arith.extui %376 : vector<1x8xi1> to vector<1x8xi32>
    %378 = vector.shape_cast %377 : vector<1x8xi32> to vector<1x1x8xi32>
    %cst_96 = arith.constant dense<0> : vector<1xi32>
    %379 = vector.multi_reduction <add>, %378, %cst_96 [1, 2] : vector<1x1x8xi32> to vector<1xi32>
    %380 = vector.shape_cast %379 : vector<1xi32> to vector<1x1x1xi32>
    %381 = vector.extract %380[0, 0, 0] : i32 from vector<1x1x1xi32>
    %382 = vector.broadcast %374 : i32 to vector<1x8xi32>
    %383 = arith.cmpi slt, %12, %382 : vector<1x8xi32>
    %384 = arith.extui %383 : vector<1x8xi1> to vector<1x8xi32>
    %385 = vector.shape_cast %384 : vector<1x8xi32> to vector<1x1x8xi32>
    %cst_97 = arith.constant dense<0> : vector<1xi32>
    %386 = vector.multi_reduction <add>, %385, %cst_97 [1, 2] : vector<1x1x8xi32> to vector<1xi32>
    %387 = vector.shape_cast %386 : vector<1xi32> to vector<1x1x1xi32>
    %388 = vector.extract %387[0, 0, 0] : i32 from vector<1x1x1xi32>
    %c3_i32_98 = arith.constant 3 : i32
    %389 = arith.cmpi sle, %381, %c3_i32_98 : i32
    %390 = arith.select %389, %373, %370 : i32
    %c4_i32_99 = arith.constant 4 : i32
    %391 = arith.cmpi sle, %388, %c4_i32_99 : i32
    %392 = arith.select %391, %374, %372 : i32
    %c2048_i32 = arith.constant 2048 : i32
    %393 = arith.ori %390, %c2048_i32 : i32
    %c2048_i32_100 = arith.constant 2048 : i32
    %394 = arith.ori %392, %c2048_i32_100 : i32
    %395 = vector.broadcast %393 : i32 to vector<1x8xi32>
    %396 = arith.cmpi slt, %12, %395 : vector<1x8xi32>
    %397 = arith.extui %396 : vector<1x8xi1> to vector<1x8xi32>
    %398 = vector.shape_cast %397 : vector<1x8xi32> to vector<1x1x8xi32>
    %cst_101 = arith.constant dense<0> : vector<1xi32>
    %399 = vector.multi_reduction <add>, %398, %cst_101 [1, 2] : vector<1x1x8xi32> to vector<1xi32>
    %400 = vector.shape_cast %399 : vector<1xi32> to vector<1x1x1xi32>
    %401 = vector.extract %400[0, 0, 0] : i32 from vector<1x1x1xi32>
    %402 = vector.broadcast %394 : i32 to vector<1x8xi32>
    %403 = arith.cmpi slt, %12, %402 : vector<1x8xi32>
    %404 = arith.extui %403 : vector<1x8xi1> to vector<1x8xi32>
    %405 = vector.shape_cast %404 : vector<1x8xi32> to vector<1x1x8xi32>
    %cst_102 = arith.constant dense<0> : vector<1xi32>
    %406 = vector.multi_reduction <add>, %405, %cst_102 [1, 2] : vector<1x1x8xi32> to vector<1xi32>
    %407 = vector.shape_cast %406 : vector<1xi32> to vector<1x1x1xi32>
    %408 = vector.extract %407[0, 0, 0] : i32 from vector<1x1x1xi32>
    %c3_i32_103 = arith.constant 3 : i32
    %409 = arith.cmpi sle, %401, %c3_i32_103 : i32
    %410 = arith.select %409, %393, %390 : i32
    %c4_i32_104 = arith.constant 4 : i32
    %411 = arith.cmpi sle, %408, %c4_i32_104 : i32
    %412 = arith.select %411, %394, %392 : i32
    %c1024_i32 = arith.constant 1024 : i32
    %413 = arith.ori %410, %c1024_i32 : i32
    %c1024_i32_105 = arith.constant 1024 : i32
    %414 = arith.ori %412, %c1024_i32_105 : i32
    %415 = vector.broadcast %413 : i32 to vector<1x8xi32>
    %416 = arith.cmpi slt, %12, %415 : vector<1x8xi32>
    %417 = arith.extui %416 : vector<1x8xi1> to vector<1x8xi32>
    %418 = vector.shape_cast %417 : vector<1x8xi32> to vector<1x1x8xi32>
    %cst_106 = arith.constant dense<0> : vector<1xi32>
    %419 = vector.multi_reduction <add>, %418, %cst_106 [1, 2] : vector<1x1x8xi32> to vector<1xi32>
    %420 = vector.shape_cast %419 : vector<1xi32> to vector<1x1x1xi32>
    %421 = vector.extract %420[0, 0, 0] : i32 from vector<1x1x1xi32>
    %422 = vector.broadcast %414 : i32 to vector<1x8xi32>
    %423 = arith.cmpi slt, %12, %422 : vector<1x8xi32>
    %424 = arith.extui %423 : vector<1x8xi1> to vector<1x8xi32>
    %425 = vector.shape_cast %424 : vector<1x8xi32> to vector<1x1x8xi32>
    %cst_107 = arith.constant dense<0> : vector<1xi32>
    %426 = vector.multi_reduction <add>, %425, %cst_107 [1, 2] : vector<1x1x8xi32> to vector<1xi32>
    %427 = vector.shape_cast %426 : vector<1xi32> to vector<1x1x1xi32>
    %428 = vector.extract %427[0, 0, 0] : i32 from vector<1x1x1xi32>
    %c3_i32_108 = arith.constant 3 : i32
    %429 = arith.cmpi sle, %421, %c3_i32_108 : i32
    %430 = arith.select %429, %413, %410 : i32
    %c4_i32_109 = arith.constant 4 : i32
    %431 = arith.cmpi sle, %428, %c4_i32_109 : i32
    %432 = arith.select %431, %414, %412 : i32
    %c512_i32 = arith.constant 512 : i32
    %433 = arith.ori %430, %c512_i32 : i32
    %c512_i32_110 = arith.constant 512 : i32
    %434 = arith.ori %432, %c512_i32_110 : i32
    %435 = vector.broadcast %433 : i32 to vector<1x8xi32>
    %436 = arith.cmpi slt, %12, %435 : vector<1x8xi32>
    %437 = arith.extui %436 : vector<1x8xi1> to vector<1x8xi32>
    %438 = vector.shape_cast %437 : vector<1x8xi32> to vector<1x1x8xi32>
    %cst_111 = arith.constant dense<0> : vector<1xi32>
    %439 = vector.multi_reduction <add>, %438, %cst_111 [1, 2] : vector<1x1x8xi32> to vector<1xi32>
    %440 = vector.shape_cast %439 : vector<1xi32> to vector<1x1x1xi32>
    %441 = vector.extract %440[0, 0, 0] : i32 from vector<1x1x1xi32>
    %442 = vector.broadcast %434 : i32 to vector<1x8xi32>
    %443 = arith.cmpi slt, %12, %442 : vector<1x8xi32>
    %444 = arith.extui %443 : vector<1x8xi1> to vector<1x8xi32>
    %445 = vector.shape_cast %444 : vector<1x8xi32> to vector<1x1x8xi32>
    %cst_112 = arith.constant dense<0> : vector<1xi32>
    %446 = vector.multi_reduction <add>, %445, %cst_112 [1, 2] : vector<1x1x8xi32> to vector<1xi32>
    %447 = vector.shape_cast %446 : vector<1xi32> to vector<1x1x1xi32>
    %448 = vector.extract %447[0, 0, 0] : i32 from vector<1x1x1xi32>
    %c3_i32_113 = arith.constant 3 : i32
    %449 = arith.cmpi sle, %441, %c3_i32_113 : i32
    %450 = arith.select %449, %433, %430 : i32
    %c4_i32_114 = arith.constant 4 : i32
    %451 = arith.cmpi sle, %448, %c4_i32_114 : i32
    %452 = arith.select %451, %434, %432 : i32
    %c256_i32 = arith.constant 256 : i32
    %453 = arith.ori %450, %c256_i32 : i32
    %c256_i32_115 = arith.constant 256 : i32
    %454 = arith.ori %452, %c256_i32_115 : i32
    %455 = vector.broadcast %453 : i32 to vector<1x8xi32>
    %456 = arith.cmpi slt, %12, %455 : vector<1x8xi32>
    %457 = arith.extui %456 : vector<1x8xi1> to vector<1x8xi32>
    %458 = vector.shape_cast %457 : vector<1x8xi32> to vector<1x1x8xi32>
    %cst_116 = arith.constant dense<0> : vector<1xi32>
    %459 = vector.multi_reduction <add>, %458, %cst_116 [1, 2] : vector<1x1x8xi32> to vector<1xi32>
    %460 = vector.shape_cast %459 : vector<1xi32> to vector<1x1x1xi32>
    %461 = vector.extract %460[0, 0, 0] : i32 from vector<1x1x1xi32>
    %462 = vector.broadcast %454 : i32 to vector<1x8xi32>
    %463 = arith.cmpi slt, %12, %462 : vector<1x8xi32>
    %464 = arith.extui %463 : vector<1x8xi1> to vector<1x8xi32>
    %465 = vector.shape_cast %464 : vector<1x8xi32> to vector<1x1x8xi32>
    %cst_117 = arith.constant dense<0> : vector<1xi32>
    %466 = vector.multi_reduction <add>, %465, %cst_117 [1, 2] : vector<1x1x8xi32> to vector<1xi32>
    %467 = vector.shape_cast %466 : vector<1xi32> to vector<1x1x1xi32>
    %468 = vector.extract %467[0, 0, 0] : i32 from vector<1x1x1xi32>
    %c3_i32_118 = arith.constant 3 : i32
    %469 = arith.cmpi sle, %461, %c3_i32_118 : i32
    %470 = arith.select %469, %453, %450 : i32
    %c4_i32_119 = arith.constant 4 : i32
    %471 = arith.cmpi sle, %468, %c4_i32_119 : i32
    %472 = arith.select %471, %454, %452 : i32
    %c128_i32 = arith.constant 128 : i32
    %473 = arith.ori %470, %c128_i32 : i32
    %c128_i32_120 = arith.constant 128 : i32
    %474 = arith.ori %472, %c128_i32_120 : i32
    %475 = vector.broadcast %473 : i32 to vector<1x8xi32>
    %476 = arith.cmpi slt, %12, %475 : vector<1x8xi32>
    %477 = arith.extui %476 : vector<1x8xi1> to vector<1x8xi32>
    %478 = vector.shape_cast %477 : vector<1x8xi32> to vector<1x1x8xi32>
    %cst_121 = arith.constant dense<0> : vector<1xi32>
    %479 = vector.multi_reduction <add>, %478, %cst_121 [1, 2] : vector<1x1x8xi32> to vector<1xi32>
    %480 = vector.shape_cast %479 : vector<1xi32> to vector<1x1x1xi32>
    %481 = vector.extract %480[0, 0, 0] : i32 from vector<1x1x1xi32>
    %482 = vector.broadcast %474 : i32 to vector<1x8xi32>
    %483 = arith.cmpi slt, %12, %482 : vector<1x8xi32>
    %484 = arith.extui %483 : vector<1x8xi1> to vector<1x8xi32>
    %485 = vector.shape_cast %484 : vector<1x8xi32> to vector<1x1x8xi32>
    %cst_122 = arith.constant dense<0> : vector<1xi32>
    %486 = vector.multi_reduction <add>, %485, %cst_122 [1, 2] : vector<1x1x8xi32> to vector<1xi32>
    %487 = vector.shape_cast %486 : vector<1xi32> to vector<1x1x1xi32>
    %488 = vector.extract %487[0, 0, 0] : i32 from vector<1x1x1xi32>
    %c3_i32_123 = arith.constant 3 : i32
    %489 = arith.cmpi sle, %481, %c3_i32_123 : i32
    %490 = arith.select %489, %473, %470 : i32
    %c4_i32_124 = arith.constant 4 : i32
    %491 = arith.cmpi sle, %488, %c4_i32_124 : i32
    %492 = arith.select %491, %474, %472 : i32
    %c64_i32 = arith.constant 64 : i32
    %493 = arith.ori %490, %c64_i32 : i32
    %c64_i32_125 = arith.constant 64 : i32
    %494 = arith.ori %492, %c64_i32_125 : i32
    %495 = vector.broadcast %493 : i32 to vector<1x8xi32>
    %496 = arith.cmpi slt, %12, %495 : vector<1x8xi32>
    %497 = arith.extui %496 : vector<1x8xi1> to vector<1x8xi32>
    %498 = vector.shape_cast %497 : vector<1x8xi32> to vector<1x1x8xi32>
    %cst_126 = arith.constant dense<0> : vector<1xi32>
    %499 = vector.multi_reduction <add>, %498, %cst_126 [1, 2] : vector<1x1x8xi32> to vector<1xi32>
    %500 = vector.shape_cast %499 : vector<1xi32> to vector<1x1x1xi32>
    %501 = vector.extract %500[0, 0, 0] : i32 from vector<1x1x1xi32>
    %502 = vector.broadcast %494 : i32 to vector<1x8xi32>
    %503 = arith.cmpi slt, %12, %502 : vector<1x8xi32>
    %504 = arith.extui %503 : vector<1x8xi1> to vector<1x8xi32>
    %505 = vector.shape_cast %504 : vector<1x8xi32> to vector<1x1x8xi32>
    %cst_127 = arith.constant dense<0> : vector<1xi32>
    %506 = vector.multi_reduction <add>, %505, %cst_127 [1, 2] : vector<1x1x8xi32> to vector<1xi32>
    %507 = vector.shape_cast %506 : vector<1xi32> to vector<1x1x1xi32>
    %508 = vector.extract %507[0, 0, 0] : i32 from vector<1x1x1xi32>
    %c3_i32_128 = arith.constant 3 : i32
    %509 = arith.cmpi sle, %501, %c3_i32_128 : i32
    %510 = arith.select %509, %493, %490 : i32
    %c4_i32_129 = arith.constant 4 : i32
    %511 = arith.cmpi sle, %508, %c4_i32_129 : i32
    %512 = arith.select %511, %494, %492 : i32
    %c32_i32 = arith.constant 32 : i32
    %513 = arith.ori %510, %c32_i32 : i32
    %c32_i32_130 = arith.constant 32 : i32
    %514 = arith.ori %512, %c32_i32_130 : i32
    %515 = vector.broadcast %513 : i32 to vector<1x8xi32>
    %516 = arith.cmpi slt, %12, %515 : vector<1x8xi32>
    %517 = arith.extui %516 : vector<1x8xi1> to vector<1x8xi32>
    %518 = vector.shape_cast %517 : vector<1x8xi32> to vector<1x1x8xi32>
    %cst_131 = arith.constant dense<0> : vector<1xi32>
    %519 = vector.multi_reduction <add>, %518, %cst_131 [1, 2] : vector<1x1x8xi32> to vector<1xi32>
    %520 = vector.shape_cast %519 : vector<1xi32> to vector<1x1x1xi32>
    %521 = vector.extract %520[0, 0, 0] : i32 from vector<1x1x1xi32>
    %522 = vector.broadcast %514 : i32 to vector<1x8xi32>
    %523 = arith.cmpi slt, %12, %522 : vector<1x8xi32>
    %524 = arith.extui %523 : vector<1x8xi1> to vector<1x8xi32>
    %525 = vector.shape_cast %524 : vector<1x8xi32> to vector<1x1x8xi32>
    %cst_132 = arith.constant dense<0> : vector<1xi32>
    %526 = vector.multi_reduction <add>, %525, %cst_132 [1, 2] : vector<1x1x8xi32> to vector<1xi32>
    %527 = vector.shape_cast %526 : vector<1xi32> to vector<1x1x1xi32>
    %528 = vector.extract %527[0, 0, 0] : i32 from vector<1x1x1xi32>
    %c3_i32_133 = arith.constant 3 : i32
    %529 = arith.cmpi sle, %521, %c3_i32_133 : i32
    %530 = arith.select %529, %513, %510 : i32
    %c4_i32_134 = arith.constant 4 : i32
    %531 = arith.cmpi sle, %528, %c4_i32_134 : i32
    %532 = arith.select %531, %514, %512 : i32
    %c16_i32 = arith.constant 16 : i32
    %533 = arith.ori %530, %c16_i32 : i32
    %c16_i32_135 = arith.constant 16 : i32
    %534 = arith.ori %532, %c16_i32_135 : i32
    %535 = vector.broadcast %533 : i32 to vector<1x8xi32>
    %536 = arith.cmpi slt, %12, %535 : vector<1x8xi32>
    %537 = arith.extui %536 : vector<1x8xi1> to vector<1x8xi32>
    %538 = vector.shape_cast %537 : vector<1x8xi32> to vector<1x1x8xi32>
    %cst_136 = arith.constant dense<0> : vector<1xi32>
    %539 = vector.multi_reduction <add>, %538, %cst_136 [1, 2] : vector<1x1x8xi32> to vector<1xi32>
    %540 = vector.shape_cast %539 : vector<1xi32> to vector<1x1x1xi32>
    %541 = vector.extract %540[0, 0, 0] : i32 from vector<1x1x1xi32>
    %542 = vector.broadcast %534 : i32 to vector<1x8xi32>
    %543 = arith.cmpi slt, %12, %542 : vector<1x8xi32>
    %544 = arith.extui %543 : vector<1x8xi1> to vector<1x8xi32>
    %545 = vector.shape_cast %544 : vector<1x8xi32> to vector<1x1x8xi32>
    %cst_137 = arith.constant dense<0> : vector<1xi32>
    %546 = vector.multi_reduction <add>, %545, %cst_137 [1, 2] : vector<1x1x8xi32> to vector<1xi32>
    %547 = vector.shape_cast %546 : vector<1xi32> to vector<1x1x1xi32>
    %548 = vector.extract %547[0, 0, 0] : i32 from vector<1x1x1xi32>
    %c3_i32_138 = arith.constant 3 : i32
    %549 = arith.cmpi sle, %541, %c3_i32_138 : i32
    %550 = arith.select %549, %533, %530 : i32
    %c4_i32_139 = arith.constant 4 : i32
    %551 = arith.cmpi sle, %548, %c4_i32_139 : i32
    %552 = arith.select %551, %534, %532 : i32
    %c8_i32 = arith.constant 8 : i32
    %553 = arith.ori %550, %c8_i32 : i32
    %c8_i32_140 = arith.constant 8 : i32
    %554 = arith.ori %552, %c8_i32_140 : i32
    %555 = vector.broadcast %553 : i32 to vector<1x8xi32>
    %556 = arith.cmpi slt, %12, %555 : vector<1x8xi32>
    %557 = arith.extui %556 : vector<1x8xi1> to vector<1x8xi32>
    %558 = vector.shape_cast %557 : vector<1x8xi32> to vector<1x1x8xi32>
    %cst_141 = arith.constant dense<0> : vector<1xi32>
    %559 = vector.multi_reduction <add>, %558, %cst_141 [1, 2] : vector<1x1x8xi32> to vector<1xi32>
    %560 = vector.shape_cast %559 : vector<1xi32> to vector<1x1x1xi32>
    %561 = vector.extract %560[0, 0, 0] : i32 from vector<1x1x1xi32>
    %562 = vector.broadcast %554 : i32 to vector<1x8xi32>
    %563 = arith.cmpi slt, %12, %562 : vector<1x8xi32>
    %564 = arith.extui %563 : vector<1x8xi1> to vector<1x8xi32>
    %565 = vector.shape_cast %564 : vector<1x8xi32> to vector<1x1x8xi32>
    %cst_142 = arith.constant dense<0> : vector<1xi32>
    %566 = vector.multi_reduction <add>, %565, %cst_142 [1, 2] : vector<1x1x8xi32> to vector<1xi32>
    %567 = vector.shape_cast %566 : vector<1xi32> to vector<1x1x1xi32>
    %568 = vector.extract %567[0, 0, 0] : i32 from vector<1x1x1xi32>
    %c3_i32_143 = arith.constant 3 : i32
    %569 = arith.cmpi sle, %561, %c3_i32_143 : i32
    %570 = arith.select %569, %553, %550 : i32
    %c4_i32_144 = arith.constant 4 : i32
    %571 = arith.cmpi sle, %568, %c4_i32_144 : i32
    %572 = arith.select %571, %554, %552 : i32
    %c4_i32_145 = arith.constant 4 : i32
    %573 = arith.ori %570, %c4_i32_145 : i32
    %c4_i32_146 = arith.constant 4 : i32
    %574 = arith.ori %572, %c4_i32_146 : i32
    %575 = vector.broadcast %573 : i32 to vector<1x8xi32>
    %576 = arith.cmpi slt, %12, %575 : vector<1x8xi32>
    %577 = arith.extui %576 : vector<1x8xi1> to vector<1x8xi32>
    %578 = vector.shape_cast %577 : vector<1x8xi32> to vector<1x1x8xi32>
    %cst_147 = arith.constant dense<0> : vector<1xi32>
    %579 = vector.multi_reduction <add>, %578, %cst_147 [1, 2] : vector<1x1x8xi32> to vector<1xi32>
    %580 = vector.shape_cast %579 : vector<1xi32> to vector<1x1x1xi32>
    %581 = vector.extract %580[0, 0, 0] : i32 from vector<1x1x1xi32>
    %582 = vector.broadcast %574 : i32 to vector<1x8xi32>
    %583 = arith.cmpi slt, %12, %582 : vector<1x8xi32>
    %584 = arith.extui %583 : vector<1x8xi1> to vector<1x8xi32>
    %585 = vector.shape_cast %584 : vector<1x8xi32> to vector<1x1x8xi32>
    %cst_148 = arith.constant dense<0> : vector<1xi32>
    %586 = vector.multi_reduction <add>, %585, %cst_148 [1, 2] : vector<1x1x8xi32> to vector<1xi32>
    %587 = vector.shape_cast %586 : vector<1xi32> to vector<1x1x1xi32>
    %588 = vector.extract %587[0, 0, 0] : i32 from vector<1x1x1xi32>
    %c3_i32_149 = arith.constant 3 : i32
    %589 = arith.cmpi sle, %581, %c3_i32_149 : i32
    %590 = arith.select %589, %573, %570 : i32
    %c4_i32_150 = arith.constant 4 : i32
    %591 = arith.cmpi sle, %588, %c4_i32_150 : i32
    %592 = arith.select %591, %574, %572 : i32
    %c2_i32 = arith.constant 2 : i32
    %593 = arith.ori %590, %c2_i32 : i32
    %c2_i32_151 = arith.constant 2 : i32
    %594 = arith.ori %592, %c2_i32_151 : i32
    %595 = vector.broadcast %593 : i32 to vector<1x8xi32>
    %596 = arith.cmpi slt, %12, %595 : vector<1x8xi32>
    %597 = arith.extui %596 : vector<1x8xi1> to vector<1x8xi32>
    %598 = vector.shape_cast %597 : vector<1x8xi32> to vector<1x1x8xi32>
    %cst_152 = arith.constant dense<0> : vector<1xi32>
    %599 = vector.multi_reduction <add>, %598, %cst_152 [1, 2] : vector<1x1x8xi32> to vector<1xi32>
    %600 = vector.shape_cast %599 : vector<1xi32> to vector<1x1x1xi32>
    %601 = vector.extract %600[0, 0, 0] : i32 from vector<1x1x1xi32>
    %602 = vector.broadcast %594 : i32 to vector<1x8xi32>
    %603 = arith.cmpi slt, %12, %602 : vector<1x8xi32>
    %604 = arith.extui %603 : vector<1x8xi1> to vector<1x8xi32>
    %605 = vector.shape_cast %604 : vector<1x8xi32> to vector<1x1x8xi32>
    %cst_153 = arith.constant dense<0> : vector<1xi32>
    %606 = vector.multi_reduction <add>, %605, %cst_153 [1, 2] : vector<1x1x8xi32> to vector<1xi32>
    %607 = vector.shape_cast %606 : vector<1xi32> to vector<1x1x1xi32>
    %608 = vector.extract %607[0, 0, 0] : i32 from vector<1x1x1xi32>
    %c3_i32_154 = arith.constant 3 : i32
    %609 = arith.cmpi sle, %601, %c3_i32_154 : i32
    %610 = arith.select %609, %593, %590 : i32
    %c4_i32_155 = arith.constant 4 : i32
    %611 = arith.cmpi sle, %608, %c4_i32_155 : i32
    %612 = arith.select %611, %594, %592 : i32
    %c1_i32 = arith.constant 1 : i32
    %613 = arith.ori %610, %c1_i32 : i32
    %c1_i32_156 = arith.constant 1 : i32
    %614 = arith.ori %612, %c1_i32_156 : i32
    %615 = vector.broadcast %613 : i32 to vector<1x8xi32>
    %616 = arith.cmpi slt, %12, %615 : vector<1x8xi32>
    %617 = arith.extui %616 : vector<1x8xi1> to vector<1x8xi32>
    %618 = vector.shape_cast %617 : vector<1x8xi32> to vector<1x1x8xi32>
    %cst_157 = arith.constant dense<0> : vector<1xi32>
    %619 = vector.multi_reduction <add>, %618, %cst_157 [1, 2] : vector<1x1x8xi32> to vector<1xi32>
    %620 = vector.shape_cast %619 : vector<1xi32> to vector<1x1x1xi32>
    %621 = vector.extract %620[0, 0, 0] : i32 from vector<1x1x1xi32>
    %622 = vector.broadcast %614 : i32 to vector<1x8xi32>
    %623 = arith.cmpi slt, %12, %622 : vector<1x8xi32>
    %624 = arith.extui %623 : vector<1x8xi1> to vector<1x8xi32>
    %625 = vector.shape_cast %624 : vector<1x8xi32> to vector<1x1x8xi32>
    %cst_158 = arith.constant dense<0> : vector<1xi32>
    %626 = vector.multi_reduction <add>, %625, %cst_158 [1, 2] : vector<1x1x8xi32> to vector<1xi32>
    %627 = vector.shape_cast %626 : vector<1xi32> to vector<1x1x1xi32>
    %628 = vector.extract %627[0, 0, 0] : i32 from vector<1x1x1xi32>
    %c3_i32_159 = arith.constant 3 : i32
    %629 = arith.cmpi sle, %621, %c3_i32_159 : i32
    %630 = arith.select %629, %613, %610 : i32
    %c4_i32_160 = arith.constant 4 : i32
    %631 = arith.cmpi sle, %628, %c4_i32_160 : i32
    %632 = arith.select %631, %614, %612 : i32
    %633 = vector.broadcast %630 : i32 to vector<1x8xi32>
    %634 = arith.cmpi sge, %12, %633 : vector<1x8xi32>
    %cst_161 = arith.constant 0x7F800000 : f32
    %635 = vector.broadcast %cst_161 : f32 to vector<1x8xf32>
    %636 = arith.select %634, %11, %635 : vector<1x8xi1>, vector<1x8xf32>
    %637 = vector.shape_cast %636 : vector<1x8xf32> to vector<1x1x8xf32>
    %cst_162 = arith.constant dense<0x7F800000> : vector<1xf32>
    %638 = vector.multi_reduction <minimumf>, %637, %cst_162 [1, 2] : vector<1x1x8xf32> to vector<1xf32>
    %639 = vector.shape_cast %638 : vector<1xf32> to vector<1x1x1xf32>
    %640 = vector.extract %639[0, 0, 0] : f32 from vector<1x1x1xf32>
    %641 = vector.broadcast %632 : i32 to vector<1x8xi32>
    %642 = arith.cmpi sge, %12, %641 : vector<1x8xi32>
    %cst_163 = arith.constant 0x7F800000 : f32
    %643 = vector.broadcast %cst_163 : f32 to vector<1x8xf32>
    %644 = arith.select %642, %11, %643 : vector<1x8xi1>, vector<1x8xf32>
    %645 = vector.shape_cast %644 : vector<1x8xf32> to vector<1x1x8xf32>
    %cst_164 = arith.constant dense<0x7F800000> : vector<1xf32>
    %646 = vector.multi_reduction <minimumf>, %645, %cst_164 [1, 2] : vector<1x1x8xf32> to vector<1xf32>
    %647 = vector.shape_cast %646 : vector<1xf32> to vector<1x1x1xf32>
    %648 = vector.extract %647[0, 0, 0] : f32 from vector<1x1x1xf32>
    %649 = arith.addf %640, %648 : f32
    %cst_165 = arith.constant 5.000000e-01 : f32
    %650 = arith.mulf %649, %cst_165 : f32
    %c0_166 = arith.constant 0 : index
    %c0_167 = arith.constant 0 : index
    %651 = memref.load %arg1[%c0_166, %c0_167] : memref<1x1xf32, #tpu.memory_space<smem>>
    memref.store %650, %arg1[%c0_166, %c0_167] : memref<1x1xf32, #tpu.memory_space<smem>>
    return
  }
}

</mosaic_0001>

<bundles_post_ra>
// kernel: median_final_return_error.1
= control target key start
LH: loop header
LB: loop body
LE: loop exit
PB: predicated region body
PF: predicated region fallthrough
CT: control target
= control target key end

     0   :  { %s2513_s0 = inlined_call_operand.vmem [shape: f32[5,8], index: 0, kind: input, shape index: {}]   ;;  %s2514_s1 = inlined_call_operand.hbm [shape: f32[1,1], index: 1, kind: output, shape index: {}]  }
   0x1   :  { %v11_v0 = vld [vmem:[%s2513_s0 + $0x2] sm:$0x1]  ;;  %v12_v1 = vld [vmem:[%s2513_s0 + $0x3] sm:$0x1]  ;;  %v13_v2 = vld [vmem:[%s2513_s0 + $0x4] sm:$0x1] }
   0x2   :  { %v14_v3 = vsub.f32 %v13_v2, %v12_v1 }
   0x3   :  { %6 = vsyncpa [#allocation3], 0  ;;  %v9_v6 = vld [vmem:[%s2513_s0] sm:$0x1]  ;;  %v10_v7 = vld [vmem:[%s2513_s0 + $0x1] sm:$0x1] }
   0x4   :  { %v15_v4 = vmul.f32 %v14_v3, %v11_v0  ;;  %v17_v10 = vsub.f32 %v9_v6, %v10_v7  ;;  %vm38_vm4 = vcmask 57344   ;;  %v1812_v22 = vmov 0  }
   0x6   :  { %v16_v5 = vadd.f32 %v15_v4, %v12_v1  ;;  %v18_v16 = vmul.f32 %v17_v10, %v14_v3 }
   0x8   :  { %1796 = vrcp.f32 %v16_v5  ;;  %v30_v11 = vand.u32 2147483648, %v16_v5  ;;  %vm24_vm0 = vweird.f32 %v16_v5  ;;  %v28_v13 = vand.u32 2147483647, %v16_v5 }
   0xa   :  { %v31_v15 = vor.u32 1.1754944e-38, %v30_v11  ;;  %vm29_vm3 = vcmp.eq.f32.partialorder %v28_v13, 8.507059e+37 }
   0xe   :  { %v1797_v8 = vpop.eup %1796 }
   0xf   :  { %v20_v9 = vmul.f32 %v1797_v8, %v16_v5  ;;  %vm25_vm1 = vweird.f32 %v1797_v8 }
  0x10   :  { %vm26_vm2 = vmor %vm24_vm0, %vm25_vm1 }
  0x11   :  { %v21_v12 = vsub.f32 1.0, %v20_v9 }
  0x13   :  { %v22_v14 = vmul.f32 %v1797_v8, %v21_v12 }
  0x15   :  { %v23_v17 = vadd.f32 %v1797_v8, %v22_v14 }
  0x17   :  { %v27_v18 = vsel %vm26_vm2, %v1797_v8, %v23_v17 }
  0x18   :  { %v32_v19 = vsel %vm29_vm3, %v31_v15, %v27_v18 }
  0x19   :  { %v33_v20 = vmul.f32 %v32_v19, %v18_v16 }
  0x1b   :  { %v1839_v21 = vand.u32 2147483647, %v33_v20 }
  0x1d   :  { %vm36_vm5 = vcmp.lt.s32.totalorder %v1839_v21, 1073741824 }
  0x1e   :  { %v37_v23 = vsel %vm36_vm5, 1, %v1812_v22 }
  0x1f   :  { %v39_v24 = vsel %vm38_vm4, %v37_v23, 0 }
  0x20   :  { %v41_v25 = vshrl.u32 %v39_v24, 16  ;;  %v40_v27 = vand.u32 65535, %v39_v24 }
  0x22   :  { %v43_v26 = vcvt.s32.f32 %v41_v25  ;;  %v42_v28 = vcvt.s32.f32 %v40_v27 }
  0x24   :  { %46 = vadd.xlane.f32.xlu0 %v43_v26 }
  0x2c   :  { %44 = vadd.xlane.f32.xlu0 %v42_v28 }
  0x97   :  { %v47_v29 = vpop.xlane.xlu0 %46 }
  0x98   :  { %v49_v30 = vcvt.f32.s32 %v47_v29 }
  0x9a   :  { %v50_v32 = vshll.u32 %v49_v30, 16 }
  0x9f   :  { %v45_v31 = vpop.xlane.xlu0 %44 }
  0xa0   :  { %v48_v33 = vcvt.f32.s32 %v45_v31 }
  0xa2   :  { %v51_v34 = vadd.s32 %v50_v32, %v48_v33 }
  0xa4   :  { %v52_v35 = vrot.slane %v51_v34, 4 }
  0xa6   :  { %v53_v36 = vadd.s32 %v52_v35, %v51_v34 }
  0xa8   :  { %v54_v37 = vrot.slane %v53_v36, 2 }
  0xaa   :  { %v55_v38 = vadd.s32 %v54_v37, %v53_v36 }
  0xac   :  { %v56_v39 = vrot.slane %v55_v38, 1 }
  0xae   :  { %v57_v40 = vadd.s32 %v56_v39, %v55_v38 }
  0xb0   :  { %1668 = vpush %v57_v40 }
  0xe1   :  { %s1669_s0 = spop %1668 }
  0xe2   :  { %p59_p0 = scmp.le.s32.totalorder %s1669_s0, 3  ;;  %p61_p1 = scmp.le.s32.totalorder %s1669_s0, 4 }
  0xe4   :  { %s1844_s16 = scalar_select %p59_p0, 1073741824, 0 }
  0xe5   :  { %s1846_s17 = scalar_select %p61_p1, 1073741824, 0 }
  0xe6   :  { %s63_s18 = sor.u32 536870912, %s1844_s16 }
  0xe7   :  { %s64_s19 = sor.u32 536870912, %s1846_s17  ;;  %v65_v41 = vstv %s63_s18 }
  0xe8   :  { %v88_v42 = vstv %s64_s19  ;;  %vm66_vm6 = vcmp.lt.s32.totalorder %v1839_v21, %v65_v41 }
  0xe9   :  { %v67_v43 = vsel %vm66_vm6, 1, %v1812_v22  ;;  %vm89_vm7 = vcmp.lt.s32.totalorder %v1839_v21, %v88_v42 }
  0xea   :  { %v68_v44 = vsel %vm38_vm4, %v67_v43, 0  ;;  %v90_v47 = vsel %vm89_vm7, 1, %v1812_v22 }
  0xeb   :  { %v70_v45 = vshrl.u32 %v68_v44, 16  ;;  %v69_v46 = vand.u32 65535, %v68_v44  ;;  %v91_v50 = vsel %vm38_vm4, %v90_v47, 0 }
  0xec   :  { %v93_v51 = vshrl.u32 %v91_v50, 16  ;;  %v92_v52 = vand.u32 65535, %v91_v50 }
  0xed   :  { %v72_v48 = vcvt.s32.f32 %v70_v45  ;;  %v71_v49 = vcvt.s32.f32 %v69_v46 }
  0xee   :  { %v95_v53 = vcvt.s32.f32 %v93_v51  ;;  %v94_v54 = vcvt.s32.f32 %v92_v52 }
  0xef   :  { %75 = vadd.xlane.f32.xlu1 %v72_v48  ;;  %73 = vadd.xlane.f32.xlu2 %v71_v49 }
  0xf7   :  { %98 = vadd.xlane.f32.xlu1 %v95_v53  ;;  %96 = vadd.xlane.f32.xlu2 %v94_v54 }
 0x162   :  { %v76_v55 = vpop.xlane.xlu1 %75  ;;  %v74_v56 = vpop.xlane.xlu2 %73 }
 0x163   :  { %v78_v57 = vcvt.f32.s32 %v76_v55  ;;  %v77_v59 = vcvt.f32.s32 %v74_v56 }
 0x165   :  { %v79_v58 = vshll.u32 %v78_v57, 16 }
 0x167   :  { %v80_v60 = vadd.s32 %v79_v58, %v77_v59 }
 0x169   :  { %v81_v61 = vrot.slane %v80_v60, 4 }
 0x16a   :  { %v99_v62 = vpop.xlane.xlu1 %98  ;;  %v97_v63 = vpop.xlane.xlu2 %96 }
 0x16b   :  { %v82_v0 = vadd.s32 %v81_v61, %v80_v60  ;;  %v101_v1 = vcvt.f32.s32 %v99_v62  ;;  %v100_v3 = vcvt.f32.s32 %v97_v63 }
 0x16d   :  { %v102_v2 = vshll.u32 %v101_v1, 16  ;;  %v83_v4 = vrot.slane %v82_v0, 2 }
 0x16f   :  { %v103_v5 = vadd.s32 %v102_v2, %v100_v3  ;;  %v84_v6 = vadd.s32 %v83_v4, %v82_v0 }
 0x171   :  { %v104_v7 = vrot.slane %v103_v5, 4  ;;  %v85_v8 = vrot.slane %v84_v6, 1 }
 0x173   :  { %v105_v9 = vadd.s32 %v104_v7, %v103_v5  ;;  %v86_v10 = vadd.s32 %v85_v8, %v84_v6 }
 0x175   :  { %1670 = vpush %v86_v10  ;;  %v106_v11 = vrot.slane %v105_v9, 2 }
 0x177   :  { %v107_v12 = vadd.s32 %v106_v11, %v105_v9 }
 0x179   :  { %v108_v13 = vrot.slane %v107_v12, 1 }
 0x17b   :  { %v109_v14 = vadd.s32 %v108_v13, %v107_v12 }
 0x17d   :  { %1672 = vpush %v109_v14 }
 0x1a6   :  { %s1671_s20 = spop %1670 }
 0x1a7   :  { %p111_p2 = scmp.le.s32.totalorder %s1671_s20, 3 }
 0x1a9   :  { %s2516_s18 = smov (!%p111_p2, %s63_s18), %s1844_s16 }
 0x1aa   :  { %s115_s21 = sor.u32 268435456, %s2516_s18 }
 0x1ab   :  { %v117_v15 = vstv %s115_s21 }
 0x1ac   :  { %vm118_vm8 = vcmp.lt.s32.totalorder %v1839_v21, %v117_v15 }
 0x1ad   :  { %v119_v16 = vsel %vm118_vm8, 1, %v1812_v22 }
 0x1ae   :  { %s1673_s22 = spop %1672  ;;  %v120_v17 = vsel %vm38_vm4, %v119_v16, 0 }
 0x1af   :  { %p113_p3 = scmp.le.s32.totalorder %s1673_s22, 4  ;;  %v122_v18 = vshrl.u32 %v120_v17, 16  ;;  %v121_v19 = vand.u32 65535, %v120_v17 }
 0x1b1   :  { %s2518_s19 = smov (!%p113_p3, %s64_s19), %s1846_s17  ;;  %v124_v20 = vcvt.s32.f32 %v122_v18  ;;  %v123_v23 = vcvt.s32.f32 %v121_v19 }
 0x1b2   :  { %s116_s23 = sor.u32 268435456, %s2518_s19 }
 0x1b3   :  { %127 = vadd.xlane.f32.xlu0 %v124_v20  ;;  %125 = vadd.xlane.f32.xlu2 %v123_v23  ;;  %v140_v24 = vstv %s116_s23 }
 0x1b4   :  { %vm141_vm9 = vcmp.lt.s32.totalorder %v1839_v21, %v140_v24 }
 0x1b5   :  { %v142_v25 = vsel %vm141_vm9, 1, %v1812_v22 }
 0x1b6   :  { %v143_v26 = vsel %vm38_vm4, %v142_v25, 0 }
 0x1b7   :  { %v145_v27 = vshrl.u32 %v143_v26, 16  ;;  %v144_v28 = vand.u32 65535, %v143_v26 }
 0x1b9   :  { %v147_v29 = vcvt.s32.f32 %v145_v27  ;;  %v146_v30 = vcvt.s32.f32 %v144_v28 }
 0x1bb   :  { %150 = vadd.xlane.f32.xlu1 %v147_v29  ;;  %148 = vadd.xlane.f32.xlu0 %v146_v30 }
 0x226   :  { %v128_v31 = vpop.xlane.xlu0 %127  ;;  %v126_v32 = vpop.xlane.xlu2 %125 }
 0x227   :  { %v130_v33 = vcvt.f32.s32 %v128_v31  ;;  %v129_v35 = vcvt.f32.s32 %v126_v32 }
 0x229   :  { %v131_v34 = vshll.u32 %v130_v33, 16 }
 0x22b   :  { %v132_v36 = vadd.s32 %v131_v34, %v129_v35 }
 0x22d   :  { %v133_v37 = vrot.slane %v132_v36, 4 }
 0x22e   :  { %v151_v38 = vpop.xlane.xlu1 %150  ;;  %v149_v39 = vpop.xlane.xlu0 %148 }
 0x22f   :  { %v134_v40 = vadd.s32 %v133_v37, %v132_v36  ;;  %v153_v41 = vcvt.f32.s32 %v151_v38  ;;  %v152_v43 = vcvt.f32.s32 %v149_v39 }
 0x231   :  { %v154_v42 = vshll.u32 %v153_v41, 16  ;;  %v135_v44 = vrot.slane %v134_v40, 2 }
 0x233   :  { %v155_v45 = vadd.s32 %v154_v42, %v152_v43  ;;  %v136_v46 = vadd.s32 %v135_v44, %v134_v40 }
 0x235   :  { %v156_v47 = vrot.slane %v155_v45, 4  ;;  %v137_v48 = vrot.slane %v136_v46, 1 }
 0x237   :  { %v157_v49 = vadd.s32 %v156_v47, %v155_v45  ;;  %v138_v50 = vadd.s32 %v137_v48, %v136_v46 }
 0x239   :  { %1674 = vpush %v138_v50  ;;  %v158_v51 = vrot.slane %v157_v49, 2 }
 0x23b   :  { %v159_v52 = vadd.s32 %v158_v51, %v157_v49 }
 0x23d   :  { %v160_v53 = vrot.slane %v159_v52, 1 }
 0x23f   :  { %v161_v54 = vadd.s32 %v160_v53, %v159_v52 }
 0x241   :  { %1676 = vpush %v161_v54 }
 0x26a   :  { %s1675_s24 = spop %1674 }
 0x26b   :  { %p163_p4 = scmp.le.s32.totalorder %s1675_s24, 3 }
 0x26d   :  { %s2520_s21 = smov (!%p163_p4, %s115_s21), %s2516_s18 }
 0x26e   :  { %s167_s25 = sor.u32 134217728, %s2520_s21 }
 0x26f   :  { %v169_v55 = vstv %s167_s25 }
 0x270   :  { %vm170_vm10 = vcmp.lt.s32.totalorder %v1839_v21, %v169_v55 }
 0x271   :  { %v171_v56 = vsel %vm170_vm10, 1, %v1812_v22 }
 0x272   :  { %s1677_s26 = spop %1676  ;;  %v172_v57 = vsel %vm38_vm4, %v171_v56, 0 }
 0x273   :  { %p165_p5 = scmp.le.s32.totalorder %s1677_s26, 4  ;;  %v174_v58 = vshrl.u32 %v172_v57, 16  ;;  %v173_v59 = vand.u32 65535, %v172_v57 }
 0x275   :  { %s2522_s23 = smov (!%p165_p5, %s116_s23), %s2518_s19  ;;  %v176_v60 = vcvt.s32.f32 %v174_v58  ;;  %v175_v61 = vcvt.s32.f32 %v173_v59 }
 0x276   :  { %s168_s27 = sor.u32 134217728, %s2522_s23 }
 0x277   :  { %179 = vadd.xlane.f32.xlu1 %v176_v60  ;;  %177 = vadd.xlane.f32.xlu0 %v175_v61  ;;  %v192_v62 = vstv %s168_s27 }
 0x278   :  { %vm193_vm11 = vcmp.lt.s32.totalorder %v1839_v21, %v192_v62 }
 0x279   :  { %v194_v63 = vsel %vm193_vm11, 1, %v1812_v22 }
 0x27a   :  { %v195_v0 = vsel %vm38_vm4, %v194_v63, 0 }
 0x27b   :  { %v197_v1 = vshrl.u32 %v195_v0, 16  ;;  %v196_v2 = vand.u32 65535, %v195_v0 }
 0x27d   :  { %v199_v3 = vcvt.s32.f32 %v197_v1  ;;  %v198_v4 = vcvt.s32.f32 %v196_v2 }
 0x27f   :  { %202 = vadd.xlane.f32.xlu2 %v199_v3  ;;  %200 = vadd.xlane.f32.xlu1 %v198_v4 }
 0x2ea   :  { %v180_v5 = vpop.xlane.xlu1 %179  ;;  %v178_v6 = vpop.xlane.xlu0 %177 }
 0x2eb   :  { %v182_v7 = vcvt.f32.s32 %v180_v5  ;;  %v181_v9 = vcvt.f32.s32 %v178_v6 }
 0x2ed   :  { %v183_v8 = vshll.u32 %v182_v7, 16 }
 0x2ef   :  { %v184_v10 = vadd.s32 %v183_v8, %v181_v9 }
 0x2f1   :  { %v185_v11 = vrot.slane %v184_v10, 4 }
 0x2f2   :  { %v203_v12 = vpop.xlane.xlu2 %202  ;;  %v201_v13 = vpop.xlane.xlu1 %200 }
 0x2f3   :  { %v186_v14 = vadd.s32 %v185_v11, %v184_v10  ;;  %v205_v15 = vcvt.f32.s32 %v203_v12  ;;  %v204_v17 = vcvt.f32.s32 %v201_v13 }
 0x2f5   :  { %v206_v16 = vshll.u32 %v205_v15, 16  ;;  %v187_v18 = vrot.slane %v186_v14, 2 }
 0x2f7   :  { %v207_v19 = vadd.s32 %v206_v16, %v204_v17  ;;  %v188_v20 = vadd.s32 %v187_v18, %v186_v14 }
 0x2f9   :  { %v208_v23 = vrot.slane %v207_v19, 4  ;;  %v189_v24 = vrot.slane %v188_v20, 1 }
 0x2fb   :  { %v209_v25 = vadd.s32 %v208_v23, %v207_v19  ;;  %v190_v26 = vadd.s32 %v189_v24, %v188_v20 }
 0x2fd   :  { %1678 = vpush %v190_v26  ;;  %v210_v27 = vrot.slane %v209_v25, 2 }
 0x2ff   :  { %v211_v28 = vadd.s32 %v210_v27, %v209_v25 }
 0x301   :  { %v212_v29 = vrot.slane %v211_v28, 1 }
 0x303   :  { %v213_v30 = vadd.s32 %v212_v29, %v211_v28 }
 0x305   :  { %1680 = vpush %v213_v30 }
 0x32e   :  { %s1679_s28 = spop %1678 }
 0x32f   :  { %p215_p6 = scmp.le.s32.totalorder %s1679_s28, 3 }
 0x331   :  { %s2524_s25 = smov (!%p215_p6, %s167_s25), %s2520_s21 }
 0x332   :  { %s219_s29 = sor.u32 67108864, %s2524_s25 }
 0x333   :  { %v221_v31 = vstv %s219_s29 }
 0x334   :  { %vm222_vm12 = vcmp.lt.s32.totalorder %v1839_v21, %v221_v31 }
 0x335   :  { %v223_v32 = vsel %vm222_vm12, 1, %v1812_v22 }
 0x336   :  { %s1681_s30 = spop %1680  ;;  %v224_v33 = vsel %vm38_vm4, %v223_v32, 0 }
 0x337   :  { %p217_p7 = scmp.le.s32.totalorder %s1681_s30, 4  ;;  %v226_v34 = vshrl.u32 %v224_v33, 16  ;;  %v225_v35 = vand.u32 65535, %v224_v33 }
 0x339   :  { %s2526_s27 = smov (!%p217_p7, %s168_s27), %s2522_s23  ;;  %v228_v36 = vcvt.s32.f32 %v226_v34  ;;  %v227_v37 = vcvt.s32.f32 %v225_v35 }
 0x33a   :  { %s220_s2 = sor.u32 67108864, %s2526_s27 }
 0x33b   :  { %231 = vadd.xlane.f32.xlu2 %v228_v36  ;;  %229 = vadd.xlane.f32.xlu1 %v227_v37  ;;  %v244_v38 = vstv %s220_s2 }
 0x33c   :  { %vm245_vm13 = vcmp.lt.s32.totalorder %v1839_v21, %v244_v38 }
 0x33d   :  { %v246_v39 = vsel %vm245_vm13, 1, %v1812_v22 }
 0x33e   :  { %v247_v40 = vsel %vm38_vm4, %v246_v39, 0 }
 0x33f   :  { %v249_v41 = vshrl.u32 %v247_v40, 16  ;;  %v248_v42 = vand.u32 65535, %v247_v40 }
 0x341   :  { %v251_v43 = vcvt.s32.f32 %v249_v41  ;;  %v250_v44 = vcvt.s32.f32 %v248_v42 }
 0x343   :  { %254 = vadd.xlane.f32.xlu0 %v251_v43  ;;  %252 = vadd.xlane.f32.xlu2 %v250_v44 }
 0x3ae   :  { %v232_v45 = vpop.xlane.xlu2 %231  ;;  %v230_v46 = vpop.xlane.xlu1 %229 }
 0x3af   :  { %v234_v47 = vcvt.f32.s32 %v232_v45  ;;  %v233_v49 = vcvt.f32.s32 %v230_v46 }
 0x3b1   :  { %v235_v48 = vshll.u32 %v234_v47, 16 }
 0x3b3   :  { %v236_v50 = vadd.s32 %v235_v48, %v233_v49 }
 0x3b5   :  { %v237_v51 = vrot.slane %v236_v50, 4 }
 0x3b6   :  { %v255_v52 = vpop.xlane.xlu0 %254  ;;  %v253_v53 = vpop.xlane.xlu2 %252 }
 0x3b7   :  { %v238_v54 = vadd.s32 %v237_v51, %v236_v50  ;;  %v257_v55 = vcvt.f32.s32 %v255_v52  ;;  %v256_v57 = vcvt.f32.s32 %v253_v53 }
 0x3b9   :  { %v258_v56 = vshll.u32 %v257_v55, 16  ;;  %v239_v58 = vrot.slane %v238_v54, 2 }
 0x3bb   :  { %v259_v59 = vadd.s32 %v258_v56, %v256_v57  ;;  %v240_v60 = vadd.s32 %v239_v58, %v238_v54 }
 0x3bd   :  { %v260_v61 = vrot.slane %v259_v59, 4  ;;  %v241_v62 = vrot.slane %v240_v60, 1 }
 0x3bf   :  { %v261_v63 = vadd.s32 %v260_v61, %v259_v59  ;;  %v242_v0 = vadd.s32 %v241_v62, %v240_v60 }
 0x3c1   :  { %1682 = vpush %v242_v0  ;;  %v262_v1 = vrot.slane %v261_v63, 2 }
 0x3c3   :  { %v263_v2 = vadd.s32 %v262_v1, %v261_v63 }
 0x3c5   :  { %v264_v3 = vrot.slane %v263_v2, 1 }
 0x3c7   :  { %v265_v4 = vadd.s32 %v264_v3, %v263_v2 }
 0x3c9   :  { %1684 = vpush %v265_v4 }
 0x3f2   :  { %s1683_s3 = spop %1682 }
 0x3f3   :  { %p267_p8 = scmp.le.s32.totalorder %s1683_s3, 3 }
 0x3f5   :  { %s2528_s29 = smov (!%p267_p8, %s219_s29), %s2524_s25 }
 0x3f6   :  { %s271_s4 = sor.u32 33554432, %s2528_s29 }
 0x3f7   :  { %v273_v5 = vstv %s271_s4 }
 0x3f8   :  { %vm274_vm14 = vcmp.lt.s32.totalorder %v1839_v21, %v273_v5 }
 0x3f9   :  { %v275_v6 = vsel %vm274_vm14, 1, %v1812_v22 }
 0x3fa   :  { %s1685_s5 = spop %1684  ;;  %v276_v7 = vsel %vm38_vm4, %v275_v6, 0 }
 0x3fb   :  { %p269_p9 = scmp.le.s32.totalorder %s1685_s5, 4  ;;  %v278_v8 = vshrl.u32 %v276_v7, 16  ;;  %v277_v9 = vand.u32 65535, %v276_v7 }
 0x3fd   :  { %s2530_s2 = smov (!%p269_p9, %s220_s2), %s2526_s27  ;;  %v280_v10 = vcvt.s32.f32 %v278_v8  ;;  %v279_v11 = vcvt.s32.f32 %v277_v9 }
 0x3fe   :  { %s272_s6 = sor.u32 33554432, %s2530_s2 }
 0x3ff   :  { %283 = vadd.xlane.f32.xlu0 %v280_v10  ;;  %281 = vadd.xlane.f32.xlu2 %v279_v11  ;;  %v296_v12 = vstv %s272_s6 }
 0x400   :  { %vm297_vm15 = vcmp.lt.s32.totalorder %v1839_v21, %v296_v12 }
 0x401   :  { %v298_v13 = vsel %vm297_vm15, 1, %v1812_v22 }
 0x402   :  { %v299_v14 = vsel %vm38_vm4, %v298_v13, 0 }
 0x403   :  { %v301_v15 = vshrl.u32 %v299_v14, 16  ;;  %v300_v16 = vand.u32 65535, %v299_v14 }
 0x405   :  { %v303_v17 = vcvt.s32.f32 %v301_v15  ;;  %v302_v18 = vcvt.s32.f32 %v300_v16 }
 0x407   :  { %306 = vadd.xlane.f32.xlu1 %v303_v17  ;;  %304 = vadd.xlane.f32.xlu0 %v302_v18 }
 0x472   :  { %v284_v19 = vpop.xlane.xlu0 %283  ;;  %v282_v20 = vpop.xlane.xlu2 %281 }
 0x473   :  { %v286_v23 = vcvt.f32.s32 %v284_v19  ;;  %v285_v25 = vcvt.f32.s32 %v282_v20 }
 0x475   :  { %v287_v24 = vshll.u32 %v286_v23, 16 }
 0x477   :  { %v288_v26 = vadd.s32 %v287_v24, %v285_v25 }
 0x479   :  { %v289_v27 = vrot.slane %v288_v26, 4 }
 0x47a   :  { %v307_v28 = vpop.xlane.xlu1 %306  ;;  %v305_v29 = vpop.xlane.xlu0 %304 }
 0x47b   :  { %v290_v30 = vadd.s32 %v289_v27, %v288_v26  ;;  %v309_v31 = vcvt.f32.s32 %v307_v28  ;;  %v308_v33 = vcvt.f32.s32 %v305_v29 }
 0x47d   :  { %v310_v32 = vshll.u32 %v309_v31, 16  ;;  %v291_v34 = vrot.slane %v290_v30, 2 }
 0x47f   :  { %v311_v35 = vadd.s32 %v310_v32, %v308_v33  ;;  %v292_v36 = vadd.s32 %v291_v34, %v290_v30 }
 0x481   :  { %v312_v37 = vrot.slane %v311_v35, 4  ;;  %v293_v38 = vrot.slane %v292_v36, 1 }
 0x483   :  { %v313_v39 = vadd.s32 %v312_v37, %v311_v35  ;;  %v294_v40 = vadd.s32 %v293_v38, %v292_v36 }
 0x485   :  { %1686 = vpush %v294_v40  ;;  %v314_v41 = vrot.slane %v313_v39, 2 }
 0x487   :  { %v315_v42 = vadd.s32 %v314_v41, %v313_v39 }
 0x489   :  { %v316_v43 = vrot.slane %v315_v42, 1 }
 0x48b   :  { %v317_v44 = vadd.s32 %v316_v43, %v315_v42 }
 0x48d   :  { %1688 = vpush %v317_v44 }
 0x4b6   :  { %s1687_s7 = spop %1686 }
 0x4b7   :  { %p319_p10 = scmp.le.s32.totalorder %s1687_s7, 3 }
 0x4b9   :  { %s2532_s4 = smov (!%p319_p10, %s271_s4), %s2528_s29 }
 0x4ba   :  { %s323_s8 = sor.u32 16777216, %s2532_s4 }
 0x4bb   :  { %v325_v45 = vstv %s323_s8 }
 0x4bc   :  { %vm326_vm0 = vcmp.lt.s32.totalorder %v1839_v21, %v325_v45 }
 0x4bd   :  { %v327_v46 = vsel %vm326_vm0, 1, %v1812_v22 }
 0x4be   :  { %s1689_s9 = spop %1688  ;;  %v328_v47 = vsel %vm38_vm4, %v327_v46, 0 }
 0x4bf   :  { %p321_p11 = scmp.le.s32.totalorder %s1689_s9, 4  ;;  %v330_v48 = vshrl.u32 %v328_v47, 16  ;;  %v329_v49 = vand.u32 65535, %v328_v47 }
 0x4c1   :  { %s2534_s6 = smov (!%p321_p11, %s272_s6), %s2530_s2  ;;  %v332_v50 = vcvt.s32.f32 %v330_v48  ;;  %v331_v51 = vcvt.s32.f32 %v329_v49 }
 0x4c2   :  { %s324_s10 = sor.u32 16777216, %s2534_s6 }
 0x4c3   :  { %335 = vadd.xlane.f32.xlu1 %v332_v50  ;;  %333 = vadd.xlane.f32.xlu0 %v331_v51  ;;  %v348_v52 = vstv %s324_s10 }
 0x4c4   :  { %vm349_vm1 = vcmp.lt.s32.totalorder %v1839_v21, %v348_v52 }
 0x4c5   :  { %v350_v53 = vsel %vm349_vm1, 1, %v1812_v22 }
 0x4c6   :  { %v351_v54 = vsel %vm38_vm4, %v350_v53, 0 }
 0x4c7   :  { %v353_v55 = vshrl.u32 %v351_v54, 16  ;;  %v352_v56 = vand.u32 65535, %v351_v54 }
 0x4c9   :  { %v355_v57 = vcvt.s32.f32 %v353_v55  ;;  %v354_v58 = vcvt.s32.f32 %v352_v56 }
 0x4cb   :  { %358 = vadd.xlane.f32.xlu2 %v355_v57  ;;  %356 = vadd.xlane.f32.xlu1 %v354_v58 }
 0x536   :  { %v336_v59 = vpop.xlane.xlu1 %335  ;;  %v334_v60 = vpop.xlane.xlu0 %333 }
 0x537   :  { %v338_v61 = vcvt.f32.s32 %v336_v59  ;;  %v337_v63 = vcvt.f32.s32 %v334_v60 }
 0x539   :  { %v339_v62 = vshll.u32 %v338_v61, 16 }
 0x53b   :  { %v340_v0 = vadd.s32 %v339_v62, %v337_v63 }
 0x53d   :  { %v341_v1 = vrot.slane %v340_v0, 4 }
 0x53e   :  { %v359_v2 = vpop.xlane.xlu2 %358  ;;  %v357_v3 = vpop.xlane.xlu1 %356 }
 0x53f   :  { %v342_v4 = vadd.s32 %v341_v1, %v340_v0  ;;  %v361_v5 = vcvt.f32.s32 %v359_v2  ;;  %v360_v7 = vcvt.f32.s32 %v357_v3 }
 0x541   :  { %v362_v6 = vshll.u32 %v361_v5, 16  ;;  %v343_v8 = vrot.slane %v342_v4, 2 }
 0x543   :  { %v363_v9 = vadd.s32 %v362_v6, %v360_v7  ;;  %v344_v10 = vadd.s32 %v343_v8, %v342_v4 }
 0x545   :  { %v364_v11 = vrot.slane %v363_v9, 4  ;;  %v345_v12 = vrot.slane %v344_v10, 1 }
 0x547   :  { %v365_v13 = vadd.s32 %v364_v11, %v363_v9  ;;  %v346_v14 = vadd.s32 %v345_v12, %v344_v10 }
 0x549   :  { %1690 = vpush %v346_v14  ;;  %v366_v15 = vrot.slane %v365_v13, 2 }
 0x54b   :  { %v367_v16 = vadd.s32 %v366_v15, %v365_v13 }
 0x54d   :  { %v368_v17 = vrot.slane %v367_v16, 1 }
 0x54f   :  { %v369_v18 = vadd.s32 %v368_v17, %v367_v16 }
 0x551   :  { %1692 = vpush %v369_v18 }
 0x57a   :  { %s1691_s11 = spop %1690 }
 0x57b   :  { %p371_p12 = scmp.le.s32.totalorder %s1691_s11, 3 }
 0x57d   :  { %s2536_s8 = smov (!%p371_p12, %s323_s8), %s2532_s4 }
 0x57e   :  { %s375_s12 = sor.u32 8388608, %s2536_s8 }
 0x57f   :  { %v377_v19 = vstv %s375_s12 }
 0x580   :  { %vm378_vm2 = vcmp.lt.s32.totalorder %v1839_v21, %v377_v19 }
 0x581   :  { %v379_v20 = vsel %vm378_vm2, 1, %v1812_v22 }
 0x582   :  { %s1693_s13 = spop %1692  ;;  %v380_v23 = vsel %vm38_vm4, %v379_v20, 0 }
 0x583   :  { %p373_p13 = scmp.le.s32.totalorder %s1693_s13, 4  ;;  %v382_v24 = vshrl.u32 %v380_v23, 16  ;;  %v381_v25 = vand.u32 65535, %v380_v23 }
 0x585   :  { %s2538_s10 = smov (!%p373_p13, %s324_s10), %s2534_s6  ;;  %v384_v26 = vcvt.s32.f32 %v382_v24  ;;  %v383_v27 = vcvt.s32.f32 %v381_v25 }
 0x586   :  { %s376_s14 = sor.u32 8388608, %s2538_s10 }
 0x587   :  { %387 = vadd.xlane.f32.xlu2 %v384_v26  ;;  %385 = vadd.xlane.f32.xlu1 %v383_v27  ;;  %v400_v28 = vstv %s376_s14 }
 0x588   :  { %vm401_vm3 = vcmp.lt.s32.totalorder %v1839_v21, %v400_v28 }
 0x589   :  { %v402_v29 = vsel %vm401_vm3, 1, %v1812_v22 }
 0x58a   :  { %v403_v30 = vsel %vm38_vm4, %v402_v29, 0 }
 0x58b   :  { %v405_v31 = vshrl.u32 %v403_v30, 16  ;;  %v404_v32 = vand.u32 65535, %v403_v30 }
 0x58d   :  { %v407_v33 = vcvt.s32.f32 %v405_v31  ;;  %v406_v34 = vcvt.s32.f32 %v404_v32 }
 0x58f   :  { %410 = vadd.xlane.f32.xlu0 %v407_v33  ;;  %408 = vadd.xlane.f32.xlu2 %v406_v34 }
 0x5fa   :  { %v388_v35 = vpop.xlane.xlu2 %387  ;;  %v386_v36 = vpop.xlane.xlu1 %385 }
 0x5fb   :  { %v390_v37 = vcvt.f32.s32 %v388_v35  ;;  %v389_v39 = vcvt.f32.s32 %v386_v36 }
 0x5fd   :  { %v391_v38 = vshll.u32 %v390_v37, 16 }
 0x5ff   :  { %v392_v40 = vadd.s32 %v391_v38, %v389_v39 }
 0x601   :  { %v393_v41 = vrot.slane %v392_v40, 4 }
 0x602   :  { %v411_v42 = vpop.xlane.xlu0 %410  ;;  %v409_v43 = vpop.xlane.xlu2 %408 }
 0x603   :  { %v394_v44 = vadd.s32 %v393_v41, %v392_v40  ;;  %v413_v45 = vcvt.f32.s32 %v411_v42  ;;  %v412_v47 = vcvt.f32.s32 %v409_v43 }
 0x605   :  { %v414_v46 = vshll.u32 %v413_v45, 16  ;;  %v395_v48 = vrot.slane %v394_v44, 2 }
 0x607   :  { %v415_v49 = vadd.s32 %v414_v46, %v412_v47  ;;  %v396_v50 = vadd.s32 %v395_v48, %v394_v44 }
 0x609   :  { %v416_v51 = vrot.slane %v415_v49, 4  ;;  %v397_v52 = vrot.slane %v396_v50, 1 }
 0x60b   :  { %v417_v53 = vadd.s32 %v416_v51, %v415_v49  ;;  %v398_v54 = vadd.s32 %v397_v52, %v396_v50 }
 0x60d   :  { %1694 = vpush %v398_v54  ;;  %v418_v55 = vrot.slane %v417_v53, 2 }
 0x60f   :  { %v419_v56 = vadd.s32 %v418_v55, %v417_v53 }
 0x611   :  { %v420_v57 = vrot.slane %v419_v56, 1 }
 0x613   :  { %v421_v58 = vadd.s32 %v420_v57, %v419_v56 }
 0x615   :  { %1696 = vpush %v421_v58 }
 0x63e   :  { %s1695_s15 = spop %1694 }
 0x63f   :  { %p423_p0 = scmp.le.s32.totalorder %s1695_s15, 3 }
 0x641   :  { %s2540_s12 = smov (!%p423_p0, %s375_s12), %s2536_s8 }
 0x642   :  { %s427_s0 = sor.u32 4194304, %s2540_s12 }
 0x643   :  { %v429_v59 = vstv %s427_s0 }
 0x644   :  { %vm430_vm5 = vcmp.lt.s32.totalorder %v1839_v21, %v429_v59 }
 0x645   :  { %v431_v60 = vsel %vm430_vm5, 1, %v1812_v22 }
 0x646   :  { %s1697_s16 = spop %1696  ;;  %v432_v61 = vsel %vm38_vm4, %v431_v60, 0 }
 0x647   :  { %p425_p1 = scmp.le.s32.totalorder %s1697_s16, 4  ;;  %v434_v62 = vshrl.u32 %v432_v61, 16  ;;  %v433_v63 = vand.u32 65535, %v432_v61 }
 0x649   :  { %s2542_s14 = smov (!%p425_p1, %s376_s14), %s2538_s10  ;;  %v436_v0 = vcvt.s32.f32 %v434_v62  ;;  %v435_v1 = vcvt.s32.f32 %v433_v63 }
 0x64a   :  { %s428_s17 = sor.u32 4194304, %s2542_s14 }
 0x64b   :  { %439 = vadd.xlane.f32.xlu0 %v436_v0  ;;  %437 = vadd.xlane.f32.xlu2 %v435_v1  ;;  %v452_v2 = vstv %s428_s17 }
 0x64c   :  { %vm453_vm6 = vcmp.lt.s32.totalorder %v1839_v21, %v452_v2 }
 0x64d   :  { %v454_v3 = vsel %vm453_vm6, 1, %v1812_v22 }
 0x64e   :  { %v455_v4 = vsel %vm38_vm4, %v454_v3, 0 }
 0x64f   :  { %v457_v5 = vshrl.u32 %v455_v4, 16  ;;  %v456_v6 = vand.u32 65535, %v455_v4 }
 0x651   :  { %v459_v7 = vcvt.s32.f32 %v457_v5  ;;  %v458_v8 = vcvt.s32.f32 %v456_v6 }
 0x653   :  { %462 = vadd.xlane.f32.xlu1 %v459_v7  ;;  %460 = vadd.xlane.f32.xlu0 %v458_v8 }
 0x6be   :  { %v440_v9 = vpop.xlane.xlu0 %439  ;;  %v438_v10 = vpop.xlane.xlu2 %437 }
 0x6bf   :  { %v442_v11 = vcvt.f32.s32 %v440_v9  ;;  %v441_v13 = vcvt.f32.s32 %v438_v10 }
 0x6c1   :  { %v443_v12 = vshll.u32 %v442_v11, 16 }
 0x6c3   :  { %v444_v14 = vadd.s32 %v443_v12, %v441_v13 }
 0x6c5   :  { %v445_v15 = vrot.slane %v444_v14, 4 }
 0x6c6   :  { %v463_v16 = vpop.xlane.xlu1 %462  ;;  %v461_v17 = vpop.xlane.xlu0 %460 }
 0x6c7   :  { %v446_v18 = vadd.s32 %v445_v15, %v444_v14  ;;  %v465_v19 = vcvt.f32.s32 %v463_v16  ;;  %v464_v23 = vcvt.f32.s32 %v461_v17 }
 0x6c9   :  { %v466_v20 = vshll.u32 %v465_v19, 16  ;;  %v447_v24 = vrot.slane %v446_v18, 2 }
 0x6cb   :  { %v467_v25 = vadd.s32 %v466_v20, %v464_v23  ;;  %v448_v26 = vadd.s32 %v447_v24, %v446_v18 }
 0x6cd   :  { %v468_v27 = vrot.slane %v467_v25, 4  ;;  %v449_v28 = vrot.slane %v448_v26, 1 }
 0x6cf   :  { %v469_v29 = vadd.s32 %v468_v27, %v467_v25  ;;  %v450_v30 = vadd.s32 %v449_v28, %v448_v26 }
 0x6d1   :  { %1698 = vpush %v450_v30  ;;  %v470_v31 = vrot.slane %v469_v29, 2 }
 0x6d3   :  { %v471_v32 = vadd.s32 %v470_v31, %v469_v29 }
 0x6d5   :  { %v472_v33 = vrot.slane %v471_v32, 1 }
 0x6d7   :  { %v473_v34 = vadd.s32 %v472_v33, %v471_v32 }
 0x6d9   :  { %1700 = vpush %v473_v34 }
 0x702   :  { %s1699_s18 = spop %1698 }
 0x703   :  { %p475_p2 = scmp.le.s32.totalorder %s1699_s18, 3 }
 0x705   :  { %s2544_s0 = smov (!%p475_p2, %s427_s0), %s2540_s12 }
 0x706   :  { %s479_s19 = sor.u32 2097152, %s2544_s0 }
 0x707   :  { %v481_v35 = vstv %s479_s19 }
 0x708   :  { %vm482_vm7 = vcmp.lt.s32.totalorder %v1839_v21, %v481_v35 }
 0x709   :  { %v483_v36 = vsel %vm482_vm7, 1, %v1812_v22 }
 0x70a   :  { %s1701_s20 = spop %1700  ;;  %v484_v37 = vsel %vm38_vm4, %v483_v36, 0 }
 0x70b   :  { %p477_p3 = scmp.le.s32.totalorder %s1701_s20, 4  ;;  %v486_v38 = vshrl.u32 %v484_v37, 16  ;;  %v485_v39 = vand.u32 65535, %v484_v37 }
 0x70d   :  { %s2546_s17 = smov (!%p477_p3, %s428_s17), %s2542_s14  ;;  %v488_v40 = vcvt.s32.f32 %v486_v38  ;;  %v487_v41 = vcvt.s32.f32 %v485_v39 }
 0x70e   :  { %s480_s21 = sor.u32 2097152, %s2546_s17 }
 0x70f   :  { %491 = vadd.xlane.f32.xlu1 %v488_v40  ;;  %489 = vadd.xlane.f32.xlu0 %v487_v41  ;;  %v504_v42 = vstv %s480_s21 }
 0x710   :  { %vm505_vm8 = vcmp.lt.s32.totalorder %v1839_v21, %v504_v42 }
 0x711   :  { %v506_v43 = vsel %vm505_vm8, 1, %v1812_v22 }
 0x712   :  { %v507_v44 = vsel %vm38_vm4, %v506_v43, 0 }
 0x713   :  { %v509_v45 = vshrl.u32 %v507_v44, 16  ;;  %v508_v46 = vand.u32 65535, %v507_v44 }
 0x715   :  { %v511_v47 = vcvt.s32.f32 %v509_v45  ;;  %v510_v48 = vcvt.s32.f32 %v508_v46 }
 0x717   :  { %514 = vadd.xlane.f32.xlu2 %v511_v47  ;;  %512 = vadd.xlane.f32.xlu1 %v510_v48 }
 0x782   :  { %v492_v49 = vpop.xlane.xlu1 %491  ;;  %v490_v50 = vpop.xlane.xlu0 %489 }
 0x783   :  { %v494_v51 = vcvt.f32.s32 %v492_v49  ;;  %v493_v53 = vcvt.f32.s32 %v490_v50 }
 0x785   :  { %v495_v52 = vshll.u32 %v494_v51, 16 }
 0x787   :  { %v496_v54 = vadd.s32 %v495_v52, %v493_v53 }
 0x789   :  { %v497_v55 = vrot.slane %v496_v54, 4 }
 0x78a   :  { %v515_v56 = vpop.xlane.xlu2 %514  ;;  %v513_v57 = vpop.xlane.xlu1 %512 }
 0x78b   :  { %v498_v58 = vadd.s32 %v497_v55, %v496_v54  ;;  %v517_v59 = vcvt.f32.s32 %v515_v56  ;;  %v516_v61 = vcvt.f32.s32 %v513_v57 }
 0x78d   :  { %v518_v60 = vshll.u32 %v517_v59, 16  ;;  %v499_v62 = vrot.slane %v498_v58, 2 }
 0x78f   :  { %v519_v63 = vadd.s32 %v518_v60, %v516_v61  ;;  %v500_v0 = vadd.s32 %v499_v62, %v498_v58 }
 0x791   :  { %v520_v1 = vrot.slane %v519_v63, 4  ;;  %v501_v2 = vrot.slane %v500_v0, 1 }
 0x793   :  { %v521_v3 = vadd.s32 %v520_v1, %v519_v63  ;;  %v502_v4 = vadd.s32 %v501_v2, %v500_v0 }
 0x795   :  { %1702 = vpush %v502_v4  ;;  %v522_v5 = vrot.slane %v521_v3, 2 }
 0x797   :  { %v523_v6 = vadd.s32 %v522_v5, %v521_v3 }
 0x799   :  { %v524_v7 = vrot.slane %v523_v6, 1 }
 0x79b   :  { %v525_v8 = vadd.s32 %v524_v7, %v523_v6 }
 0x79d   :  { %1704 = vpush %v525_v8 }
 0x7c6   :  { %s1703_s22 = spop %1702 }
 0x7c7   :  { %p527_p4 = scmp.le.s32.totalorder %s1703_s22, 3 }
 0x7c9   :  { %s2548_s19 = smov (!%p527_p4, %s479_s19), %s2544_s0 }
 0x7ca   :  { %s531_s23 = sor.u32 1048576, %s2548_s19 }
 0x7cb   :  { %v533_v9 = vstv %s531_s23 }
 0x7cc   :  { %vm534_vm9 = vcmp.lt.s32.totalorder %v1839_v21, %v533_v9 }
 0x7cd   :  { %v535_v10 = vsel %vm534_vm9, 1, %v1812_v22 }
 0x7ce   :  { %s1705_s24 = spop %1704  ;;  %v536_v11 = vsel %vm38_vm4, %v535_v10, 0 }
 0x7cf   :  { %p529_p5 = scmp.le.s32.totalorder %s1705_s24, 4  ;;  %v538_v12 = vshrl.u32 %v536_v11, 16  ;;  %v537_v13 = vand.u32 65535, %v536_v11 }
 0x7d1   :  { %s2550_s21 = smov (!%p529_p5, %s480_s21), %s2546_s17  ;;  %v540_v14 = vcvt.s32.f32 %v538_v12  ;;  %v539_v15 = vcvt.s32.f32 %v537_v13 }
 0x7d2   :  { %s532_s25 = sor.u32 1048576, %s2550_s21 }
 0x7d3   :  { %543 = vadd.xlane.f32.xlu2 %v540_v14  ;;  %541 = vadd.xlane.f32.xlu1 %v539_v15  ;;  %v556_v16 = vstv %s532_s25 }
 0x7d4   :  { %vm557_vm10 = vcmp.lt.s32.totalorder %v1839_v21, %v556_v16 }
 0x7d5   :  { %v558_v17 = vsel %vm557_vm10, 1, %v1812_v22 }
 0x7d6   :  { %v559_v18 = vsel %vm38_vm4, %v558_v17, 0 }
 0x7d7   :  { %v561_v19 = vshrl.u32 %v559_v18, 16  ;;  %v560_v20 = vand.u32 65535, %v559_v18 }
 0x7d9   :  { %v563_v23 = vcvt.s32.f32 %v561_v19  ;;  %v562_v24 = vcvt.s32.f32 %v560_v20 }
 0x7db   :  { %566 = vadd.xlane.f32.xlu0 %v563_v23  ;;  %564 = vadd.xlane.f32.xlu2 %v562_v24 }
 0x846   :  { %v544_v25 = vpop.xlane.xlu2 %543  ;;  %v542_v26 = vpop.xlane.xlu1 %541 }
 0x847   :  { %v546_v27 = vcvt.f32.s32 %v544_v25  ;;  %v545_v29 = vcvt.f32.s32 %v542_v26 }
 0x849   :  { %v547_v28 = vshll.u32 %v546_v27, 16 }
 0x84b   :  { %v548_v30 = vadd.s32 %v547_v28, %v545_v29 }
 0x84d   :  { %v549_v31 = vrot.slane %v548_v30, 4 }
 0x84e   :  { %v567_v32 = vpop.xlane.xlu0 %566  ;;  %v565_v33 = vpop.xlane.xlu2 %564 }
 0x84f   :  { %v550_v34 = vadd.s32 %v549_v31, %v548_v30  ;;  %v569_v35 = vcvt.f32.s32 %v567_v32  ;;  %v568_v37 = vcvt.f32.s32 %v565_v33 }
 0x851   :  { %v570_v36 = vshll.u32 %v569_v35, 16  ;;  %v551_v38 = vrot.slane %v550_v34, 2 }
 0x853   :  { %v571_v39 = vadd.s32 %v570_v36, %v568_v37  ;;  %v552_v40 = vadd.s32 %v551_v38, %v550_v34 }
 0x855   :  { %v572_v41 = vrot.slane %v571_v39, 4  ;;  %v553_v42 = vrot.slane %v552_v40, 1 }
 0x857   :  { %v573_v43 = vadd.s32 %v572_v41, %v571_v39  ;;  %v554_v44 = vadd.s32 %v553_v42, %v552_v40 }
 0x859   :  { %1706 = vpush %v554_v44  ;;  %v574_v45 = vrot.slane %v573_v43, 2 }
 0x85b   :  { %v575_v46 = vadd.s32 %v574_v45, %v573_v43 }
 0x85d   :  { %v576_v47 = vrot.slane %v575_v46, 1 }
 0x85f   :  { %v577_v48 = vadd.s32 %v576_v47, %v575_v46 }
 0x861   :  { %1708 = vpush %v577_v48 }
 0x88a   :  { %s1707_s26 = spop %1706 }
 0x88b   :  { %p579_p6 = scmp.le.s32.totalorder %s1707_s26, 3 }
 0x88d   :  { %s2552_s23 = smov (!%p579_p6, %s531_s23), %s2548_s19 }
 0x88e   :  { %s583_s27 = sor.u32 524288, %s2552_s23 }
 0x88f   :  { %v585_v49 = vstv %s583_s27 }
 0x890   :  { %vm586_vm11 = vcmp.lt.s32.totalorder %v1839_v21, %v585_v49 }
 0x891   :  { %v587_v50 = vsel %vm586_vm11, 1, %v1812_v22 }
 0x892   :  { %s1709_s28 = spop %1708  ;;  %v588_v51 = vsel %vm38_vm4, %v587_v50, 0 }
 0x893   :  { %p581_p7 = scmp.le.s32.totalorder %s1709_s28, 4  ;;  %v590_v52 = vshrl.u32 %v588_v51, 16  ;;  %v589_v53 = vand.u32 65535, %v588_v51 }
 0x895   :  { %s2554_s25 = smov (!%p581_p7, %s532_s25), %s2550_s21  ;;  %v592_v54 = vcvt.s32.f32 %v590_v52  ;;  %v591_v55 = vcvt.s32.f32 %v589_v53 }
 0x896   :  { %s584_s29 = sor.u32 524288, %s2554_s25 }
 0x897   :  { %595 = vadd.xlane.f32.xlu0 %v592_v54  ;;  %593 = vadd.xlane.f32.xlu2 %v591_v55  ;;  %v608_v56 = vstv %s584_s29 }
 0x898   :  { %vm609_vm12 = vcmp.lt.s32.totalorder %v1839_v21, %v608_v56 }
 0x899   :  { %v610_v57 = vsel %vm609_vm12, 1, %v1812_v22 }
 0x89a   :  { %v611_v58 = vsel %vm38_vm4, %v610_v57, 0 }
 0x89b   :  { %v613_v59 = vshrl.u32 %v611_v58, 16  ;;  %v612_v60 = vand.u32 65535, %v611_v58 }
 0x89d   :  { %v615_v61 = vcvt.s32.f32 %v613_v59  ;;  %v614_v62 = vcvt.s32.f32 %v612_v60 }
 0x89f   :  { %618 = vadd.xlane.f32.xlu1 %v615_v61  ;;  %616 = vadd.xlane.f32.xlu0 %v614_v62 }
 0x90a   :  { %v596_v63 = vpop.xlane.xlu0 %595  ;;  %v594_v0 = vpop.xlane.xlu2 %593 }
 0x90b   :  { %v598_v1 = vcvt.f32.s32 %v596_v63  ;;  %v597_v3 = vcvt.f32.s32 %v594_v0 }
 0x90d   :  { %v599_v2 = vshll.u32 %v598_v1, 16 }
 0x90f   :  { %v600_v4 = vadd.s32 %v599_v2, %v597_v3 }
 0x911   :  { %v601_v5 = vrot.slane %v600_v4, 4 }
 0x912   :  { %v619_v6 = vpop.xlane.xlu1 %618  ;;  %v617_v7 = vpop.xlane.xlu0 %616 }
 0x913   :  { %v602_v8 = vadd.s32 %v601_v5, %v600_v4  ;;  %v621_v9 = vcvt.f32.s32 %v619_v6  ;;  %v620_v11 = vcvt.f32.s32 %v617_v7 }
 0x915   :  { %v622_v10 = vshll.u32 %v621_v9, 16  ;;  %v603_v12 = vrot.slane %v602_v8, 2 }
 0x917   :  { %v623_v13 = vadd.s32 %v622_v10, %v620_v11  ;;  %v604_v14 = vadd.s32 %v603_v12, %v602_v8 }
 0x919   :  { %v624_v15 = vrot.slane %v623_v13, 4  ;;  %v605_v16 = vrot.slane %v604_v14, 1 }
 0x91b   :  { %v625_v17 = vadd.s32 %v624_v15, %v623_v13  ;;  %v606_v18 = vadd.s32 %v605_v16, %v604_v14 }
 0x91d   :  { %1710 = vpush %v606_v18  ;;  %v626_v19 = vrot.slane %v625_v17, 2 }
 0x91f   :  { %v627_v20 = vadd.s32 %v626_v19, %v625_v17 }
 0x921   :  { %v628_v23 = vrot.slane %v627_v20, 1 }
 0x923   :  { %v629_v24 = vadd.s32 %v628_v23, %v627_v20 }
 0x925   :  { %1712 = vpush %v629_v24 }
 0x94e   :  { %s1711_s30 = spop %1710 }
 0x94f   :  { %p631_p8 = scmp.le.s32.totalorder %s1711_s30, 3 }
 0x951   :  { %s2556_s27 = smov (!%p631_p8, %s583_s27), %s2552_s23 }
 0x952   :  { %s635_s2 = sor.u32 262144, %s2556_s27 }
 0x953   :  { %v637_v25 = vstv %s635_s2 }
 0x954   :  { %vm638_vm13 = vcmp.lt.s32.totalorder %v1839_v21, %v637_v25 }
 0x955   :  { %v639_v26 = vsel %vm638_vm13, 1, %v1812_v22 }
 0x956   :  { %s1713_s3 = spop %1712  ;;  %v640_v27 = vsel %vm38_vm4, %v639_v26, 0 }
 0x957   :  { %p633_p9 = scmp.le.s32.totalorder %s1713_s3, 4  ;;  %v642_v28 = vshrl.u32 %v640_v27, 16  ;;  %v641_v29 = vand.u32 65535, %v640_v27 }
 0x959   :  { %s2558_s29 = smov (!%p633_p9, %s584_s29), %s2554_s25  ;;  %v644_v30 = vcvt.s32.f32 %v642_v28  ;;  %v643_v31 = vcvt.s32.f32 %v641_v29 }
 0x95a   :  { %s636_s4 = sor.u32 262144, %s2558_s29 }
 0x95b   :  { %647 = vadd.xlane.f32.xlu1 %v644_v30  ;;  %645 = vadd.xlane.f32.xlu0 %v643_v31  ;;  %v660_v32 = vstv %s636_s4 }
 0x95c   :  { %vm661_vm14 = vcmp.lt.s32.totalorder %v1839_v21, %v660_v32 }
 0x95d   :  { %v662_v33 = vsel %vm661_vm14, 1, %v1812_v22 }
 0x95e   :  { %v663_v34 = vsel %vm38_vm4, %v662_v33, 0 }
 0x95f   :  { %v665_v35 = vshrl.u32 %v663_v34, 16  ;;  %v664_v36 = vand.u32 65535, %v663_v34 }
 0x961   :  { %v667_v37 = vcvt.s32.f32 %v665_v35  ;;  %v666_v38 = vcvt.s32.f32 %v664_v36 }
 0x963   :  { %670 = vadd.xlane.f32.xlu2 %v667_v37  ;;  %668 = vadd.xlane.f32.xlu1 %v666_v38 }
 0x9ce   :  { %v648_v39 = vpop.xlane.xlu1 %647  ;;  %v646_v40 = vpop.xlane.xlu0 %645 }
 0x9cf   :  { %v650_v41 = vcvt.f32.s32 %v648_v39  ;;  %v649_v43 = vcvt.f32.s32 %v646_v40 }
 0x9d1   :  { %v651_v42 = vshll.u32 %v650_v41, 16 }
 0x9d3   :  { %v652_v44 = vadd.s32 %v651_v42, %v649_v43 }
 0x9d5   :  { %v653_v45 = vrot.slane %v652_v44, 4 }
 0x9d6   :  { %v671_v46 = vpop.xlane.xlu2 %670  ;;  %v669_v47 = vpop.xlane.xlu1 %668 }
 0x9d7   :  { %v654_v48 = vadd.s32 %v653_v45, %v652_v44  ;;  %v673_v49 = vcvt.f32.s32 %v671_v46  ;;  %v672_v51 = vcvt.f32.s32 %v669_v47 }
 0x9d9   :  { %v674_v50 = vshll.u32 %v673_v49, 16  ;;  %v655_v52 = vrot.slane %v654_v48, 2 }
 0x9db   :  { %v675_v53 = vadd.s32 %v674_v50, %v672_v51  ;;  %v656_v54 = vadd.s32 %v655_v52, %v654_v48 }
 0x9dd   :  { %v676_v55 = vrot.slane %v675_v53, 4  ;;  %v657_v56 = vrot.slane %v656_v54, 1 }
 0x9df   :  { %v677_v57 = vadd.s32 %v676_v55, %v675_v53  ;;  %v658_v58 = vadd.s32 %v657_v56, %v656_v54 }
 0x9e1   :  { %1714 = vpush %v658_v58  ;;  %v678_v59 = vrot.slane %v677_v57, 2 }
 0x9e3   :  { %v679_v60 = vadd.s32 %v678_v59, %v677_v57 }
 0x9e5   :  { %v680_v61 = vrot.slane %v679_v60, 1 }
 0x9e7   :  { %v681_v62 = vadd.s32 %v680_v61, %v679_v60 }
 0x9e9   :  { %1716 = vpush %v681_v62 }
 0xa12   :  { %s1715_s5 = spop %1714 }
 0xa13   :  { %p683_p10 = scmp.le.s32.totalorder %s1715_s5, 3 }
 0xa15   :  { %s2560_s2 = smov (!%p683_p10, %s635_s2), %s2556_s27 }
 0xa16   :  { %s687_s6 = sor.u32 131072, %s2560_s2 }
 0xa17   :  { %v689_v63 = vstv %s687_s6 }
 0xa18   :  { %vm690_vm15 = vcmp.lt.s32.totalorder %v1839_v21, %v689_v63 }
 0xa19   :  { %v691_v0 = vsel %vm690_vm15, 1, %v1812_v22 }
 0xa1a   :  { %s1717_s7 = spop %1716  ;;  %v692_v1 = vsel %vm38_vm4, %v691_v0, 0 }
 0xa1b   :  { %p685_p11 = scmp.le.s32.totalorder %s1717_s7, 4  ;;  %v694_v2 = vshrl.u32 %v692_v1, 16  ;;  %v693_v3 = vand.u32 65535, %v692_v1 }
 0xa1d   :  { %s2562_s4 = smov (!%p685_p11, %s636_s4), %s2558_s29  ;;  %v696_v4 = vcvt.s32.f32 %v694_v2  ;;  %v695_v5 = vcvt.s32.f32 %v693_v3 }
 0xa1e   :  { %s688_s8 = sor.u32 131072, %s2562_s4 }
 0xa1f   :  { %699 = vadd.xlane.f32.xlu2 %v696_v4  ;;  %697 = vadd.xlane.f32.xlu1 %v695_v5  ;;  %v712_v6 = vstv %s688_s8 }
 0xa20   :  { %vm713_vm0 = vcmp.lt.s32.totalorder %v1839_v21, %v712_v6 }
 0xa21   :  { %v714_v7 = vsel %vm713_vm0, 1, %v1812_v22 }
 0xa22   :  { %v715_v8 = vsel %vm38_vm4, %v714_v7, 0 }
 0xa23   :  { %v717_v9 = vshrl.u32 %v715_v8, 16  ;;  %v716_v10 = vand.u32 65535, %v715_v8 }
 0xa25   :  { %v719_v11 = vcvt.s32.f32 %v717_v9  ;;  %v718_v12 = vcvt.s32.f32 %v716_v10 }
 0xa27   :  { %722 = vadd.xlane.f32.xlu0 %v719_v11  ;;  %720 = vadd.xlane.f32.xlu2 %v718_v12 }
 0xa92   :  { %v700_v13 = vpop.xlane.xlu2 %699  ;;  %v698_v14 = vpop.xlane.xlu1 %697 }
 0xa93   :  { %v702_v15 = vcvt.f32.s32 %v700_v13  ;;  %v701_v17 = vcvt.f32.s32 %v698_v14 }
 0xa95   :  { %v703_v16 = vshll.u32 %v702_v15, 16 }
 0xa97   :  { %v704_v18 = vadd.s32 %v703_v16, %v701_v17 }
 0xa99   :  { %v705_v19 = vrot.slane %v704_v18, 4 }
 0xa9a   :  { %v723_v20 = vpop.xlane.xlu0 %722  ;;  %v721_v23 = vpop.xlane.xlu2 %720 }
 0xa9b   :  { %v706_v24 = vadd.s32 %v705_v19, %v704_v18  ;;  %v725_v25 = vcvt.f32.s32 %v723_v20  ;;  %v724_v27 = vcvt.f32.s32 %v721_v23 }
 0xa9d   :  { %v726_v26 = vshll.u32 %v725_v25, 16  ;;  %v707_v28 = vrot.slane %v706_v24, 2 }
 0xa9f   :  { %v727_v29 = vadd.s32 %v726_v26, %v724_v27  ;;  %v708_v30 = vadd.s32 %v707_v28, %v706_v24 }
 0xaa1   :  { %v728_v31 = vrot.slane %v727_v29, 4  ;;  %v709_v32 = vrot.slane %v708_v30, 1 }
 0xaa3   :  { %v729_v33 = vadd.s32 %v728_v31, %v727_v29  ;;  %v710_v34 = vadd.s32 %v709_v32, %v708_v30 }
 0xaa5   :  { %1718 = vpush %v710_v34  ;;  %v730_v35 = vrot.slane %v729_v33, 2 }
 0xaa7   :  { %v731_v36 = vadd.s32 %v730_v35, %v729_v33 }
 0xaa9   :  { %v732_v37 = vrot.slane %v731_v36, 1 }
 0xaab   :  { %v733_v38 = vadd.s32 %v732_v37, %v731_v36 }
 0xaad   :  { %1720 = vpush %v733_v38 }
 0xad6   :  { %s1719_s9 = spop %1718 }
 0xad7   :  { %p735_p12 = scmp.le.s32.totalorder %s1719_s9, 3 }
 0xad9   :  { %s2564_s6 = smov (!%p735_p12, %s687_s6), %s2560_s2 }
 0xada   :  { %s739_s10 = sor.u32 65536, %s2564_s6 }
 0xadb   :  { %v741_v39 = vstv %s739_s10 }
 0xadc   :  { %vm742_vm1 = vcmp.lt.s32.totalorder %v1839_v21, %v741_v39 }
 0xadd   :  { %v743_v40 = vsel %vm742_vm1, 1, %v1812_v22 }
 0xade   :  { %s1721_s11 = spop %1720  ;;  %v744_v41 = vsel %vm38_vm4, %v743_v40, 0 }
 0xadf   :  { %p737_p13 = scmp.le.s32.totalorder %s1721_s11, 4  ;;  %v746_v42 = vshrl.u32 %v744_v41, 16  ;;  %v745_v43 = vand.u32 65535, %v744_v41 }
 0xae1   :  { %s2566_s8 = smov (!%p737_p13, %s688_s8), %s2562_s4  ;;  %v748_v44 = vcvt.s32.f32 %v746_v42  ;;  %v747_v45 = vcvt.s32.f32 %v745_v43 }
 0xae2   :  { %s740_s12 = sor.u32 65536, %s2566_s8 }
 0xae3   :  { %751 = vadd.xlane.f32.xlu0 %v748_v44  ;;  %749 = vadd.xlane.f32.xlu2 %v747_v45  ;;  %v764_v46 = vstv %s740_s12 }
 0xae4   :  { %vm765_vm2 = vcmp.lt.s32.totalorder %v1839_v21, %v764_v46 }
 0xae5   :  { %v766_v47 = vsel %vm765_vm2, 1, %v1812_v22 }
 0xae6   :  { %v767_v48 = vsel %vm38_vm4, %v766_v47, 0 }
 0xae7   :  { %v769_v49 = vshrl.u32 %v767_v48, 16  ;;  %v768_v50 = vand.u32 65535, %v767_v48 }
 0xae9   :  { %v771_v51 = vcvt.s32.f32 %v769_v49  ;;  %v770_v52 = vcvt.s32.f32 %v768_v50 }
 0xaeb   :  { %774 = vadd.xlane.f32.xlu1 %v771_v51  ;;  %772 = vadd.xlane.f32.xlu0 %v770_v52 }
 0xb56   :  { %v752_v53 = vpop.xlane.xlu0 %751  ;;  %v750_v54 = vpop.xlane.xlu2 %749 }
 0xb57   :  { %v754_v55 = vcvt.f32.s32 %v752_v53  ;;  %v753_v57 = vcvt.f32.s32 %v750_v54 }
 0xb59   :  { %v755_v56 = vshll.u32 %v754_v55, 16 }
 0xb5b   :  { %v756_v58 = vadd.s32 %v755_v56, %v753_v57 }
 0xb5d   :  { %v757_v59 = vrot.slane %v756_v58, 4 }
 0xb5e   :  { %v775_v60 = vpop.xlane.xlu1 %774  ;;  %v773_v61 = vpop.xlane.xlu0 %772 }
 0xb5f   :  { %v758_v62 = vadd.s32 %v757_v59, %v756_v58  ;;  %v777_v63 = vcvt.f32.s32 %v775_v60  ;;  %v776_v1 = vcvt.f32.s32 %v773_v61 }
 0xb61   :  { %v778_v0 = vshll.u32 %v777_v63, 16  ;;  %v759_v2 = vrot.slane %v758_v62, 2 }
 0xb63   :  { %v779_v3 = vadd.s32 %v778_v0, %v776_v1  ;;  %v760_v4 = vadd.s32 %v759_v2, %v758_v62 }
 0xb65   :  { %v780_v5 = vrot.slane %v779_v3, 4  ;;  %v761_v6 = vrot.slane %v760_v4, 1 }
 0xb67   :  { %v781_v7 = vadd.s32 %v780_v5, %v779_v3  ;;  %v762_v8 = vadd.s32 %v761_v6, %v760_v4 }
 0xb69   :  { %1722 = vpush %v762_v8  ;;  %v782_v9 = vrot.slane %v781_v7, 2 }
 0xb6b   :  { %v783_v10 = vadd.s32 %v782_v9, %v781_v7 }
 0xb6d   :  { %v784_v11 = vrot.slane %v783_v10, 1 }
 0xb6f   :  { %v785_v12 = vadd.s32 %v784_v11, %v783_v10 }
 0xb71   :  { %1724 = vpush %v785_v12 }
 0xb9a   :  { %s1723_s13 = spop %1722 }
 0xb9b   :  { %p787_p0 = scmp.le.s32.totalorder %s1723_s13, 3 }
 0xb9d   :  { %s2568_s10 = smov (!%p787_p0, %s739_s10), %s2564_s6 }
 0xb9e   :  { %s791_s14 = sor.u32 32768, %s2568_s10 }
 0xb9f   :  { %v793_v13 = vstv %s791_s14 }
 0xba0   :  { %vm794_vm3 = vcmp.lt.s32.totalorder %v1839_v21, %v793_v13 }
 0xba1   :  { %v795_v14 = vsel %vm794_vm3, 1, %v1812_v22 }
 0xba2   :  { %s1725_s15 = spop %1724  ;;  %v796_v15 = vsel %vm38_vm4, %v795_v14, 0 }
 0xba3   :  { %p789_p1 = scmp.le.s32.totalorder %s1725_s15, 4  ;;  %v798_v16 = vshrl.u32 %v796_v15, 16  ;;  %v797_v17 = vand.u32 65535, %v796_v15 }
 0xba5   :  { %s2570_s12 = smov (!%p789_p1, %s740_s12), %s2566_s8  ;;  %v800_v18 = vcvt.s32.f32 %v798_v16  ;;  %v799_v19 = vcvt.s32.f32 %v797_v17 }
 0xba6   :  { %s792_s0 = sor.u32 32768, %s2570_s12 }
 0xba7   :  { %803 = vadd.xlane.f32.xlu1 %v800_v18  ;;  %801 = vadd.xlane.f32.xlu0 %v799_v19  ;;  %v816_v20 = vstv %s792_s0 }
 0xba8   :  { %vm817_vm5 = vcmp.lt.s32.totalorder %v1839_v21, %v816_v20 }
 0xba9   :  { %v818_v23 = vsel %vm817_vm5, 1, %v1812_v22 }
 0xbaa   :  { %v819_v24 = vsel %vm38_vm4, %v818_v23, 0 }
 0xbab   :  { %v821_v25 = vshrl.u32 %v819_v24, 16  ;;  %v820_v26 = vand.u32 65535, %v819_v24 }
 0xbad   :  { %v823_v27 = vcvt.s32.f32 %v821_v25  ;;  %v822_v28 = vcvt.s32.f32 %v820_v26 }
 0xbaf   :  { %826 = vadd.xlane.f32.xlu2 %v823_v27  ;;  %824 = vadd.xlane.f32.xlu1 %v822_v28 }
 0xc1a   :  { %v804_v29 = vpop.xlane.xlu1 %803  ;;  %v802_v30 = vpop.xlane.xlu0 %801 }
 0xc1b   :  { %v806_v31 = vcvt.f32.s32 %v804_v29  ;;  %v805_v33 = vcvt.f32.s32 %v802_v30 }
 0xc1d   :  { %v807_v32 = vshll.u32 %v806_v31, 16 }
 0xc1f   :  { %v808_v34 = vadd.s32 %v807_v32, %v805_v33 }
 0xc21   :  { %v809_v35 = vrot.slane %v808_v34, 4 }
 0xc22   :  { %v827_v36 = vpop.xlane.xlu2 %826  ;;  %v825_v37 = vpop.xlane.xlu1 %824 }
 0xc23   :  { %v810_v38 = vadd.s32 %v809_v35, %v808_v34  ;;  %v829_v39 = vcvt.f32.s32 %v827_v36  ;;  %v828_v41 = vcvt.f32.s32 %v825_v37 }
 0xc25   :  { %v830_v40 = vshll.u32 %v829_v39, 16  ;;  %v811_v42 = vrot.slane %v810_v38, 2 }
 0xc27   :  { %v831_v43 = vadd.s32 %v830_v40, %v828_v41  ;;  %v812_v44 = vadd.s32 %v811_v42, %v810_v38 }
 0xc29   :  { %v832_v45 = vrot.slane %v831_v43, 4  ;;  %v813_v46 = vrot.slane %v812_v44, 1 }
 0xc2b   :  { %v833_v47 = vadd.s32 %v832_v45, %v831_v43  ;;  %v814_v48 = vadd.s32 %v813_v46, %v812_v44 }
 0xc2d   :  { %1726 = vpush %v814_v48  ;;  %v834_v49 = vrot.slane %v833_v47, 2 }
 0xc2f   :  { %v835_v50 = vadd.s32 %v834_v49, %v833_v47 }
 0xc31   :  { %v836_v51 = vrot.slane %v835_v50, 1 }
 0xc33   :  { %v837_v52 = vadd.s32 %v836_v51, %v835_v50 }
 0xc35   :  { %1728 = vpush %v837_v52 }
 0xc5e   :  { %s1727_s16 = spop %1726 }
 0xc5f   :  { %p839_p2 = scmp.le.s32.totalorder %s1727_s16, 3 }
 0xc61   :  { %s2572_s14 = smov (!%p839_p2, %s791_s14), %s2568_s10 }
 0xc62   :  { %s843_s17 = sor.u32 16384, %s2572_s14 }
 0xc63   :  { %v845_v53 = vstv %s843_s17 }
 0xc64   :  { %vm846_vm6 = vcmp.lt.s32.totalorder %v1839_v21, %v845_v53 }
 0xc65   :  { %v847_v54 = vsel %vm846_vm6, 1, %v1812_v22 }
 0xc66   :  { %s1729_s18 = spop %1728  ;;  %v848_v55 = vsel %vm38_vm4, %v847_v54, 0 }
 0xc67   :  { %p841_p3 = scmp.le.s32.totalorder %s1729_s18, 4  ;;  %v850_v56 = vshrl.u32 %v848_v55, 16  ;;  %v849_v57 = vand.u32 65535, %v848_v55 }
 0xc69   :  { %s2574_s0 = smov (!%p841_p3, %s792_s0), %s2570_s12  ;;  %v852_v58 = vcvt.s32.f32 %v850_v56  ;;  %v851_v59 = vcvt.s32.f32 %v849_v57 }
 0xc6a   :  { %s844_s19 = sor.u32 16384, %s2574_s0 }
 0xc6b   :  { %855 = vadd.xlane.f32.xlu2 %v852_v58  ;;  %853 = vadd.xlane.f32.xlu1 %v851_v59  ;;  %v868_v60 = vstv %s844_s19 }
 0xc6c   :  { %vm869_vm7 = vcmp.lt.s32.totalorder %v1839_v21, %v868_v60 }
 0xc6d   :  { %v870_v61 = vsel %vm869_vm7, 1, %v1812_v22 }
 0xc6e   :  { %v871_v62 = vsel %vm38_vm4, %v870_v61, 0 }
 0xc6f   :  { %v873_v63 = vshrl.u32 %v871_v62, 16  ;;  %v872_v0 = vand.u32 65535, %v871_v62 }
 0xc71   :  { %v875_v1 = vcvt.s32.f32 %v873_v63  ;;  %v874_v2 = vcvt.s32.f32 %v872_v0 }
 0xc73   :  { %878 = vadd.xlane.f32.xlu0 %v875_v1  ;;  %876 = vadd.xlane.f32.xlu2 %v874_v2 }
 0xcde   :  { %v856_v3 = vpop.xlane.xlu2 %855  ;;  %v854_v4 = vpop.xlane.xlu1 %853 }
 0xcdf   :  { %v858_v5 = vcvt.f32.s32 %v856_v3  ;;  %v857_v7 = vcvt.f32.s32 %v854_v4 }
 0xce1   :  { %v859_v6 = vshll.u32 %v858_v5, 16 }
 0xce3   :  { %v860_v8 = vadd.s32 %v859_v6, %v857_v7 }
 0xce5   :  { %v861_v9 = vrot.slane %v860_v8, 4 }
 0xce6   :  { %v879_v10 = vpop.xlane.xlu0 %878  ;;  %v877_v11 = vpop.xlane.xlu2 %876 }
 0xce7   :  { %v862_v12 = vadd.s32 %v861_v9, %v860_v8  ;;  %v881_v13 = vcvt.f32.s32 %v879_v10  ;;  %v880_v15 = vcvt.f32.s32 %v877_v11 }
 0xce9   :  { %v882_v14 = vshll.u32 %v881_v13, 16  ;;  %v863_v16 = vrot.slane %v862_v12, 2 }
 0xceb   :  { %v883_v17 = vadd.s32 %v882_v14, %v880_v15  ;;  %v864_v18 = vadd.s32 %v863_v16, %v862_v12 }
 0xced   :  { %v884_v19 = vrot.slane %v883_v17, 4  ;;  %v865_v20 = vrot.slane %v864_v18, 1 }
 0xcef   :  { %v885_v23 = vadd.s32 %v884_v19, %v883_v17  ;;  %v866_v24 = vadd.s32 %v865_v20, %v864_v18 }
 0xcf1   :  { %1730 = vpush %v866_v24  ;;  %v886_v25 = vrot.slane %v885_v23, 2 }
 0xcf3   :  { %v887_v26 = vadd.s32 %v886_v25, %v885_v23 }
 0xcf5   :  { %v888_v27 = vrot.slane %v887_v26, 1 }
 0xcf7   :  { %v889_v28 = vadd.s32 %v888_v27, %v887_v26 }
 0xcf9   :  { %1732 = vpush %v889_v28 }
 0xd22   :  { %s1731_s20 = spop %1730 }
 0xd23   :  { %p891_p4 = scmp.le.s32.totalorder %s1731_s20, 3 }
 0xd25   :  { %s2576_s17 = smov (!%p891_p4, %s843_s17), %s2572_s14 }
 0xd26   :  { %s895_s21 = sor.u32 8192, %s2576_s17 }
 0xd27   :  { %v897_v29 = vstv %s895_s21 }
 0xd28   :  { %vm898_vm8 = vcmp.lt.s32.totalorder %v1839_v21, %v897_v29 }
 0xd29   :  { %v899_v30 = vsel %vm898_vm8, 1, %v1812_v22 }
 0xd2a   :  { %s1733_s22 = spop %1732  ;;  %v900_v31 = vsel %vm38_vm4, %v899_v30, 0 }
 0xd2b   :  { %p893_p5 = scmp.le.s32.totalorder %s1733_s22, 4  ;;  %v902_v32 = vshrl.u32 %v900_v31, 16  ;;  %v901_v33 = vand.u32 65535, %v900_v31 }
 0xd2d   :  { %s2578_s19 = smov (!%p893_p5, %s844_s19), %s2574_s0  ;;  %v904_v34 = vcvt.s32.f32 %v902_v32  ;;  %v903_v35 = vcvt.s32.f32 %v901_v33 }
 0xd2e   :  { %s896_s23 = sor.u32 8192, %s2578_s19 }
 0xd2f   :  { %907 = vadd.xlane.f32.xlu0 %v904_v34  ;;  %905 = vadd.xlane.f32.xlu2 %v903_v35  ;;  %v920_v36 = vstv %s896_s23 }
 0xd30   :  { %vm921_vm9 = vcmp.lt.s32.totalorder %v1839_v21, %v920_v36 }
 0xd31   :  { %v922_v37 = vsel %vm921_vm9, 1, %v1812_v22 }
 0xd32   :  { %v923_v38 = vsel %vm38_vm4, %v922_v37, 0 }
 0xd33   :  { %v925_v39 = vshrl.u32 %v923_v38, 16  ;;  %v924_v40 = vand.u32 65535, %v923_v38 }
 0xd35   :  { %v927_v41 = vcvt.s32.f32 %v925_v39  ;;  %v926_v42 = vcvt.s32.f32 %v924_v40 }
 0xd37   :  { %930 = vadd.xlane.f32.xlu1 %v927_v41  ;;  %928 = vadd.xlane.f32.xlu0 %v926_v42 }
 0xda2   :  { %v908_v43 = vpop.xlane.xlu0 %907  ;;  %v906_v44 = vpop.xlane.xlu2 %905 }
 0xda3   :  { %v910_v45 = vcvt.f32.s32 %v908_v43  ;;  %v909_v47 = vcvt.f32.s32 %v906_v44 }
 0xda5   :  { %v911_v46 = vshll.u32 %v910_v45, 16 }
 0xda7   :  { %v912_v48 = vadd.s32 %v911_v46, %v909_v47 }
 0xda9   :  { %v913_v49 = vrot.slane %v912_v48, 4 }
 0xdaa   :  { %v931_v50 = vpop.xlane.xlu1 %930  ;;  %v929_v51 = vpop.xlane.xlu0 %928 }
 0xdab   :  { %v914_v52 = vadd.s32 %v913_v49, %v912_v48  ;;  %v933_v53 = vcvt.f32.s32 %v931_v50  ;;  %v932_v55 = vcvt.f32.s32 %v929_v51 }
 0xdad   :  { %v934_v54 = vshll.u32 %v933_v53, 16  ;;  %v915_v56 = vrot.slane %v914_v52, 2 }
 0xdaf   :  { %v935_v57 = vadd.s32 %v934_v54, %v932_v55  ;;  %v916_v58 = vadd.s32 %v915_v56, %v914_v52 }
 0xdb1   :  { %v936_v59 = vrot.slane %v935_v57, 4  ;;  %v917_v60 = vrot.slane %v916_v58, 1 }
 0xdb3   :  { %v937_v61 = vadd.s32 %v936_v59, %v935_v57  ;;  %v918_v62 = vadd.s32 %v917_v60, %v916_v58 }
 0xdb5   :  { %1734 = vpush %v918_v62  ;;  %v938_v63 = vrot.slane %v937_v61, 2 }
 0xdb7   :  { %v939_v0 = vadd.s32 %v938_v63, %v937_v61 }
 0xdb9   :  { %v940_v1 = vrot.slane %v939_v0, 1 }
 0xdbb   :  { %v941_v2 = vadd.s32 %v940_v1, %v939_v0 }
 0xdbd   :  { %1736 = vpush %v941_v2 }
 0xde6   :  { %s1735_s24 = spop %1734 }
 0xde7   :  { %p943_p6 = scmp.le.s32.totalorder %s1735_s24, 3 }
 0xde9   :  { %s2580_s21 = smov (!%p943_p6, %s895_s21), %s2576_s17 }
 0xdea   :  { %s947_s25 = sor.u32 4096, %s2580_s21 }
 0xdeb   :  { %v949_v3 = vstv %s947_s25 }
 0xdec   :  { %vm950_vm10 = vcmp.lt.s32.totalorder %v1839_v21, %v949_v3 }
 0xded   :  { %v951_v4 = vsel %vm950_vm10, 1, %v1812_v22 }
 0xdee   :  { %s1737_s26 = spop %1736  ;;  %v952_v5 = vsel %vm38_vm4, %v951_v4, 0 }
 0xdef   :  { %p945_p7 = scmp.le.s32.totalorder %s1737_s26, 4  ;;  %v954_v6 = vshrl.u32 %v952_v5, 16  ;;  %v953_v7 = vand.u32 65535, %v952_v5 }
 0xdf1   :  { %s2582_s23 = smov (!%p945_p7, %s896_s23), %s2578_s19  ;;  %v956_v8 = vcvt.s32.f32 %v954_v6  ;;  %v955_v9 = vcvt.s32.f32 %v953_v7 }
 0xdf2   :  { %s948_s27 = sor.u32 4096, %s2582_s23 }
 0xdf3   :  { %959 = vadd.xlane.f32.xlu1 %v956_v8  ;;  %957 = vadd.xlane.f32.xlu0 %v955_v9  ;;  %v972_v10 = vstv %s948_s27 }
 0xdf4   :  { %vm973_vm11 = vcmp.lt.s32.totalorder %v1839_v21, %v972_v10 }
 0xdf5   :  { %v974_v11 = vsel %vm973_vm11, 1, %v1812_v22 }
 0xdf6   :  { %v975_v12 = vsel %vm38_vm4, %v974_v11, 0 }
 0xdf7   :  { %v977_v13 = vshrl.u32 %v975_v12, 16  ;;  %v976_v14 = vand.u32 65535, %v975_v12 }
 0xdf9   :  { %v979_v15 = vcvt.s32.f32 %v977_v13  ;;  %v978_v16 = vcvt.s32.f32 %v976_v14 }
 0xdfb   :  { %982 = vadd.xlane.f32.xlu2 %v979_v15  ;;  %980 = vadd.xlane.f32.xlu1 %v978_v16 }
 0xe66   :  { %v960_v17 = vpop.xlane.xlu1 %959  ;;  %v958_v18 = vpop.xlane.xlu0 %957 }
 0xe67   :  { %v962_v19 = vcvt.f32.s32 %v960_v17  ;;  %v961_v23 = vcvt.f32.s32 %v958_v18 }
 0xe69   :  { %v963_v20 = vshll.u32 %v962_v19, 16 }
 0xe6b   :  { %v964_v24 = vadd.s32 %v963_v20, %v961_v23 }
 0xe6d   :  { %v965_v25 = vrot.slane %v964_v24, 4 }
 0xe6e   :  { %v983_v26 = vpop.xlane.xlu2 %982  ;;  %v981_v27 = vpop.xlane.xlu1 %980 }
 0xe6f   :  { %v966_v28 = vadd.s32 %v965_v25, %v964_v24  ;;  %v985_v29 = vcvt.f32.s32 %v983_v26  ;;  %v984_v31 = vcvt.f32.s32 %v981_v27 }
 0xe71   :  { %v986_v30 = vshll.u32 %v985_v29, 16  ;;  %v967_v32 = vrot.slane %v966_v28, 2 }
 0xe73   :  { %v987_v33 = vadd.s32 %v986_v30, %v984_v31  ;;  %v968_v34 = vadd.s32 %v967_v32, %v966_v28 }
 0xe75   :  { %v988_v35 = vrot.slane %v987_v33, 4  ;;  %v969_v36 = vrot.slane %v968_v34, 1 }
 0xe77   :  { %v989_v37 = vadd.s32 %v988_v35, %v987_v33  ;;  %v970_v38 = vadd.s32 %v969_v36, %v968_v34 }
 0xe79   :  { %1738 = vpush %v970_v38  ;;  %v990_v39 = vrot.slane %v989_v37, 2 }
 0xe7b   :  { %v991_v40 = vadd.s32 %v990_v39, %v989_v37 }
 0xe7d   :  { %v992_v41 = vrot.slane %v991_v40, 1 }
 0xe7f   :  { %v993_v42 = vadd.s32 %v992_v41, %v991_v40 }
 0xe81   :  { %1740 = vpush %v993_v42 }
 0xeaa   :  { %s1739_s28 = spop %1738 }
 0xeab   :  { %p995_p8 = scmp.le.s32.totalorder %s1739_s28, 3 }
 0xead   :  { %s2584_s25 = smov (!%p995_p8, %s947_s25), %s2580_s21 }
 0xeae   :  { %s999_s29 = sor.u32 2048, %s2584_s25 }
 0xeaf   :  { %v1001_v43 = vstv %s999_s29 }
 0xeb0   :  { %vm1002_vm12 = vcmp.lt.s32.totalorder %v1839_v21, %v1001_v43 }
 0xeb1   :  { %v1003_v44 = vsel %vm1002_vm12, 1, %v1812_v22 }
 0xeb2   :  { %s1741_s30 = spop %1740  ;;  %v1004_v45 = vsel %vm38_vm4, %v1003_v44, 0 }
 0xeb3   :  { %p997_p9 = scmp.le.s32.totalorder %s1741_s30, 4  ;;  %v1006_v46 = vshrl.u32 %v1004_v45, 16  ;;  %v1005_v47 = vand.u32 65535, %v1004_v45 }
 0xeb5   :  { %s2586_s27 = smov (!%p997_p9, %s948_s27), %s2582_s23  ;;  %v1008_v48 = vcvt.s32.f32 %v1006_v46  ;;  %v1007_v49 = vcvt.s32.f32 %v1005_v47 }
 0xeb6   :  { %s1000_s2 = sor.u32 2048, %s2586_s27 }
 0xeb7   :  { %1011 = vadd.xlane.f32.xlu2 %v1008_v48  ;;  %1009 = vadd.xlane.f32.xlu1 %v1007_v49  ;;  %v1024_v50 = vstv %s1000_s2 }
 0xeb8   :  { %vm1025_vm13 = vcmp.lt.s32.totalorder %v1839_v21, %v1024_v50 }
 0xeb9   :  { %v1026_v51 = vsel %vm1025_vm13, 1, %v1812_v22 }
 0xeba   :  { %v1027_v52 = vsel %vm38_vm4, %v1026_v51, 0 }
 0xebb   :  { %v1029_v53 = vshrl.u32 %v1027_v52, 16  ;;  %v1028_v54 = vand.u32 65535, %v1027_v52 }
 0xebd   :  { %v1031_v55 = vcvt.s32.f32 %v1029_v53  ;;  %v1030_v56 = vcvt.s32.f32 %v1028_v54 }
 0xebf   :  { %1034 = vadd.xlane.f32.xlu0 %v1031_v55  ;;  %1032 = vadd.xlane.f32.xlu2 %v1030_v56 }
 0xf2a   :  { %v1012_v57 = vpop.xlane.xlu2 %1011  ;;  %v1010_v58 = vpop.xlane.xlu1 %1009 }
 0xf2b   :  { %v1014_v59 = vcvt.f32.s32 %v1012_v57  ;;  %v1013_v61 = vcvt.f32.s32 %v1010_v58 }
 0xf2d   :  { %v1015_v60 = vshll.u32 %v1014_v59, 16 }
 0xf2f   :  { %v1016_v62 = vadd.s32 %v1015_v60, %v1013_v61 }
 0xf31   :  { %v1017_v63 = vrot.slane %v1016_v62, 4 }
 0xf32   :  { %v1035_v0 = vpop.xlane.xlu0 %1034  ;;  %v1033_v1 = vpop.xlane.xlu2 %1032 }
 0xf33   :  { %v1018_v2 = vadd.s32 %v1017_v63, %v1016_v62  ;;  %v1037_v3 = vcvt.f32.s32 %v1035_v0  ;;  %v1036_v5 = vcvt.f32.s32 %v1033_v1 }
 0xf35   :  { %v1038_v4 = vshll.u32 %v1037_v3, 16  ;;  %v1019_v6 = vrot.slane %v1018_v2, 2 }
 0xf37   :  { %v1039_v7 = vadd.s32 %v1038_v4, %v1036_v5  ;;  %v1020_v8 = vadd.s32 %v1019_v6, %v1018_v2 }
 0xf39   :  { %v1040_v9 = vrot.slane %v1039_v7, 4  ;;  %v1021_v10 = vrot.slane %v1020_v8, 1 }
 0xf3b   :  { %v1041_v11 = vadd.s32 %v1040_v9, %v1039_v7  ;;  %v1022_v12 = vadd.s32 %v1021_v10, %v1020_v8 }
 0xf3d   :  { %1742 = vpush %v1022_v12  ;;  %v1042_v13 = vrot.slane %v1041_v11, 2 }
 0xf3f   :  { %v1043_v14 = vadd.s32 %v1042_v13, %v1041_v11 }
 0xf41   :  { %v1044_v15 = vrot.slane %v1043_v14, 1 }
 0xf43   :  { %v1045_v16 = vadd.s32 %v1044_v15, %v1043_v14 }
 0xf45   :  { %1744 = vpush %v1045_v16 }
 0xf6e   :  { %s1743_s3 = spop %1742 }
 0xf6f   :  { %p1047_p10 = scmp.le.s32.totalorder %s1743_s3, 3 }
 0xf71   :  { %s2588_s29 = smov (!%p1047_p10, %s999_s29), %s2584_s25 }
 0xf72   :  { %s1051_s4 = sor.u32 1024, %s2588_s29 }
 0xf73   :  { %v1053_v17 = vstv %s1051_s4 }
 0xf74   :  { %vm1054_vm14 = vcmp.lt.s32.totalorder %v1839_v21, %v1053_v17 }
 0xf75   :  { %v1055_v18 = vsel %vm1054_vm14, 1, %v1812_v22 }
 0xf76   :  { %s1745_s5 = spop %1744  ;;  %v1056_v19 = vsel %vm38_vm4, %v1055_v18, 0 }
 0xf77   :  { %p1049_p11 = scmp.le.s32.totalorder %s1745_s5, 4  ;;  %v1058_v20 = vshrl.u32 %v1056_v19, 16  ;;  %v1057_v23 = vand.u32 65535, %v1056_v19 }
 0xf79   :  { %s2590_s2 = smov (!%p1049_p11, %s1000_s2), %s2586_s27  ;;  %v1060_v24 = vcvt.s32.f32 %v1058_v20  ;;  %v1059_v25 = vcvt.s32.f32 %v1057_v23 }
 0xf7a   :  { %s1052_s6 = sor.u32 1024, %s2590_s2 }
 0xf7b   :  { %1063 = vadd.xlane.f32.xlu0 %v1060_v24  ;;  %1061 = vadd.xlane.f32.xlu2 %v1059_v25  ;;  %v1076_v26 = vstv %s1052_s6 }
 0xf7c   :  { %vm1077_vm15 = vcmp.lt.s32.totalorder %v1839_v21, %v1076_v26 }
 0xf7d   :  { %v1078_v27 = vsel %vm1077_vm15, 1, %v1812_v22 }
 0xf7e   :  { %v1079_v28 = vsel %vm38_vm4, %v1078_v27, 0 }
 0xf7f   :  { %v1081_v29 = vshrl.u32 %v1079_v28, 16  ;;  %v1080_v30 = vand.u32 65535, %v1079_v28 }
 0xf81   :  { %v1083_v31 = vcvt.s32.f32 %v1081_v29  ;;  %v1082_v32 = vcvt.s32.f32 %v1080_v30 }
 0xf83   :  { %1086 = vadd.xlane.f32.xlu1 %v1083_v31  ;;  %1084 = vadd.xlane.f32.xlu0 %v1082_v32 }
 0xfee   :  { %v1064_v33 = vpop.xlane.xlu0 %1063  ;;  %v1062_v34 = vpop.xlane.xlu2 %1061 }
 0xfef   :  { %v1066_v35 = vcvt.f32.s32 %v1064_v33  ;;  %v1065_v37 = vcvt.f32.s32 %v1062_v34 }
 0xff1   :  { %v1067_v36 = vshll.u32 %v1066_v35, 16 }
 0xff3   :  { %v1068_v38 = vadd.s32 %v1067_v36, %v1065_v37 }
 0xff5   :  { %v1069_v39 = vrot.slane %v1068_v38, 4 }
 0xff6   :  { %v1087_v40 = vpop.xlane.xlu1 %1086  ;;  %v1085_v41 = vpop.xlane.xlu0 %1084 }
 0xff7   :  { %v1070_v42 = vadd.s32 %v1069_v39, %v1068_v38  ;;  %v1089_v43 = vcvt.f32.s32 %v1087_v40  ;;  %v1088_v45 = vcvt.f32.s32 %v1085_v41 }
 0xff9   :  { %v1090_v44 = vshll.u32 %v1089_v43, 16  ;;  %v1071_v46 = vrot.slane %v1070_v42, 2 }
 0xffb   :  { %v1091_v47 = vadd.s32 %v1090_v44, %v1088_v45  ;;  %v1072_v48 = vadd.s32 %v1071_v46, %v1070_v42 }
 0xffd   :  { %v1092_v49 = vrot.slane %v1091_v47, 4  ;;  %v1073_v50 = vrot.slane %v1072_v48, 1 }
 0xfff   :  { %v1093_v51 = vadd.s32 %v1092_v49, %v1091_v47  ;;  %v1074_v52 = vadd.s32 %v1073_v50, %v1072_v48 }
0x1001   :  { %1746 = vpush %v1074_v52  ;;  %v1094_v53 = vrot.slane %v1093_v51, 2 }
0x1003   :  { %v1095_v54 = vadd.s32 %v1094_v53, %v1093_v51 }
0x1005   :  { %v1096_v55 = vrot.slane %v1095_v54, 1 }
0x1007   :  { %v1097_v56 = vadd.s32 %v1096_v55, %v1095_v54 }
0x1009   :  { %1748 = vpush %v1097_v56 }
0x1032   :  { %s1747_s7 = spop %1746 }
0x1033   :  { %p1099_p12 = scmp.le.s32.totalorder %s1747_s7, 3 }
0x1035   :  { %s2592_s4 = smov (!%p1099_p12, %s1051_s4), %s2588_s29 }
0x1036   :  { %s1103_s8 = sor.u32 512, %s2592_s4 }
0x1037   :  { %v1105_v57 = vstv %s1103_s8 }
0x1038   :  { %vm1106_vm0 = vcmp.lt.s32.totalorder %v1839_v21, %v1105_v57 }
0x1039   :  { %v1107_v58 = vsel %vm1106_vm0, 1, %v1812_v22 }
0x103a   :  { %s1749_s9 = spop %1748  ;;  %v1108_v59 = vsel %vm38_vm4, %v1107_v58, 0 }
0x103b   :  { %p1101_p13 = scmp.le.s32.totalorder %s1749_s9, 4  ;;  %v1110_v60 = vshrl.u32 %v1108_v59, 16  ;;  %v1109_v61 = vand.u32 65535, %v1108_v59 }
0x103d   :  { %s2594_s6 = smov (!%p1101_p13, %s1052_s6), %s2590_s2  ;;  %v1112_v62 = vcvt.s32.f32 %v1110_v60  ;;  %v1111_v63 = vcvt.s32.f32 %v1109_v61 }
0x103e   :  { %s1104_s10 = sor.u32 512, %s2594_s6 }
0x103f   :  { %1115 = vadd.xlane.f32.xlu1 %v1112_v62  ;;  %1113 = vadd.xlane.f32.xlu0 %v1111_v63  ;;  %v1128_v0 = vstv %s1104_s10 }
0x1040   :  { %vm1129_vm1 = vcmp.lt.s32.totalorder %v1839_v21, %v1128_v0 }
0x1041   :  { %v1130_v1 = vsel %vm1129_vm1, 1, %v1812_v22 }
0x1042   :  { %v1131_v2 = vsel %vm38_vm4, %v1130_v1, 0 }
0x1043   :  { %v1133_v3 = vshrl.u32 %v1131_v2, 16  ;;  %v1132_v4 = vand.u32 65535, %v1131_v2 }
0x1045   :  { %v1135_v5 = vcvt.s32.f32 %v1133_v3  ;;  %v1134_v6 = vcvt.s32.f32 %v1132_v4 }
0x1047   :  { %1138 = vadd.xlane.f32.xlu2 %v1135_v5  ;;  %1136 = vadd.xlane.f32.xlu1 %v1134_v6 }
0x10b2   :  { %v1116_v7 = vpop.xlane.xlu1 %1115  ;;  %v1114_v8 = vpop.xlane.xlu0 %1113 }
0x10b3   :  { %v1118_v9 = vcvt.f32.s32 %v1116_v7  ;;  %v1117_v11 = vcvt.f32.s32 %v1114_v8 }
0x10b5   :  { %v1119_v10 = vshll.u32 %v1118_v9, 16 }
0x10b7   :  { %v1120_v12 = vadd.s32 %v1119_v10, %v1117_v11 }
0x10b9   :  { %v1121_v13 = vrot.slane %v1120_v12, 4 }
0x10ba   :  { %v1139_v14 = vpop.xlane.xlu2 %1138  ;;  %v1137_v15 = vpop.xlane.xlu1 %1136 }
0x10bb   :  { %v1122_v16 = vadd.s32 %v1121_v13, %v1120_v12  ;;  %v1141_v17 = vcvt.f32.s32 %v1139_v14  ;;  %v1140_v19 = vcvt.f32.s32 %v1137_v15 }
0x10bd   :  { %v1142_v18 = vshll.u32 %v1141_v17, 16  ;;  %v1123_v20 = vrot.slane %v1122_v16, 2 }
0x10bf   :  { %v1143_v23 = vadd.s32 %v1142_v18, %v1140_v19  ;;  %v1124_v24 = vadd.s32 %v1123_v20, %v1122_v16 }
0x10c1   :  { %v1144_v25 = vrot.slane %v1143_v23, 4  ;;  %v1125_v26 = vrot.slane %v1124_v24, 1 }
0x10c3   :  { %v1145_v27 = vadd.s32 %v1144_v25, %v1143_v23  ;;  %v1126_v28 = vadd.s32 %v1125_v26, %v1124_v24 }
0x10c5   :  { %1750 = vpush %v1126_v28  ;;  %v1146_v29 = vrot.slane %v1145_v27, 2 }
0x10c7   :  { %v1147_v30 = vadd.s32 %v1146_v29, %v1145_v27 }
0x10c9   :  { %v1148_v31 = vrot.slane %v1147_v30, 1 }
0x10cb   :  { %v1149_v32 = vadd.s32 %v1148_v31, %v1147_v30 }
0x10cd   :  { %1752 = vpush %v1149_v32 }
0x10f6   :  { %s1751_s11 = spop %1750 }
0x10f7   :  { %p1151_p0 = scmp.le.s32.totalorder %s1751_s11, 3 }
0x10f9   :  { %s2596_s8 = smov (!%p1151_p0, %s1103_s8), %s2592_s4 }
0x10fa   :  { %s1155_s12 = sor.u32 256, %s2596_s8 }
0x10fb   :  { %v1157_v33 = vstv %s1155_s12 }
0x10fc   :  { %vm1158_vm2 = vcmp.lt.s32.totalorder %v1839_v21, %v1157_v33 }
0x10fd   :  { %v1159_v34 = vsel %vm1158_vm2, 1, %v1812_v22 }
0x10fe   :  { %s1753_s13 = spop %1752  ;;  %v1160_v35 = vsel %vm38_vm4, %v1159_v34, 0 }
0x10ff   :  { %p1153_p1 = scmp.le.s32.totalorder %s1753_s13, 4  ;;  %v1162_v36 = vshrl.u32 %v1160_v35, 16  ;;  %v1161_v37 = vand.u32 65535, %v1160_v35 }
0x1101   :  { %s2598_s10 = smov (!%p1153_p1, %s1104_s10), %s2594_s6  ;;  %v1164_v38 = vcvt.s32.f32 %v1162_v36  ;;  %v1163_v39 = vcvt.s32.f32 %v1161_v37 }
0x1102   :  { %s1156_s14 = sor.u32 256, %s2598_s10 }
0x1103   :  { %1167 = vadd.xlane.f32.xlu2 %v1164_v38  ;;  %1165 = vadd.xlane.f32.xlu1 %v1163_v39  ;;  %v1180_v40 = vstv %s1156_s14 }
0x1104   :  { %vm1181_vm3 = vcmp.lt.s32.totalorder %v1839_v21, %v1180_v40 }
0x1105   :  { %v1182_v41 = vsel %vm1181_vm3, 1, %v1812_v22 }
0x1106   :  { %v1183_v42 = vsel %vm38_vm4, %v1182_v41, 0 }
0x1107   :  { %v1185_v43 = vshrl.u32 %v1183_v42, 16  ;;  %v1184_v44 = vand.u32 65535, %v1183_v42 }
0x1109   :  { %v1187_v45 = vcvt.s32.f32 %v1185_v43  ;;  %v1186_v46 = vcvt.s32.f32 %v1184_v44 }
0x110b   :  { %1190 = vadd.xlane.f32.xlu0 %v1187_v45  ;;  %1188 = vadd.xlane.f32.xlu2 %v1186_v46 }
0x1176   :  { %v1168_v47 = vpop.xlane.xlu2 %1167  ;;  %v1166_v48 = vpop.xlane.xlu1 %1165 }
0x1177   :  { %v1170_v49 = vcvt.f32.s32 %v1168_v47  ;;  %v1169_v51 = vcvt.f32.s32 %v1166_v48 }
0x1179   :  { %v1171_v50 = vshll.u32 %v1170_v49, 16 }
0x117b   :  { %v1172_v52 = vadd.s32 %v1171_v50, %v1169_v51 }
0x117d   :  { %v1173_v53 = vrot.slane %v1172_v52, 4 }
0x117e   :  { %v1191_v54 = vpop.xlane.xlu0 %1190  ;;  %v1189_v55 = vpop.xlane.xlu2 %1188 }
0x117f   :  { %v1174_v56 = vadd.s32 %v1173_v53, %v1172_v52  ;;  %v1193_v57 = vcvt.f32.s32 %v1191_v54  ;;  %v1192_v59 = vcvt.f32.s32 %v1189_v55 }
0x1181   :  { %v1194_v58 = vshll.u32 %v1193_v57, 16  ;;  %v1175_v60 = vrot.slane %v1174_v56, 2 }
0x1183   :  { %v1195_v61 = vadd.s32 %v1194_v58, %v1192_v59  ;;  %v1176_v62 = vadd.s32 %v1175_v60, %v1174_v56 }
0x1185   :  { %v1196_v63 = vrot.slane %v1195_v61, 4  ;;  %v1177_v0 = vrot.slane %v1176_v62, 1 }
0x1187   :  { %v1197_v1 = vadd.s32 %v1196_v63, %v1195_v61  ;;  %v1178_v2 = vadd.s32 %v1177_v0, %v1176_v62 }
0x1189   :  { %1754 = vpush %v1178_v2  ;;  %v1198_v3 = vrot.slane %v1197_v1, 2 }
0x118b   :  { %v1199_v4 = vadd.s32 %v1198_v3, %v1197_v1 }
0x118d   :  { %v1200_v5 = vrot.slane %v1199_v4, 1 }
0x118f   :  { %v1201_v6 = vadd.s32 %v1200_v5, %v1199_v4 }
0x1191   :  { %1756 = vpush %v1201_v6 }
0x11ba   :  { %s1755_s15 = spop %1754 }
0x11bb   :  { %p1203_p2 = scmp.le.s32.totalorder %s1755_s15, 3 }
0x11bd   :  { %s2600_s12 = smov (!%p1203_p2, %s1155_s12), %s2596_s8 }
0x11be   :  { %s1207_s0 = sor.u32 128, %s2600_s12 }
0x11bf   :  { %v1209_v7 = vstv %s1207_s0 }
0x11c0   :  { %vm1210_vm5 = vcmp.lt.s32.totalorder %v1839_v21, %v1209_v7 }
0x11c1   :  { %v1211_v8 = vsel %vm1210_vm5, 1, %v1812_v22 }
0x11c2   :  { %s1757_s16 = spop %1756  ;;  %v1212_v9 = vsel %vm38_vm4, %v1211_v8, 0 }
0x11c3   :  { %p1205_p3 = scmp.le.s32.totalorder %s1757_s16, 4  ;;  %v1214_v10 = vshrl.u32 %v1212_v9, 16  ;;  %v1213_v11 = vand.u32 65535, %v1212_v9 }
0x11c5   :  { %s2602_s14 = smov (!%p1205_p3, %s1156_s14), %s2598_s10  ;;  %v1216_v12 = vcvt.s32.f32 %v1214_v10  ;;  %v1215_v13 = vcvt.s32.f32 %v1213_v11 }
0x11c6   :  { %s1208_s17 = sor.u32 128, %s2602_s14 }
0x11c7   :  { %1219 = vadd.xlane.f32.xlu0 %v1216_v12  ;;  %1217 = vadd.xlane.f32.xlu2 %v1215_v13  ;;  %v1232_v14 = vstv %s1208_s17 }
0x11c8   :  { %vm1233_vm6 = vcmp.lt.s32.totalorder %v1839_v21, %v1232_v14 }
0x11c9   :  { %v1234_v15 = vsel %vm1233_vm6, 1, %v1812_v22 }
0x11ca   :  { %v1235_v16 = vsel %vm38_vm4, %v1234_v15, 0 }
0x11cb   :  { %v1237_v17 = vshrl.u32 %v1235_v16, 16  ;;  %v1236_v18 = vand.u32 65535, %v1235_v16 }
0x11cd   :  { %v1239_v19 = vcvt.s32.f32 %v1237_v17  ;;  %v1238_v20 = vcvt.s32.f32 %v1236_v18 }
0x11cf   :  { %1242 = vadd.xlane.f32.xlu1 %v1239_v19  ;;  %1240 = vadd.xlane.f32.xlu0 %v1238_v20 }
0x123a   :  { %v1220_v23 = vpop.xlane.xlu0 %1219  ;;  %v1218_v24 = vpop.xlane.xlu2 %1217 }
0x123b   :  { %v1222_v25 = vcvt.f32.s32 %v1220_v23  ;;  %v1221_v27 = vcvt.f32.s32 %v1218_v24 }
0x123d   :  { %v1223_v26 = vshll.u32 %v1222_v25, 16 }
0x123f   :  { %v1224_v28 = vadd.s32 %v1223_v26, %v1221_v27 }
0x1241   :  { %v1225_v29 = vrot.slane %v1224_v28, 4 }
0x1242   :  { %v1243_v30 = vpop.xlane.xlu1 %1242  ;;  %v1241_v31 = vpop.xlane.xlu0 %1240 }
0x1243   :  { %v1226_v32 = vadd.s32 %v1225_v29, %v1224_v28  ;;  %v1245_v33 = vcvt.f32.s32 %v1243_v30  ;;  %v1244_v35 = vcvt.f32.s32 %v1241_v31 }
0x1245   :  { %v1246_v34 = vshll.u32 %v1245_v33, 16  ;;  %v1227_v36 = vrot.slane %v1226_v32, 2 }
0x1247   :  { %v1247_v37 = vadd.s32 %v1246_v34, %v1244_v35  ;;  %v1228_v38 = vadd.s32 %v1227_v36, %v1226_v32 }
0x1249   :  { %v1248_v39 = vrot.slane %v1247_v37, 4  ;;  %v1229_v40 = vrot.slane %v1228_v38, 1 }
0x124b   :  { %v1249_v41 = vadd.s32 %v1248_v39, %v1247_v37  ;;  %v1230_v42 = vadd.s32 %v1229_v40, %v1228_v38 }
0x124d   :  { %1758 = vpush %v1230_v42  ;;  %v1250_v43 = vrot.slane %v1249_v41, 2 }
0x124f   :  { %v1251_v44 = vadd.s32 %v1250_v43, %v1249_v41 }
0x1251   :  { %v1252_v45 = vrot.slane %v1251_v44, 1 }
0x1253   :  { %v1253_v46 = vadd.s32 %v1252_v45, %v1251_v44 }
0x1255   :  { %1760 = vpush %v1253_v46 }
0x127e   :  { %s1759_s18 = spop %1758 }
0x127f   :  { %p1255_p4 = scmp.le.s32.totalorder %s1759_s18, 3 }
0x1281   :  { %s2604_s0 = smov (!%p1255_p4, %s1207_s0), %s2600_s12 }
0x1282   :  { %s1259_s19 = sor.u32 64, %s2604_s0 }
0x1283   :  { %v1261_v47 = vstv %s1259_s19 }
0x1284   :  { %vm1262_vm7 = vcmp.lt.s32.totalorder %v1839_v21, %v1261_v47 }
0x1285   :  { %v1263_v48 = vsel %vm1262_vm7, 1, %v1812_v22 }
0x1286   :  { %s1761_s20 = spop %1760  ;;  %v1264_v49 = vsel %vm38_vm4, %v1263_v48, 0 }
0x1287   :  { %p1257_p5 = scmp.le.s32.totalorder %s1761_s20, 4  ;;  %v1266_v50 = vshrl.u32 %v1264_v49, 16  ;;  %v1265_v51 = vand.u32 65535, %v1264_v49 }
0x1289   :  { %s2606_s17 = smov (!%p1257_p5, %s1208_s17), %s2602_s14  ;;  %v1268_v52 = vcvt.s32.f32 %v1266_v50  ;;  %v1267_v53 = vcvt.s32.f32 %v1265_v51 }
0x128a   :  { %s1260_s21 = sor.u32 64, %s2606_s17 }
0x128b   :  { %1271 = vadd.xlane.f32.xlu1 %v1268_v52  ;;  %1269 = vadd.xlane.f32.xlu0 %v1267_v53  ;;  %v1284_v54 = vstv %s1260_s21 }
0x128c   :  { %vm1285_vm8 = vcmp.lt.s32.totalorder %v1839_v21, %v1284_v54 }
0x128d   :  { %v1286_v55 = vsel %vm1285_vm8, 1, %v1812_v22 }
0x128e   :  { %v1287_v56 = vsel %vm38_vm4, %v1286_v55, 0 }
0x128f   :  { %v1289_v57 = vshrl.u32 %v1287_v56, 16  ;;  %v1288_v58 = vand.u32 65535, %v1287_v56 }
0x1291   :  { %v1291_v59 = vcvt.s32.f32 %v1289_v57  ;;  %v1290_v60 = vcvt.s32.f32 %v1288_v58 }
0x1293   :  { %1294 = vadd.xlane.f32.xlu2 %v1291_v59  ;;  %1292 = vadd.xlane.f32.xlu1 %v1290_v60 }
0x12fe   :  { %v1272_v61 = vpop.xlane.xlu1 %1271  ;;  %v1270_v62 = vpop.xlane.xlu0 %1269 }
0x12ff   :  { %v1274_v63 = vcvt.f32.s32 %v1272_v61  ;;  %v1273_v1 = vcvt.f32.s32 %v1270_v62 }
0x1301   :  { %v1275_v0 = vshll.u32 %v1274_v63, 16 }
0x1303   :  { %v1276_v2 = vadd.s32 %v1275_v0, %v1273_v1 }
0x1305   :  { %v1277_v3 = vrot.slane %v1276_v2, 4 }
0x1306   :  { %v1295_v4 = vpop.xlane.xlu2 %1294  ;;  %v1293_v5 = vpop.xlane.xlu1 %1292 }
0x1307   :  { %v1278_v6 = vadd.s32 %v1277_v3, %v1276_v2  ;;  %v1297_v7 = vcvt.f32.s32 %v1295_v4  ;;  %v1296_v9 = vcvt.f32.s32 %v1293_v5 }
0x1309   :  { %v1298_v8 = vshll.u32 %v1297_v7, 16  ;;  %v1279_v10 = vrot.slane %v1278_v6, 2 }
0x130b   :  { %v1299_v11 = vadd.s32 %v1298_v8, %v1296_v9  ;;  %v1280_v12 = vadd.s32 %v1279_v10, %v1278_v6 }
0x130d   :  { %v1300_v13 = vrot.slane %v1299_v11, 4  ;;  %v1281_v14 = vrot.slane %v1280_v12, 1 }
0x130f   :  { %v1301_v15 = vadd.s32 %v1300_v13, %v1299_v11  ;;  %v1282_v16 = vadd.s32 %v1281_v14, %v1280_v12 }
0x1311   :  { %1762 = vpush %v1282_v16  ;;  %v1302_v17 = vrot.slane %v1301_v15, 2 }
0x1313   :  { %v1303_v18 = vadd.s32 %v1302_v17, %v1301_v15 }
0x1315   :  { %v1304_v19 = vrot.slane %v1303_v18, 1 }
0x1317   :  { %v1305_v20 = vadd.s32 %v1304_v19, %v1303_v18 }
0x1319   :  { %1764 = vpush %v1305_v20 }
0x1342   :  { %s1763_s22 = spop %1762 }
0x1343   :  { %p1307_p6 = scmp.le.s32.totalorder %s1763_s22, 3  ;;  %s1658_s22 = sshll.u32 %s2514_s1, 4  ;;  %s1659_s22 = int_to_ptr.hbm [resolvable:$true] %s1658_s22 }
0x1345   :  { %s2608_s19 = smov (!%p1307_p6, %s1259_s19), %s2604_s0 }
0x1346   :  { %s1311_s23 = sor.u32 32, %s2608_s19 }
0x1347   :  { %v1313_v23 = vstv %s1311_s23 }
0x1348   :  { %vm1314_vm9 = vcmp.lt.s32.totalorder %v1839_v21, %v1313_v23 }
0x1349   :  { %v1315_v24 = vsel %vm1314_vm9, 1, %v1812_v22 }
0x134a   :  { %s1765_s24 = spop %1764  ;;  %v1316_v25 = vsel %vm38_vm4, %v1315_v24, 0 }
0x134b   :  { %p1309_p7 = scmp.le.s32.totalorder %s1765_s24, 4  ;;  %v1318_v26 = vshrl.u32 %v1316_v25, 16  ;;  %v1317_v27 = vand.u32 65535, %v1316_v25 }
0x134d   :  { %s2610_s21 = smov (!%p1309_p7, %s1260_s21), %s2606_s17  ;;  %v1320_v28 = vcvt.s32.f32 %v1318_v26  ;;  %v1319_v29 = vcvt.s32.f32 %v1317_v27 }
0x134e   :  { %s1312_s25 = sor.u32 32, %s2610_s21 }
0x134f   :  { %1323 = vadd.xlane.f32.xlu2 %v1320_v28  ;;  %1321 = vadd.xlane.f32.xlu1 %v1319_v29  ;;  %v1336_v30 = vstv %s1312_s25 }
0x1350   :  { %vm1337_vm10 = vcmp.lt.s32.totalorder %v1839_v21, %v1336_v30 }
0x1351   :  { %v1338_v31 = vsel %vm1337_vm10, 1, %v1812_v22 }
0x1352   :  { %v1339_v32 = vsel %vm38_vm4, %v1338_v31, 0 }
0x1353   :  { %v1341_v33 = vshrl.u32 %v1339_v32, 16  ;;  %v1340_v34 = vand.u32 65535, %v1339_v32 }
0x1355   :  { %v1343_v35 = vcvt.s32.f32 %v1341_v33  ;;  %v1342_v36 = vcvt.s32.f32 %v1340_v34 }
0x1357   :  { %1346 = vadd.xlane.f32.xlu0 %v1343_v35  ;;  %1344 = vadd.xlane.f32.xlu2 %v1342_v36 }
0x13c2   :  { %v1324_v37 = vpop.xlane.xlu2 %1323  ;;  %v1322_v38 = vpop.xlane.xlu1 %1321 }
0x13c3   :  { %v1326_v39 = vcvt.f32.s32 %v1324_v37  ;;  %v1325_v41 = vcvt.f32.s32 %v1322_v38 }
0x13c5   :  { %v1327_v40 = vshll.u32 %v1326_v39, 16 }
0x13c7   :  { %v1328_v42 = vadd.s32 %v1327_v40, %v1325_v41 }
0x13c9   :  { %v1329_v43 = vrot.slane %v1328_v42, 4 }
0x13ca   :  { %v1347_v44 = vpop.xlane.xlu0 %1346  ;;  %v1345_v45 = vpop.xlane.xlu2 %1344 }
0x13cb   :  { %v1330_v46 = vadd.s32 %v1329_v43, %v1328_v42  ;;  %v1349_v47 = vcvt.f32.s32 %v1347_v44  ;;  %v1348_v49 = vcvt.f32.s32 %v1345_v45 }
0x13cd   :  { %v1350_v48 = vshll.u32 %v1349_v47, 16  ;;  %v1331_v50 = vrot.slane %v1330_v46, 2 }
0x13cf   :  { %v1351_v51 = vadd.s32 %v1350_v48, %v1348_v49  ;;  %v1332_v52 = vadd.s32 %v1331_v50, %v1330_v46 }
0x13d1   :  { %v1352_v53 = vrot.slane %v1351_v51, 4  ;;  %v1333_v54 = vrot.slane %v1332_v52, 1 }
0x13d3   :  { %v1353_v55 = vadd.s32 %v1352_v53, %v1351_v51  ;;  %v1334_v56 = vadd.s32 %v1333_v54, %v1332_v52 }
0x13d5   :  { %1766 = vpush %v1334_v56  ;;  %v1354_v57 = vrot.slane %v1353_v55, 2 }
0x13d7   :  { %v1355_v58 = vadd.s32 %v1354_v57, %v1353_v55 }
0x13d9   :  { %v1356_v59 = vrot.slane %v1355_v58, 1 }
0x13db   :  { %v1357_v60 = vadd.s32 %v1356_v59, %v1355_v58 }
0x13dd   :  { %1768 = vpush %v1357_v60 }
0x1406   :  { %s1767_s26 = spop %1766 }
0x1407   :  { %p1359_p8 = scmp.le.s32.totalorder %s1767_s26, 3 }
0x1409   :  { %s2612_s23 = smov (!%p1359_p8, %s1311_s23), %s2608_s19 }
0x140a   :  { %s1363_s27 = sor.u32 16, %s2612_s23 }
0x140b   :  { %v1365_v61 = vstv %s1363_s27 }
0x140c   :  { %vm1366_vm11 = vcmp.lt.s32.totalorder %v1839_v21, %v1365_v61 }
0x140d   :  { %v1367_v62 = vsel %vm1366_vm11, 1, %v1812_v22 }
0x140e   :  { %s1769_s28 = spop %1768  ;;  %v1368_v63 = vsel %vm38_vm4, %v1367_v62, 0 }
0x140f   :  { %p1361_p9 = scmp.le.s32.totalorder %s1769_s28, 4  ;;  %v1370_v0 = vshrl.u32 %v1368_v63, 16  ;;  %v1369_v1 = vand.u32 65535, %v1368_v63 }
0x1411   :  { %s2614_s25 = smov (!%p1361_p9, %s1312_s25), %s2610_s21  ;;  %v1372_v2 = vcvt.s32.f32 %v1370_v0  ;;  %v1371_v3 = vcvt.s32.f32 %v1369_v1 }
0x1412   :  { %s1364_s29 = sor.u32 16, %s2614_s25 }
0x1413   :  { %1375 = vadd.xlane.f32.xlu0 %v1372_v2  ;;  %1373 = vadd.xlane.f32.xlu2 %v1371_v3  ;;  %v1388_v4 = vstv %s1364_s29 }
0x1414   :  { %vm1389_vm12 = vcmp.lt.s32.totalorder %v1839_v21, %v1388_v4 }
0x1415   :  { %v1390_v5 = vsel %vm1389_vm12, 1, %v1812_v22 }
0x1416   :  { %v1391_v6 = vsel %vm38_vm4, %v1390_v5, 0 }
0x1417   :  { %v1393_v7 = vshrl.u32 %v1391_v6, 16  ;;  %v1392_v8 = vand.u32 65535, %v1391_v6 }
0x1419   :  { %v1395_v9 = vcvt.s32.f32 %v1393_v7  ;;  %v1394_v10 = vcvt.s32.f32 %v1392_v8 }
0x141b   :  { %1398 = vadd.xlane.f32.xlu1 %v1395_v9  ;;  %1396 = vadd.xlane.f32.xlu0 %v1394_v10 }
0x1486   :  { %v1376_v11 = vpop.xlane.xlu0 %1375  ;;  %v1374_v12 = vpop.xlane.xlu2 %1373 }
0x1487   :  { %v1378_v13 = vcvt.f32.s32 %v1376_v11  ;;  %v1377_v15 = vcvt.f32.s32 %v1374_v12 }
0x1489   :  { %v1379_v14 = vshll.u32 %v1378_v13, 16 }
0x148b   :  { %v1380_v16 = vadd.s32 %v1379_v14, %v1377_v15 }
0x148d   :  { %v1381_v17 = vrot.slane %v1380_v16, 4 }
0x148e   :  { %v1399_v18 = vpop.xlane.xlu1 %1398  ;;  %v1397_v19 = vpop.xlane.xlu0 %1396 }
0x148f   :  { %v1382_v20 = vadd.s32 %v1381_v17, %v1380_v16  ;;  %v1401_v23 = vcvt.f32.s32 %v1399_v18  ;;  %v1400_v25 = vcvt.f32.s32 %v1397_v19 }
0x1491   :  { %v1402_v24 = vshll.u32 %v1401_v23, 16  ;;  %v1383_v26 = vrot.slane %v1382_v20, 2 }
0x1493   :  { %v1403_v27 = vadd.s32 %v1402_v24, %v1400_v25  ;;  %v1384_v28 = vadd.s32 %v1383_v26, %v1382_v20 }
0x1495   :  { %v1404_v29 = vrot.slane %v1403_v27, 4  ;;  %v1385_v30 = vrot.slane %v1384_v28, 1 }
0x1497   :  { %v1405_v31 = vadd.s32 %v1404_v29, %v1403_v27  ;;  %v1386_v32 = vadd.s32 %v1385_v30, %v1384_v28 }
0x1499   :  { %1770 = vpush %v1386_v32  ;;  %v1406_v33 = vrot.slane %v1405_v31, 2 }
0x149b   :  { %v1407_v34 = vadd.s32 %v1406_v33, %v1405_v31 }
0x149d   :  { %v1408_v35 = vrot.slane %v1407_v34, 1 }
0x149f   :  { %v1409_v36 = vadd.s32 %v1408_v35, %v1407_v34 }
0x14a1   :  { %1772 = vpush %v1409_v36 }
0x14ca   :  { %s1771_s30 = spop %1770 }
0x14cb   :  { %p1411_p10 = scmp.le.s32.totalorder %s1771_s30, 3 }
0x14cd   :  { %s2616_s27 = smov (!%p1411_p10, %s1363_s27), %s2612_s23 }
0x14ce   :  { %s1415_s2 = sor.u32 8, %s2616_s27 }
0x14cf   :  { %v1417_v37 = vstv %s1415_s2 }
0x14d0   :  { %vm1418_vm13 = vcmp.lt.s32.totalorder %v1839_v21, %v1417_v37 }
0x14d1   :  { %v1419_v38 = vsel %vm1418_vm13, 1, %v1812_v22 }
0x14d2   :  { %s1773_s3 = spop %1772  ;;  %v1420_v39 = vsel %vm38_vm4, %v1419_v38, 0 }
0x14d3   :  { %p1413_p11 = scmp.le.s32.totalorder %s1773_s3, 4  ;;  %v1422_v40 = vshrl.u32 %v1420_v39, 16  ;;  %v1421_v41 = vand.u32 65535, %v1420_v39 }
0x14d5   :  { %s2618_s29 = smov (!%p1413_p11, %s1364_s29), %s2614_s25  ;;  %v1424_v42 = vcvt.s32.f32 %v1422_v40  ;;  %v1423_v43 = vcvt.s32.f32 %v1421_v41  ;;  %s1813_s25 = smov [#allocation2]  }
0x14d6   :  { %s1416_s4 = sor.u32 8, %s2618_s29 }
0x14d7   :  { %1427 = vadd.xlane.f32.xlu1 %v1424_v42  ;;  %1425 = vadd.xlane.f32.xlu0 %v1423_v43  ;;  %v1440_v44 = vstv %s1416_s4 }
0x14d8   :  { %vm1441_vm14 = vcmp.lt.s32.totalorder %v1839_v21, %v1440_v44 }
0x14d9   :  { %v1442_v45 = vsel %vm1441_vm14, 1, %v1812_v22 }
0x14da   :  { %v1443_v46 = vsel %vm38_vm4, %v1442_v45, 0 }
0x14db   :  { %v1445_v47 = vshrl.u32 %v1443_v46, 16  ;;  %v1444_v48 = vand.u32 65535, %v1443_v46 }
0x14dd   :  { %v1447_v49 = vcvt.s32.f32 %v1445_v47  ;;  %v1446_v50 = vcvt.s32.f32 %v1444_v48 }
0x14df   :  { %1450 = vadd.xlane.f32.xlu2 %v1447_v49  ;;  %1448 = vadd.xlane.f32.xlu1 %v1446_v50 }
0x154a   :  { %v1428_v51 = vpop.xlane.xlu1 %1427  ;;  %v1426_v52 = vpop.xlane.xlu0 %1425 }
0x154b   :  { %v1430_v53 = vcvt.f32.s32 %v1428_v51  ;;  %v1429_v55 = vcvt.f32.s32 %v1426_v52 }
0x154d   :  { %v1431_v54 = vshll.u32 %v1430_v53, 16 }
0x154f   :  { %v1432_v56 = vadd.s32 %v1431_v54, %v1429_v55 }
0x1551   :  { %v1433_v57 = vrot.slane %v1432_v56, 4 }
0x1552   :  { %v1451_v58 = vpop.xlane.xlu2 %1450  ;;  %v1449_v59 = vpop.xlane.xlu1 %1448 }
0x1553   :  { %v1434_v60 = vadd.s32 %v1433_v57, %v1432_v56  ;;  %v1453_v61 = vcvt.f32.s32 %v1451_v58  ;;  %v1452_v63 = vcvt.f32.s32 %v1449_v59 }
0x1555   :  { %v1454_v62 = vshll.u32 %v1453_v61, 16  ;;  %v1435_v0 = vrot.slane %v1434_v60, 2 }
0x1557   :  { %v1455_v1 = vadd.s32 %v1454_v62, %v1452_v63  ;;  %v1436_v2 = vadd.s32 %v1435_v0, %v1434_v60 }
0x1559   :  { %v1456_v3 = vrot.slane %v1455_v1, 4  ;;  %v1437_v4 = vrot.slane %v1436_v2, 1 }
0x155b   :  { %v1457_v5 = vadd.s32 %v1456_v3, %v1455_v1  ;;  %v1438_v6 = vadd.s32 %v1437_v4, %v1436_v2 }
0x155d   :  { %1774 = vpush %v1438_v6  ;;  %v1458_v7 = vrot.slane %v1457_v5, 2 }
0x155f   :  { %v1459_v8 = vadd.s32 %v1458_v7, %v1457_v5 }
0x1561   :  { %v1460_v9 = vrot.slane %v1459_v8, 1 }
0x1563   :  { %v1461_v10 = vadd.s32 %v1460_v9, %v1459_v8 }
0x1565   :  { %1776 = vpush %v1461_v10 }
0x158e   :  { %s1775_s5 = spop %1774 }
0x158f   :  { %p1463_p12 = scmp.le.s32.totalorder %s1775_s5, 3 }
0x1591   :  { %s2620_s2 = smov (!%p1463_p12, %s1415_s2), %s2616_s27 }
0x1592   :  { %s1467_s6 = sor.u32 4, %s2620_s2 }
0x1593   :  { %v1469_v11 = vstv %s1467_s6 }
0x1594   :  { %vm1470_vm15 = vcmp.lt.s32.totalorder %v1839_v21, %v1469_v11 }
0x1595   :  { %v1471_v12 = vsel %vm1470_vm15, 1, %v1812_v22 }
0x1596   :  { %s1777_s7 = spop %1776  ;;  %v1472_v13 = vsel %vm38_vm4, %v1471_v12, 0 }
0x1597   :  { %p1465_p13 = scmp.le.s32.totalorder %s1777_s7, 4  ;;  %v1474_v14 = vshrl.u32 %v1472_v13, 16  ;;  %v1473_v15 = vand.u32 65535, %v1472_v13 }
0x1599   :  { %s2622_s4 = smov (!%p1465_p13, %s1416_s4), %s2618_s29  ;;  %v1476_v16 = vcvt.s32.f32 %v1474_v14  ;;  %v1475_v17 = vcvt.s32.f32 %v1473_v15 }
0x159a   :  { %s1468_s8 = sor.u32 4, %s2622_s4 }
0x159b   :  { %1479 = vadd.xlane.f32.xlu2 %v1476_v16  ;;  %1477 = vadd.xlane.f32.xlu1 %v1475_v17  ;;  %v1492_v18 = vstv %s1468_s8 }
0x159c   :  { %vm1493_vm0 = vcmp.lt.s32.totalorder %v1839_v21, %v1492_v18 }
0x159d   :  { %v1494_v19 = vsel %vm1493_vm0, 1, %v1812_v22 }
0x159e   :  { %v1495_v20 = vsel %vm38_vm4, %v1494_v19, 0 }
0x159f   :  { %v1497_v23 = vshrl.u32 %v1495_v20, 16  ;;  %v1496_v24 = vand.u32 65535, %v1495_v20 }
0x15a1   :  { %v1499_v25 = vcvt.s32.f32 %v1497_v23  ;;  %v1498_v26 = vcvt.s32.f32 %v1496_v24 }
0x15a3   :  { %1502 = vadd.xlane.f32.xlu0 %v1499_v25  ;;  %1500 = vadd.xlane.f32.xlu2 %v1498_v26 }
0x160e   :  { %v1480_v27 = vpop.xlane.xlu2 %1479  ;;  %v1478_v28 = vpop.xlane.xlu1 %1477 }
0x160f   :  { %v1482_v29 = vcvt.f32.s32 %v1480_v27  ;;  %v1481_v31 = vcvt.f32.s32 %v1478_v28 }
0x1611   :  { %v1483_v30 = vshll.u32 %v1482_v29, 16 }
0x1613   :  { %v1484_v32 = vadd.s32 %v1483_v30, %v1481_v31 }
0x1615   :  { %v1485_v33 = vrot.slane %v1484_v32, 4 }
0x1616   :  { %v1503_v34 = vpop.xlane.xlu0 %1502  ;;  %v1501_v35 = vpop.xlane.xlu2 %1500 }
0x1617   :  { %v1486_v36 = vadd.s32 %v1485_v33, %v1484_v32  ;;  %v1505_v37 = vcvt.f32.s32 %v1503_v34  ;;  %v1504_v39 = vcvt.f32.s32 %v1501_v35 }
0x1619   :  { %v1506_v38 = vshll.u32 %v1505_v37, 16  ;;  %v1487_v40 = vrot.slane %v1486_v36, 2 }
0x161b   :  { %v1507_v41 = vadd.s32 %v1506_v38, %v1504_v39  ;;  %v1488_v42 = vadd.s32 %v1487_v40, %v1486_v36 }
0x161d   :  { %v1508_v43 = vrot.slane %v1507_v41, 4  ;;  %v1489_v44 = vrot.slane %v1488_v42, 1 }
0x161f   :  { %v1509_v45 = vadd.s32 %v1508_v43, %v1507_v41  ;;  %v1490_v46 = vadd.s32 %v1489_v44, %v1488_v42 }
0x1621   :  { %1778 = vpush %v1490_v46  ;;  %v1510_v47 = vrot.slane %v1509_v45, 2 }
0x1623   :  { %v1511_v48 = vadd.s32 %v1510_v47, %v1509_v45 }
0x1625   :  { %v1512_v49 = vrot.slane %v1511_v48, 1 }
0x1627   :  { %v1513_v50 = vadd.s32 %v1512_v49, %v1511_v48 }
0x1629   :  { %1780 = vpush %v1513_v50 }
0x1652   :  { %s1779_s9 = spop %1778 }
0x1653   :  { %p1515_p0 = scmp.le.s32.totalorder %s1779_s9, 3 }
0x1655   :  { %s2624_s6 = smov (!%p1515_p0, %s1467_s6), %s2620_s2 }
0x1656   :  { %s1519_s10 = sor.u32 2, %s2624_s6 }
0x1657   :  { %v1521_v51 = vstv %s1519_s10 }
0x1658   :  { %vm1522_vm1 = vcmp.lt.s32.totalorder %v1839_v21, %v1521_v51 }
0x1659   :  { %v1523_v52 = vsel %vm1522_vm1, 1, %v1812_v22 }
0x165a   :  { %s1781_s11 = spop %1780  ;;  %v1524_v53 = vsel %vm38_vm4, %v1523_v52, 0 }
0x165b   :  { %p1517_p1 = scmp.le.s32.totalorder %s1781_s11, 4  ;;  %v1526_v54 = vshrl.u32 %v1524_v53, 16  ;;  %v1525_v55 = vand.u32 65535, %v1524_v53 }
0x165d   :  { %s2626_s8 = smov (!%p1517_p1, %s1468_s8), %s2622_s4  ;;  %v1528_v56 = vcvt.s32.f32 %v1526_v54  ;;  %v1527_v57 = vcvt.s32.f32 %v1525_v55 }
0x165e   :  { %s1520_s12 = sor.u32 2, %s2626_s8 }
0x165f   :  { %1531 = vadd.xlane.f32.xlu0 %v1528_v56  ;;  %1529 = vadd.xlane.f32.xlu2 %v1527_v57  ;;  %v1544_v58 = vstv %s1520_s12 }
0x1660   :  { %vm1545_vm2 = vcmp.lt.s32.totalorder %v1839_v21, %v1544_v58 }
0x1661   :  { %v1546_v59 = vsel %vm1545_vm2, 1, %v1812_v22 }
0x1662   :  { %v1547_v60 = vsel %vm38_vm4, %v1546_v59, 0 }
0x1663   :  { %v1549_v61 = vshrl.u32 %v1547_v60, 16  ;;  %v1548_v62 = vand.u32 65535, %v1547_v60 }
0x1665   :  { %v1551_v63 = vcvt.s32.f32 %v1549_v61  ;;  %v1550_v0 = vcvt.s32.f32 %v1548_v62 }
0x1667   :  { %1554 = vadd.xlane.f32.xlu1 %v1551_v63  ;;  %1552 = vadd.xlane.f32.xlu0 %v1550_v0 }
0x16d2   :  { %v1532_v1 = vpop.xlane.xlu0 %1531  ;;  %v1530_v2 = vpop.xlane.xlu2 %1529 }
0x16d3   :  { %v1534_v3 = vcvt.f32.s32 %v1532_v1  ;;  %v1533_v5 = vcvt.f32.s32 %v1530_v2 }
0x16d5   :  { %v1535_v4 = vshll.u32 %v1534_v3, 16 }
0x16d7   :  { %v1536_v6 = vadd.s32 %v1535_v4, %v1533_v5 }
0x16d9   :  { %v1537_v7 = vrot.slane %v1536_v6, 4 }
0x16da   :  { %v1555_v8 = vpop.xlane.xlu1 %1554  ;;  %v1553_v9 = vpop.xlane.xlu0 %1552 }
0x16db   :  { %v1538_v10 = vadd.s32 %v1537_v7, %v1536_v6  ;;  %v1557_v11 = vcvt.f32.s32 %v1555_v8  ;;  %v1556_v13 = vcvt.f32.s32 %v1553_v9 }
0x16dd   :  { %v1558_v12 = vshll.u32 %v1557_v11, 16  ;;  %v1539_v14 = vrot.slane %v1538_v10, 2 }
0x16df   :  { %v1559_v15 = vadd.s32 %v1558_v12, %v1556_v13  ;;  %v1540_v16 = vadd.s32 %v1539_v14, %v1538_v10 }
0x16e1   :  { %v1560_v17 = vrot.slane %v1559_v15, 4  ;;  %v1541_v18 = vrot.slane %v1540_v16, 1 }
0x16e3   :  { %v1561_v19 = vadd.s32 %v1560_v17, %v1559_v15  ;;  %v1542_v20 = vadd.s32 %v1541_v18, %v1540_v16 }
0x16e5   :  { %1782 = vpush %v1542_v20  ;;  %v1562_v23 = vrot.slane %v1561_v19, 2 }
0x16e7   :  { %v1563_v24 = vadd.s32 %v1562_v23, %v1561_v19 }
0x16e9   :  { %v1564_v25 = vrot.slane %v1563_v24, 1 }
0x16eb   :  { %v1565_v26 = vadd.s32 %v1564_v25, %v1563_v24 }
0x16ed   :  { %1784 = vpush %v1565_v26 }
0x1716   :  { %s1783_s13 = spop %1782 }
0x1717   :  { %p1567_p2 = scmp.le.s32.totalorder %s1783_s13, 3 }
0x1719   :  { %s2628_s10 = smov (!%p1567_p2, %s1519_s10), %s2624_s6 }
0x171a   :  { %s1571_s14 = sor.u32 1, %s2628_s10 }
0x171b   :  { %v1573_v27 = vstv %s1571_s14 }
0x171c   :  { %vm1574_vm3 = vcmp.lt.s32.totalorder %v1839_v21, %v1573_v27 }
0x171d   :  { %v1575_v28 = vsel %vm1574_vm3, 1, %v1812_v22 }
0x171e   :  { %s1785_s15 = spop %1784  ;;  %v1576_v29 = vsel %vm38_vm4, %v1575_v28, 0 }
0x171f   :  { %p1569_p3 = scmp.le.s32.totalorder %s1785_s15, 4  ;;  %v1578_v30 = vshrl.u32 %v1576_v29, 16  ;;  %v1577_v31 = vand.u32 65535, %v1576_v29 }
0x1721   :  { %s2630_s12 = smov (!%p1569_p3, %s1520_s12), %s2626_s8  ;;  %v1580_v32 = vcvt.s32.f32 %v1578_v30  ;;  %v1579_v33 = vcvt.s32.f32 %v1577_v31 }
0x1722   :  { %s1572_s0 = sor.u32 1, %s2630_s12 }
0x1723   :  { %1583 = vadd.xlane.f32.xlu1 %v1580_v32  ;;  %1581 = vadd.xlane.f32.xlu0 %v1579_v33  ;;  %v1596_v34 = vstv %s1572_s0 }
0x1724   :  { %vm1597_vm5 = vcmp.lt.s32.totalorder %v1839_v21, %v1596_v34 }
0x1725   :  { %v1598_v35 = vsel %vm1597_vm5, 1, %v1812_v22 }
0x1726   :  { %v1599_v36 = vsel %vm38_vm4, %v1598_v35, 0 }
0x1727   :  { %v1601_v37 = vshrl.u32 %v1599_v36, 16  ;;  %v1600_v38 = vand.u32 65535, %v1599_v36 }
0x1729   :  { %v1603_v39 = vcvt.s32.f32 %v1601_v37  ;;  %v1602_v40 = vcvt.s32.f32 %v1600_v38 }
0x172b   :  { %1606 = vadd.xlane.f32.xlu2 %v1603_v39  ;;  %1604 = vadd.xlane.f32.xlu1 %v1602_v40 }
0x1796   :  { %v1584_v41 = vpop.xlane.xlu1 %1583  ;;  %v1582_v42 = vpop.xlane.xlu0 %1581 }
0x1797   :  { %v1586_v43 = vcvt.f32.s32 %v1584_v41  ;;  %v1585_v45 = vcvt.f32.s32 %v1582_v42 }
0x1799   :  { %v1587_v44 = vshll.u32 %v1586_v43, 16 }
0x179b   :  { %v1588_v46 = vadd.s32 %v1587_v44, %v1585_v45 }
0x179d   :  { %v1589_v47 = vrot.slane %v1588_v46, 4 }
0x179e   :  { %v1607_v48 = vpop.xlane.xlu2 %1606  ;;  %v1605_v49 = vpop.xlane.xlu1 %1604 }
0x179f   :  { %v1590_v50 = vadd.s32 %v1589_v47, %v1588_v46  ;;  %v1609_v51 = vcvt.f32.s32 %v1607_v48  ;;  %v1608_v52 = vcvt.f32.s32 %v1605_v49 }
0x17a1   :  { %v1610_v22 = vshll.u32 %v1609_v51, 16  ;;  %v1591_v53 = vrot.slane %v1590_v50, 2 }
0x17a3   :  { %v1611_v54 = vadd.s32 %v1610_v22, %v1608_v52  ;;  %v1592_v55 = vadd.s32 %v1591_v53, %v1590_v50 }
0x17a5   :  { %v1612_v56 = vrot.slane %v1611_v54, 4  ;;  %v1593_v57 = vrot.slane %v1592_v55, 1 }
0x17a7   :  { %v1613_v58 = vadd.s32 %v1612_v56, %v1611_v54  ;;  %v1594_v59 = vadd.s32 %v1593_v57, %v1592_v55 }
0x17a9   :  { %1786 = vpush %v1594_v59  ;;  %v1614_v60 = vrot.slane %v1613_v58, 2 }
0x17ab   :  { %v1615_v61 = vadd.s32 %v1614_v60, %v1613_v58 }
0x17ad   :  { %v1616_v62 = vrot.slane %v1615_v61, 1 }
0x17af   :  { %v1617_v63 = vadd.s32 %v1616_v62, %v1615_v61 }
0x17b1   :  { %1788 = vpush %v1617_v63 }
0x17da   :  { %s1787_s16 = spop %1786 }
0x17db   :  { %p1619_p4 = scmp.le.s32.totalorder %s1787_s16, 3 }
0x17dd   :  { %s2632_s14 = smov (!%p1619_p4, %s1571_s14), %s2628_s10 }
0x17de   :  { %v1623_v0 = vstv %s2632_s14 }
0x17df   :  { %vm1624_vm6 = vcmp.ge.s32.totalorder %v1839_v21, %v1623_v0 }
0x17e0   :  { %v1625_v1 = vsel %vm1624_vm6, %v1839_v21, inf }
0x17e1   :  { %v1626_v2 = vsel %vm38_vm4, %v1625_v1, inf }
0x17e2   :  { %s1789_s17 = spop %1788  ;;  %1627 = vmin.xlane.f32.xlu2 %v1626_v2 }
0x17e3   :  { %p1621_p5 = scmp.le.s32.totalorder %s1789_s17, 4 }
0x17e5   :  { %s2634_s0 = smov (!%p1621_p5, %s1572_s0), %s2630_s12 }
0x17e6   :  { %v1636_v3 = vstv %s2634_s0 }
0x17e7   :  { %vm1637_vm7 = vcmp.ge.s32.totalorder %v1839_v21, %v1636_v3 }
0x17e8   :  { %v1638_v4 = vsel %vm1637_vm7, %v1839_v21, inf }
0x17e9   :  { %v1639_v5 = vsel %vm38_vm4, %v1638_v4, inf }
0x17ea   :  { %1640 = vmin.xlane.f32.xlu0 %v1639_v5 }
0x1855   :  { %v1628_v6 = vpop.xlane.xlu2 %1627 }
0x1856   :  { %v1629_v7 = vrot.slane %v1628_v6, 4 }
0x1858   :  { %v1630_v8 = vmin.f32 %v1628_v6, %v1629_v7 }
0x185a   :  { %v1631_v9 = vrot.slane %v1630_v8, 2 }
0x185c   :  { %v1632_v10 = vmin.f32 %v1630_v8, %v1631_v9 }
0x185d   :  { %v1641_v11 = vpop.xlane.xlu0 %1640 }
0x185e   :  { %v1642_v12 = vrot.slane %v1641_v11, 4  ;;  %v1633_v13 = vrot.slane %v1632_v10, 1 }
0x1860   :  { %v1643_v14 = vmin.f32 %v1641_v11, %v1642_v12  ;;  %v1634_v15 = vmin.f32 %v1632_v10, %v1633_v13 }
0x1862   :  { %v1644_v16 = vrot.slane %v1643_v14, 2  ;;  %1790 = vpush %v1634_v15 }
0x1864   :  { %v1645_v17 = vmin.f32 %v1643_v14, %v1644_v16 }
0x1866   :  { %v1646_v18 = vrot.slane %v1645_v17, 1 }
0x1868   :  { %v1647_v19 = vmin.f32 %v1645_v17, %v1646_v18 }
0x186a   :  { %1792 = vpush %v1647_v19 }
0x1893   :  { %s1791_s18 = spop %1790 }
0x189b   :  { %s1793_s19 = spop %1792 }
0x189c   :  { %s1649_s23 = sadd.f32 %s1793_s19, %s1791_s18 }
0x189e   :  { %s1650_s24 = smul.f32 0.5, %s1649_s23 }
0x18a0   :  { %1652 = sst [smem:[#allocation2]] %s1650_s24 }
0x18a1   :  { %1661 = dma.smem_to_hbm %s1813_s25, 16, %s1659_s22, [#allocation3]  }
0x18a2   :  { %1810 = dma.done.wait [#allocation3], 16  }
0x18a3   :  { %1811 = vsyncadd [#allocation3], 4294967280 }
0x18a4   :  { %1666 = sfence }
0x18a5   :  { %1667 = vsyncpa [#allocation3], 1 }

</bundles_post_ra>
